<compile_context>
chip_gen: v5e
topology: v5e:2x2
jax: 0.10.0
libtpu: 0.0.40
codegen_flags: <defaults>
</compile_context>

<pallas_src>
import functools

import jax
import jax.numpy as jnp
from jax.experimental import pallas as pl
from jax.experimental.pallas import tpu as pltpu

_LANE = 128     # vreg lane width
_SUBLANE = 8    # vreg sublane width (f32)


def _round_up(n, m):
    return ((n + m - 1) // m) * m


# ------------------------------ fused kernel ---------------------------------
def _fused_lstm_fc_kernel(x_ref, wih1_ref, whh1_ref, b1_ref,
                          wih2_ref, whh2_hbm_ref, b2_ref, wfc_ref, bfc_ref,
                          out_ref,
                          xw1_ref, whh2_ref, dma_sem,
                          *, T, Bp, Hp):
    """Single invocation: 2-layer LSTM over T steps + FC on last hidden.

    x_ref        : (T*Bp, Dp)   f32, time-major, batch/feature padded
    wih1_ref     : (Dp, 4*Hp)   bf16
    whh1_ref     : (Hp, 4*Hp)   bf16
    b1_ref       : (1, 4*Hp)    f32   (b_ih + b_hh)
    wih2_ref     : (Hp, 4*Hp)   bf16
    whh2_hbm_ref : (Hp, 4*Hp)   bf16, stays in HBM (pl.ANY), copied manually
    b2_ref       : (1, 4*Hp)    f32
    wfc_ref      : (Hp, Cp)     bf16
    bfc_ref      : (1, Cp)      f32
    out_ref      : (Bp, Cp)     f32
    xw1_ref      : (T*Bp, 4*Hp) f32 VMEM scratch
    whh2_ref     : (Hp, 4*Hp)   bf16 VMEM scratch (manual DMA destination)
    dma_sem      : DMA semaphore
    """
    # Kick off the W_hh2 transfer immediately; first use is at t == 1, so it
    # overlaps the input projection and the whole first time step.
    if T > 1:
        whh2_copy = pltpu.make_async_copy(whh2_hbm_ref, whh2_ref, dma_sem)
        whh2_copy.start()

    # (1) Layer-1 input projection for ALL timesteps — off the serial path,
    #     written to VMEM scratch so it does not occupy vregs across the loop.
    xw1_ref[...] = (
        jnp.dot(x_ref[...].astype(jnp.bfloat16), wih1_ref[...],
                preferred_element_type=jnp.float32)
        + b1_ref[...])

    # Hoisted bias broadcast (JAX does not CSE broadcast_in_dim).
    b2 = jnp.broadcast_to(b2_ref[...], (Bp, 4 * Hp))

    h1 = jnp.zeros((Bp, Hp), jnp.float32)
    c1 = jnp.zeros((Bp, Hp), jnp.float32)
    h2 = jnp.zeros((Bp, Hp), jnp.float32)
    c2 = jnp.zeros((Bp, Hp), jnp.float32)

    def cell(gates, c_prev):
        # PyTorch gate order (i, f, g, o); each gate fills a 128-lane slot so
        # every slice is vreg-aligned. Elementwise math kept in f32 (v5e EUP/VPU).
        i_g = jax.nn.sigmoid(gates[:, 0 * Hp:1 * Hp])
        f_g = jax.nn.sigmoid(gates[:, 1 * Hp:2 * Hp])
        g_g = jnp.tanh(gates[:, 2 * Hp:3 * Hp])
        o_g = jax.nn.sigmoid(gates[:, 3 * Hp:4 * Hp])
        c_new = f_g * c_prev + i_g * g_g
        h_new = o_g * jnp.tanh(c_new)
        return h_new, c_new

    # (2) Fully unrolled time loop (T small & static). Recurrent matmuls are
    #     skipped at t == 0 (h = 0). Weight refs are read inside the dots so
    #     Mosaic streams them from VMEM instead of pinning 32+ vregs per matrix.
    for t in range(T):
        # ---- layer 1 ----
        gates1 = xw1_ref[t * Bp:(t + 1) * Bp, :]
        if t > 0:
            gates1 = gates1 + jnp.dot(h1.astype(jnp.bfloat16), whh1_ref[...],
                                      preferred_element_type=jnp.float32)
        h1, c1 = cell(gates1, c1)

        # ---- layer 2 (un-fused): h2 @ W_hh2 only depends on h2[t-1], so it can
        #      be issued while layer-1's step-t work is still in flight.
        if t == 1:
            whh2_copy.wait()          # first real use of W_hh2
        gates2 = jnp.dot(h1.astype(jnp.bfloat16), wih2_ref[...],
                         preferred_element_type=jnp.float32) + b2
        if t > 0:
            gates2 = gates2 + jnp.dot(h2.astype(jnp.bfloat16), whh2_ref[...],
                                      preferred_element_type=jnp.float32)
        h2, c2 = cell(gates2, c2)

    # (3) Fused FC on the last timestep's layer-2 hidden state.
    #     (Bp, Cp) = (8, 128): lane-dense, unmasked store.
    out_ref[...] = (jnp.dot(h2.astype(jnp.bfloat16), wfc_ref[...],
                            preferred_element_type=jnp.float32)
                    + bfc_ref[...])


# ----------------------------- padding helpers --------------------------------
def _pad_gate_cols(w, H, Hp):
    """(R, 4H) -> (R, 4Hp): pad each of the 4 gate column-blocks from H to Hp."""
    R = w.shape[0]
    w4 = w.reshape(R, 4, H)
    w4 = jnp.pad(w4, ((0, 0), (0, 0), (0, Hp - H)))
    return w4.reshape(R, 4 * Hp)


def _pad_rows(w, R, Rp):
    """(R, X) -> (Rp, X): zero rows for the padded lanes."""
    return jnp.pad(w, ((0, Rp - R), (0, 0)))


# ------------------------------ prepacking ------------------------------------
def prepack_params(params):
    """Pad / stack / cast weights ONCE (outside the per-call forward)."""
    layers = params["lstm"]
    assert len(layers) == 2, "fused kernel implements the 2-layer configuration"
    D = layers[0]["w_ih"].shape[0]
    H = layers[0]["w_hh"].shape[0]
    C = params["fc_w"].shape[1]
    Dp = _round_up(max(D, _SUBLANE), _SUBLANE)   # 4  -> 8
    Hp = _round_up(H, _LANE)                     # 64 -> 128
    Cp = _round_up(C, _LANE)                     # 3  -> 128

    l1, l2 = layers
    wih1 = _pad_rows(_pad_gate_cols(l1["w_ih"], H, Hp), D, Dp)      # (Dp, 4Hp)
    whh1 = _pad_gate_cols(_pad_rows(l1["w_hh"], H, Hp), H, Hp)      # (Hp, 4Hp)
    b1 = _pad_gate_cols(l1["b"].reshape(1, -1), H, Hp)              # (1, 4Hp)

    wih2 = _pad_gate_cols(_pad_rows(l2["w_ih"], H, Hp), H, Hp)      # (Hp, 4Hp)
    whh2 = _pad_gate_cols(_pad_rows(l2["w_hh"], H, Hp), H, Hp)      # (Hp, 4Hp)
    b2 = _pad_gate_cols(l2["b"].reshape(1, -1), H, Hp)              # (1, 4Hp)

    wfc = jnp.pad(params["fc_w"], ((0, Hp - H), (0, Cp - C)))       # (Hp, Cp)
    bfc = jnp.pad(params["fc_b"], (0, Cp - C)).reshape(1, Cp)       # (1, Cp)

    bf16 = jnp.bfloat16
    return {
        "wih1": wih1.astype(bf16), "whh1": whh1.astype(bf16),
        "b1": b1.astype(jnp.float32),
        "wih2": wih2.astype(bf16), "whh2": whh2.astype(bf16),
        "b2": b2.astype(jnp.float32),
        "wfc": wfc.astype(bf16), "bfc": bfc.astype(jnp.float32),
    }


# ------------------------------- Full forward ---------------------------------
@functools.partial(jax.jit, static_argnames=("num_classes",))
def lstm_model_forward(x_btd, packed, num_classes=3):
    """Matches LSTMModel.forward: x (B, T, input_size) -> logits (B, num_classes)."""
    B, T, D = x_btd.shape
    Dp = packed["wih1"].shape[0]
    Hp = packed["whh1"].shape[0]
    Cp = packed["wfc"].shape[1]
    Bp = _round_up(B, _SUBLANE)
    assert Dp >= D, "x feature dim does not match packed weights"

    # time-major, batch padded to Bp, features padded to Dp, flattened
    x = jnp.transpose(x_btd.astype(jnp.float32), (1, 0, 2))
    x = jnp.pad(x, ((0, 0), (0, Bp - B), (0, Dp - D))).reshape(T * Bp, Dp)

    vmem_spec = pl.BlockSpec(memory_space=pltpu.MemorySpace.VMEM)
    in_specs = [vmem_spec, vmem_spec, vmem_spec, vmem_spec, vmem_spec,
                pl.BlockSpec(memory_space=pl.ANY),   # whh2: stays in HBM, manual DMA
                vmem_spec, vmem_spec, vmem_spec]

    out_p = pl.pallas_call(
        functools.partial(_fused_lstm_fc_kernel, T=T, Bp=Bp, Hp=Hp),
        out_shape=jax.ShapeDtypeStruct((Bp, Cp), jnp.float32),
        in_specs=in_specs,
        out_specs=pl.BlockSpec(memory_space=pltpu.MemorySpace.VMEM),
        scratch_shapes=[
            pltpu.VMEM((T * Bp, 4 * Hp), jnp.float32),   # xw1 (off-vreg)
            pltpu.VMEM((Hp, 4 * Hp), jnp.bfloat16),      # whh2 landing buffer
            pltpu.SemaphoreType.DMA,
        ],
    )(x, packed["wih1"], packed["whh1"], packed["b1"],
      packed["wih2"], packed["whh2"], packed["b2"],
      packed["wfc"], packed["bfc"])

    return out_p[:B, :num_classes]


# ---------------------------------- params ------------------------------------
def init_params(key, input_size=4, hidden_size=64, num_layers=2, num_classes=3):
    """Deterministic uniform(-1/sqrt(H), 1/sqrt(H)) init, PyTorch-style shapes
    (stored transposed for right-multiplication)."""
    bound = 1.0 / jnp.sqrt(jnp.float32(hidden_size))
    layers = []
    for l in range(num_layers):
        d_in = input_size if l == 0 else hidden_size
        key, k1, k2, k3, k4 = jax.random.split(key, 5)
        w_ih = jax.random.uniform(k1, (d_in, 4 * hidden_size), jnp.float32, -bound, bound)
        w_hh = jax.random.uniform(k2, (hidden_size, 4 * hidden_size), jnp.float32, -bound, bound)
        b_ih = jax.random.uniform(k3, (4 * hidden_size,), jnp.float32, -bound, bound)
        b_hh = jax.random.uniform(k4, (4 * hidden_size,), jnp.float32, -bound, bound)
        layers.append({"w_ih": w_ih, "w_hh": w_hh, "b": b_ih + b_hh})
    key, k5, k6 = jax.random.split(key, 3)
    fc_w = jax.random.uniform(k5, (hidden_size, num_classes), jnp.float32, -bound, bound)
    fc_b = jax.random.uniform(k6, (num_classes,), jnp.float32, -bound, bound)
    return {"lstm": layers, "fc_w": fc_w, "fc_b": fc_b}


# ------------------------------ Pure-JAX reference -----------------------------
def _reference_forward(x_btd, params):
    h_seq = jnp.transpose(x_btd, (1, 0, 2)).astype(jnp.float32)
    B = x_btd.shape[0]
    for layer in params["lstm"]:
        H = layer["w_hh"].shape[0]

        def step(carry, x_t, layer=layer, H=H):
            h, c = carry
            g = x_t @ layer["w_ih"] + h @ layer["w_hh"] + layer["b"]
            i = jax.nn.sigmoid(g[:, 0 * H:1 * H])
            f = jax.nn.sigmoid(g[:, 1 * H:2 * H])
            gg = jnp.tanh(g[:, 2 * H:3 * H])
            o = jax.nn.sigmoid(g[:, 3 * H:4 * H])
            c = f * c + i * gg
            h = o * jnp.tanh(c)
            return (h, c), h

        init = (jnp.zeros((B, H), jnp.float32), jnp.zeros((B, H), jnp.float32))
        _, h_seq = jax.lax.scan(step, init, h_seq)
    return h_seq[-1] @ params["fc_w"] + params["fc_b"]


if __name__ == "__main__":
    key = jax.random.PRNGKey(0)
    pkey, xkey = jax.random.split(key)

    B, T, D = 2, 8, 4           # batch, seq_len, input_size (iris features)
    params = init_params(pkey, input_size=D, hidden_size=64, num_layers=2, num_classes=3)
    packed = prepack_params(params)          # one-time weight packing (hoisted)
    x = jax.random.normal(xkey, (B, T, D), dtype=jnp.float32)

    out = lstm_model_forward(x, packed, num_classes=3)
    out = jax.block_until_ready(out)
    assert out.shape == (B, 3), out.shape

    # Exact f32 reference (module semantics) — loose tolerance: the kernel uses
    # bf16 matmul operands (f32 accumulate) per the perf review.
    ref_exact = _reference_forward(x, params)
    assert jnp.allclose(out, ref_exact, atol=5e-2, rtol=5e-2), (out, ref_exact)

    # bf16-rounded-weight reference — tight tolerance; isolates kernel-structure
    # correctness from the deliberate bf16 weight quantization.
    def _q(w):
        return w.astype(jnp.bfloat16).astype(jnp.float32)
    params_m = {
        "lstm": [{"w_ih": _q(l["w_ih"]), "w_hh": _q(l["w_hh"]), "b": l["b"]}
                 for l in params["lstm"]],
        "fc_w": _q(params["fc_w"]), "fc_b": params["fc_b"],
    }
    ref_matched = _reference_forward(x, params_m)
    assert jnp.allclose(out, ref_matched, atol=2e-2, rtol=2e-2), (out, ref_matched)

    print("KERNEL_OK")
</pallas_src>

<mosaic_0001>
module attributes {stable_mosaic.version = 11 : i64} {
  func.func @_fused_lstm_fc_kernel(%arg0: memref<64x8xf32, #tpu.memory_space<vmem>>, %arg1: memref<8x512xbf16, #tpu.memory_space<vmem>>, %arg2: memref<128x512xbf16, #tpu.memory_space<vmem>>, %arg3: memref<1x512xf32, #tpu.memory_space<vmem>>, %arg4: memref<128x512xbf16, #tpu.memory_space<vmem>>, %arg5: memref<128x512xbf16, #tpu.memory_space<any>>, %arg6: memref<1x512xf32, #tpu.memory_space<vmem>>, %arg7: memref<128x128xbf16, #tpu.memory_space<vmem>>, %arg8: memref<1x128xf32, #tpu.memory_space<vmem>>, %arg9: memref<8x128xf32, #tpu.memory_space<vmem>>, %arg10: memref<64x512xf32, #tpu.memory_space<vmem>>, %arg11: memref<128x512xbf16, #tpu.memory_space<vmem>>, %arg12: memref<!tpu.dma_semaphore, #tpu.memory_space<semaphore_mem>>) attributes {dimension_semantics = [], scalar_prefetch = 0 : i64, scratch_operands = 3 : i64, tpu.core_type = #tpu.core_type<tc>} {
    tpu.enqueue_dma source(%arg5 : memref<128x512xbf16, #tpu.memory_space<any>>) target(%arg11 : memref<128x512xbf16, #tpu.memory_space<vmem>>) target_semaphore(%arg12 : memref<!tpu.dma_semaphore, #tpu.memory_space<semaphore_mem>>)
    %c0 = arith.constant 0 : index
    %c0_0 = arith.constant 0 : index
    %0 = vector.load %arg0[%c0, %c0_0] : memref<64x8xf32, #tpu.memory_space<vmem>>, vector<64x8xf32>
    %1 = arith.truncf %0 : vector<64x8xf32> to vector<64x8xbf16>
    %c0_1 = arith.constant 0 : index
    %c0_2 = arith.constant 0 : index
    %2 = vector.load %arg1[%c0_1, %c0_2] : memref<8x512xbf16, #tpu.memory_space<vmem>>, vector<8x512xbf16>
    %cst = arith.constant dense<0.000000e+00> : vector<64x512xf32>
    %3 = tpu.matmul %1, %2, %cst {dimension_numbers = #tpu.dot_dimension_numbers<[1], [0], [0], [1], [0, 0, 1, 1], [], []>} : vector<64x8xbf16>, vector<8x512xbf16>, vector<64x512xf32> -> vector<64x512xf32>
    %c0_3 = arith.constant 0 : index
    %c0_4 = arith.constant 0 : index
    %4 = vector.load %arg3[%c0_3, %c0_4] : memref<1x512xf32, #tpu.memory_space<vmem>>, vector<1x512xf32>
    %5 = vector.broadcast %4 : vector<1x512xf32> to vector<64x512xf32>
    %6 = arith.addf %3, %5 : vector<64x512xf32>
    %c0_5 = arith.constant 0 : index
    %c0_6 = arith.constant 0 : index
    %7 = vector.load %arg10[%c0_5, %c0_6] : memref<64x512xf32, #tpu.memory_space<vmem>>, vector<64x512xf32>
    tpu.vector_store %arg10[%c0_5, %c0_6], %6 {strides = array<i32>} : memref<64x512xf32, #tpu.memory_space<vmem>>, vector<64x512xf32>,
    %c0_7 = arith.constant 0 : index
    %c0_8 = arith.constant 0 : index
    %8 = vector.load %arg6[%c0_7, %c0_8] : memref<1x512xf32, #tpu.memory_space<vmem>>, vector<1x512xf32>
    %9 = vector.shape_cast %8 : vector<1x512xf32> to vector<1x512xf32>
    %10 = vector.broadcast %9 : vector<1x512xf32> to vector<8x512xf32>
    %cst_9 = arith.constant 0.000000e+00 : f32
    %11 = vector.broadcast %cst_9 : f32 to vector<8x128xf32>
    %cst_10 = arith.constant 0.000000e+00 : f32
    %12 = vector.broadcast %cst_10 : f32 to vector<8x128xf32>
    %c0_11 = arith.constant 0 : index
    %c0_12 = arith.constant 0 : index
    %13 = vector.load %arg10[%c0_11, %c0_12] : memref<64x512xf32, #tpu.memory_space<vmem>>, vector<8x512xf32>
    %14 = vector.extract_strided_slice %13 {offsets = [0, 0], sizes = [8, 128], strides = [1, 1]} : vector<8x512xf32> to vector<8x128xf32>
    %15 = arith.negf %14 : vector<8x128xf32>
    %16 = math.exp %15 : vector<8x128xf32>
    %cst_13 = arith.constant 1.000000e+00 : f32
    %17 = vector.broadcast %cst_13 : f32 to vector<8x128xf32>
    %18 = arith.addf %17, %16 : vector<8x128xf32>
    %19 = arith.divf %17, %18 : vector<8x128xf32>
    %20 = vector.extract_strided_slice %13 {offsets = [0, 128], sizes = [8, 128], strides = [1, 1]} : vector<8x512xf32> to vector<8x128xf32>
    %21 = arith.negf %20 : vector<8x128xf32>
    %22 = math.exp %21 : vector<8x128xf32>
    %cst_14 = arith.constant 1.000000e+00 : f32
    %23 = vector.broadcast %cst_14 : f32 to vector<8x128xf32>
    %24 = arith.addf %23, %22 : vector<8x128xf32>
    %25 = arith.divf %23, %24 : vector<8x128xf32>
    %26 = vector.extract_strided_slice %13 {offsets = [0, 256], sizes = [8, 128], strides = [1, 1]} : vector<8x512xf32> to vector<8x128xf32>
    %27 = math.tanh %26 : vector<8x128xf32>
    %28 = vector.extract_strided_slice %13 {offsets = [0, 384], sizes = [8, 128], strides = [1, 1]} : vector<8x512xf32> to vector<8x128xf32>
    %29 = arith.negf %28 : vector<8x128xf32>
    %30 = math.exp %29 : vector<8x128xf32>
    %cst_15 = arith.constant 1.000000e+00 : f32
    %31 = vector.broadcast %cst_15 : f32 to vector<8x128xf32>
    %32 = arith.addf %31, %30 : vector<8x128xf32>
    %33 = arith.divf %31, %32 : vector<8x128xf32>
    %34 = arith.mulf %25, %11 : vector<8x128xf32>
    %35 = arith.mulf %19, %27 : vector<8x128xf32>
    %36 = arith.addf %34, %35 : vector<8x128xf32>
    %37 = math.tanh %36 : vector<8x128xf32>
    %38 = arith.mulf %33, %37 : vector<8x128xf32>
    %39 = arith.truncf %38 : vector<8x128xf32> to vector<8x128xbf16>
    %c0_16 = arith.constant 0 : index
    %c0_17 = arith.constant 0 : index
    %40 = vector.load %arg4[%c0_16, %c0_17] : memref<128x512xbf16, #tpu.memory_space<vmem>>, vector<128x512xbf16>
    %cst_18 = arith.constant dense<0.000000e+00> : vector<8x512xf32>
    %41 = tpu.matmul %39, %40, %cst_18 {dimension_numbers = #tpu.dot_dimension_numbers<[1], [0], [0], [1], [0, 0, 1, 1], [], []>} : vector<8x128xbf16>, vector<128x512xbf16>, vector<8x512xf32> -> vector<8x512xf32>
    %42 = arith.addf %41, %10 : vector<8x512xf32>
    %43 = vector.extract_strided_slice %42 {offsets = [0, 0], sizes = [8, 128], strides = [1, 1]} : vector<8x512xf32> to vector<8x128xf32>
    %44 = arith.negf %43 : vector<8x128xf32>
    %45 = math.exp %44 : vector<8x128xf32>
    %cst_19 = arith.constant 1.000000e+00 : f32
    %46 = vector.broadcast %cst_19 : f32 to vector<8x128xf32>
    %47 = arith.addf %46, %45 : vector<8x128xf32>
    %48 = arith.divf %46, %47 : vector<8x128xf32>
    %49 = vector.extract_strided_slice %42 {offsets = [0, 128], sizes = [8, 128], strides = [1, 1]} : vector<8x512xf32> to vector<8x128xf32>
    %50 = arith.negf %49 : vector<8x128xf32>
    %51 = math.exp %50 : vector<8x128xf32>
    %cst_20 = arith.constant 1.000000e+00 : f32
    %52 = vector.broadcast %cst_20 : f32 to vector<8x128xf32>
    %53 = arith.addf %52, %51 : vector<8x128xf32>
    %54 = arith.divf %52, %53 : vector<8x128xf32>
    %55 = vector.extract_strided_slice %42 {offsets = [0, 256], sizes = [8, 128], strides = [1, 1]} : vector<8x512xf32> to vector<8x128xf32>
    %56 = math.tanh %55 : vector<8x128xf32>
    %57 = vector.extract_strided_slice %42 {offsets = [0, 384], sizes = [8, 128], strides = [1, 1]} : vector<8x512xf32> to vector<8x128xf32>
    %58 = arith.negf %57 : vector<8x128xf32>
    %59 = math.exp %58 : vector<8x128xf32>
    %cst_21 = arith.constant 1.000000e+00 : f32
    %60 = vector.broadcast %cst_21 : f32 to vector<8x128xf32>
    %61 = arith.addf %60, %59 : vector<8x128xf32>
    %62 = arith.divf %60, %61 : vector<8x128xf32>
    %63 = arith.mulf %54, %12 : vector<8x128xf32>
    %64 = arith.mulf %48, %56 : vector<8x128xf32>
    %65 = arith.addf %63, %64 : vector<8x128xf32>
    %66 = math.tanh %65 : vector<8x128xf32>
    %67 = arith.mulf %62, %66 : vector<8x128xf32>
    %c8 = arith.constant 8 : index
    %c0_22 = arith.constant 0 : index
    %68 = vector.load %arg10[%c8, %c0_22] : memref<64x512xf32, #tpu.memory_space<vmem>>, vector<8x512xf32>
    %69 = arith.truncf %38 : vector<8x128xf32> to vector<8x128xbf16>
    %c0_23 = arith.constant 0 : index
    %c0_24 = arith.constant 0 : index
    %70 = vector.load %arg2[%c0_23, %c0_24] : memref<128x512xbf16, #tpu.memory_space<vmem>>, vector<128x512xbf16>
    %cst_25 = arith.constant dense<0.000000e+00> : vector<8x512xf32>
    %71 = tpu.matmul %69, %70, %cst_25 {dimension_numbers = #tpu.dot_dimension_numbers<[1], [0], [0], [1], [0, 0, 1, 1], [], []>} : vector<8x128xbf16>, vector<128x512xbf16>, vector<8x512xf32> -> vector<8x512xf32>
    %72 = arith.addf %68, %71 : vector<8x512xf32>
    %73 = vector.extract_strided_slice %72 {offsets = [0, 0], sizes = [8, 128], strides = [1, 1]} : vector<8x512xf32> to vector<8x128xf32>
    %74 = arith.negf %73 : vector<8x128xf32>
    %75 = math.exp %74 : vector<8x128xf32>
    %cst_26 = arith.constant 1.000000e+00 : f32
    %76 = vector.broadcast %cst_26 : f32 to vector<8x128xf32>
    %77 = arith.addf %76, %75 : vector<8x128xf32>
    %78 = arith.divf %76, %77 : vector<8x128xf32>
    %79 = vector.extract_strided_slice %72 {offsets = [0, 128], sizes = [8, 128], strides = [1, 1]} : vector<8x512xf32> to vector<8x128xf32>
    %80 = arith.negf %79 : vector<8x128xf32>
    %81 = math.exp %80 : vector<8x128xf32>
    %cst_27 = arith.constant 1.000000e+00 : f32
    %82 = vector.broadcast %cst_27 : f32 to vector<8x128xf32>
    %83 = arith.addf %82, %81 : vector<8x128xf32>
    %84 = arith.divf %82, %83 : vector<8x128xf32>
    %85 = vector.extract_strided_slice %72 {offsets = [0, 256], sizes = [8, 128], strides = [1, 1]} : vector<8x512xf32> to vector<8x128xf32>
    %86 = math.tanh %85 : vector<8x128xf32>
    %87 = vector.extract_strided_slice %72 {offsets = [0, 384], sizes = [8, 128], strides = [1, 1]} : vector<8x512xf32> to vector<8x128xf32>
    %88 = arith.negf %87 : vector<8x128xf32>
    %89 = math.exp %88 : vector<8x128xf32>
    %cst_28 = arith.constant 1.000000e+00 : f32
    %90 = vector.broadcast %cst_28 : f32 to vector<8x128xf32>
    %91 = arith.addf %90, %89 : vector<8x128xf32>
    %92 = arith.divf %90, %91 : vector<8x128xf32>
    %93 = arith.mulf %84, %36 : vector<8x128xf32>
    %94 = arith.mulf %78, %86 : vector<8x128xf32>
    %95 = arith.addf %93, %94 : vector<8x128xf32>
    %96 = math.tanh %95 : vector<8x128xf32>
    %97 = arith.mulf %92, %96 : vector<8x128xf32>
    tpu.wait_dma2 semaphore(%arg12 : memref<!tpu.dma_semaphore, #tpu.memory_space<semaphore_mem>>) src(%arg5 : memref<128x512xbf16, #tpu.memory_space<any>>) dst(%arg11 : memref<128x512xbf16, #tpu.memory_space<vmem>>)
    %98 = arith.truncf %97 : vector<8x128xf32> to vector<8x128xbf16>
    %c0_29 = arith.constant 0 : index
    %c0_30 = arith.constant 0 : index
    %99 = vector.load %arg4[%c0_29, %c0_30] : memref<128x512xbf16, #tpu.memory_space<vmem>>, vector<128x512xbf16>
    %cst_31 = arith.constant dense<0.000000e+00> : vector<8x512xf32>
    %100 = tpu.matmul %98, %99, %cst_31 {dimension_numbers = #tpu.dot_dimension_numbers<[1], [0], [0], [1], [0, 0, 1, 1], [], []>} : vector<8x128xbf16>, vector<128x512xbf16>, vector<8x512xf32> -> vector<8x512xf32>
    %101 = arith.addf %100, %10 : vector<8x512xf32>
    %102 = arith.truncf %67 : vector<8x128xf32> to vector<8x128xbf16>
    %c0_32 = arith.constant 0 : index
    %c0_33 = arith.constant 0 : index
    %103 = vector.load %arg11[%c0_32, %c0_33] : memref<128x512xbf16, #tpu.memory_space<vmem>>, vector<128x512xbf16>
    %cst_34 = arith.constant dense<0.000000e+00> : vector<8x512xf32>
    %104 = tpu.matmul %102, %103, %cst_34 {dimension_numbers = #tpu.dot_dimension_numbers<[1], [0], [0], [1], [0, 0, 1, 1], [], []>} : vector<8x128xbf16>, vector<128x512xbf16>, vector<8x512xf32> -> vector<8x512xf32>
    %105 = arith.addf %101, %104 : vector<8x512xf32>
    %106 = vector.extract_strided_slice %105 {offsets = [0, 0], sizes = [8, 128], strides = [1, 1]} : vector<8x512xf32> to vector<8x128xf32>
    %107 = arith.negf %106 : vector<8x128xf32>
    %108 = math.exp %107 : vector<8x128xf32>
    %cst_35 = arith.constant 1.000000e+00 : f32
    %109 = vector.broadcast %cst_35 : f32 to vector<8x128xf32>
    %110 = arith.addf %109, %108 : vector<8x128xf32>
    %111 = arith.divf %109, %110 : vector<8x128xf32>
    %112 = vector.extract_strided_slice %105 {offsets = [0, 128], sizes = [8, 128], strides = [1, 1]} : vector<8x512xf32> to vector<8x128xf32>
    %113 = arith.negf %112 : vector<8x128xf32>
    %114 = math.exp %113 : vector<8x128xf32>
    %cst_36 = arith.constant 1.000000e+00 : f32
    %115 = vector.broadcast %cst_36 : f32 to vector<8x128xf32>
    %116 = arith.addf %115, %114 : vector<8x128xf32>
    %117 = arith.divf %115, %116 : vector<8x128xf32>
    %118 = vector.extract_strided_slice %105 {offsets = [0, 256], sizes = [8, 128], strides = [1, 1]} : vector<8x512xf32> to vector<8x128xf32>
    %119 = math.tanh %118 : vector<8x128xf32>
    %120 = vector.extract_strided_slice %105 {offsets = [0, 384], sizes = [8, 128], strides = [1, 1]} : vector<8x512xf32> to vector<8x128xf32>
    %121 = arith.negf %120 : vector<8x128xf32>
    %122 = math.exp %121 : vector<8x128xf32>
    %cst_37 = arith.constant 1.000000e+00 : f32
    %123 = vector.broadcast %cst_37 : f32 to vector<8x128xf32>
    %124 = arith.addf %123, %122 : vector<8x128xf32>
    %125 = arith.divf %123, %124 : vector<8x128xf32>
    %126 = arith.mulf %117, %65 : vector<8x128xf32>
    %127 = arith.mulf %111, %119 : vector<8x128xf32>
    %128 = arith.addf %126, %127 : vector<8x128xf32>
    %129 = math.tanh %128 : vector<8x128xf32>
    %130 = arith.mulf %125, %129 : vector<8x128xf32>
    %c16 = arith.constant 16 : index
    %c0_38 = arith.constant 0 : index
    %131 = vector.load %arg10[%c16, %c0_38] : memref<64x512xf32, #tpu.memory_space<vmem>>, vector<8x512xf32>
    %132 = arith.truncf %97 : vector<8x128xf32> to vector<8x128xbf16>
    %c0_39 = arith.constant 0 : index
    %c0_40 = arith.constant 0 : index
    %133 = vector.load %arg2[%c0_39, %c0_40] : memref<128x512xbf16, #tpu.memory_space<vmem>>, vector<128x512xbf16>
    %cst_41 = arith.constant dense<0.000000e+00> : vector<8x512xf32>
    %134 = tpu.matmul %132, %133, %cst_41 {dimension_numbers = #tpu.dot_dimension_numbers<[1], [0], [0], [1], [0, 0, 1, 1], [], []>} : vector<8x128xbf16>, vector<128x512xbf16>, vector<8x512xf32> -> vector<8x512xf32>
    %135 = arith.addf %131, %134 : vector<8x512xf32>
    %136 = vector.extract_strided_slice %135 {offsets = [0, 0], sizes = [8, 128], strides = [1, 1]} : vector<8x512xf32> to vector<8x128xf32>
    %137 = arith.negf %136 : vector<8x128xf32>
    %138 = math.exp %137 : vector<8x128xf32>
    %cst_42 = arith.constant 1.000000e+00 : f32
    %139 = vector.broadcast %cst_42 : f32 to vector<8x128xf32>
    %140 = arith.addf %139, %138 : vector<8x128xf32>
    %141 = arith.divf %139, %140 : vector<8x128xf32>
    %142 = vector.extract_strided_slice %135 {offsets = [0, 128], sizes = [8, 128], strides = [1, 1]} : vector<8x512xf32> to vector<8x128xf32>
    %143 = arith.negf %142 : vector<8x128xf32>
    %144 = math.exp %143 : vector<8x128xf32>
    %cst_43 = arith.constant 1.000000e+00 : f32
    %145 = vector.broadcast %cst_43 : f32 to vector<8x128xf32>
    %146 = arith.addf %145, %144 : vector<8x128xf32>
    %147 = arith.divf %145, %146 : vector<8x128xf32>
    %148 = vector.extract_strided_slice %135 {offsets = [0, 256], sizes = [8, 128], strides = [1, 1]} : vector<8x512xf32> to vector<8x128xf32>
    %149 = math.tanh %148 : vector<8x128xf32>
    %150 = vector.extract_strided_slice %135 {offsets = [0, 384], sizes = [8, 128], strides = [1, 1]} : vector<8x512xf32> to vector<8x128xf32>
    %151 = arith.negf %150 : vector<8x128xf32>
    %152 = math.exp %151 : vector<8x128xf32>
    %cst_44 = arith.constant 1.000000e+00 : f32
    %153 = vector.broadcast %cst_44 : f32 to vector<8x128xf32>
    %154 = arith.addf %153, %152 : vector<8x128xf32>
    %155 = arith.divf %153, %154 : vector<8x128xf32>
    %156 = arith.mulf %147, %95 : vector<8x128xf32>
    %157 = arith.mulf %141, %149 : vector<8x128xf32>
    %158 = arith.addf %156, %157 : vector<8x128xf32>
    %159 = math.tanh %158 : vector<8x128xf32>
    %160 = arith.mulf %155, %159 : vector<8x128xf32>
    %161 = arith.truncf %160 : vector<8x128xf32> to vector<8x128xbf16>
    %c0_45 = arith.constant 0 : index
    %c0_46 = arith.constant 0 : index
    %162 = vector.load %arg4[%c0_45, %c0_46] : memref<128x512xbf16, #tpu.memory_space<vmem>>, vector<128x512xbf16>
    %cst_47 = arith.constant dense<0.000000e+00> : vector<8x512xf32>
    %163 = tpu.matmul %161, %162, %cst_47 {dimension_numbers = #tpu.dot_dimension_numbers<[1], [0], [0], [1], [0, 0, 1, 1], [], []>} : vector<8x128xbf16>, vector<128x512xbf16>, vector<8x512xf32> -> vector<8x512xf32>
    %164 = arith.addf %163, %10 : vector<8x512xf32>
    %165 = arith.truncf %130 : vector<8x128xf32> to vector<8x128xbf16>
    %c0_48 = arith.constant 0 : index
    %c0_49 = arith.constant 0 : index
    %166 = vector.load %arg11[%c0_48, %c0_49] : memref<128x512xbf16, #tpu.memory_space<vmem>>, vector<128x512xbf16>
    %cst_50 = arith.constant dense<0.000000e+00> : vector<8x512xf32>
    %167 = tpu.matmul %165, %166, %cst_50 {dimension_numbers = #tpu.dot_dimension_numbers<[1], [0], [0], [1], [0, 0, 1, 1], [], []>} : vector<8x128xbf16>, vector<128x512xbf16>, vector<8x512xf32> -> vector<8x512xf32>
    %168 = arith.addf %164, %167 : vector<8x512xf32>
    %169 = vector.extract_strided_slice %168 {offsets = [0, 0], sizes = [8, 128], strides = [1, 1]} : vector<8x512xf32> to vector<8x128xf32>
    %170 = arith.negf %169 : vector<8x128xf32>
    %171 = math.exp %170 : vector<8x128xf32>
    %cst_51 = arith.constant 1.000000e+00 : f32
    %172 = vector.broadcast %cst_51 : f32 to vector<8x128xf32>
    %173 = arith.addf %172, %171 : vector<8x128xf32>
    %174 = arith.divf %172, %173 : vector<8x128xf32>
    %175 = vector.extract_strided_slice %168 {offsets = [0, 128], sizes = [8, 128], strides = [1, 1]} : vector<8x512xf32> to vector<8x128xf32>
    %176 = arith.negf %175 : vector<8x128xf32>
    %177 = math.exp %176 : vector<8x128xf32>
    %cst_52 = arith.constant 1.000000e+00 : f32
    %178 = vector.broadcast %cst_52 : f32 to vector<8x128xf32>
    %179 = arith.addf %178, %177 : vector<8x128xf32>
    %180 = arith.divf %178, %179 : vector<8x128xf32>
    %181 = vector.extract_strided_slice %168 {offsets = [0, 256], sizes = [8, 128], strides = [1, 1]} : vector<8x512xf32> to vector<8x128xf32>
    %182 = math.tanh %181 : vector<8x128xf32>
    %183 = vector.extract_strided_slice %168 {offsets = [0, 384], sizes = [8, 128], strides = [1, 1]} : vector<8x512xf32> to vector<8x128xf32>
    %184 = arith.negf %183 : vector<8x128xf32>
    %185 = math.exp %184 : vector<8x128xf32>
    %cst_53 = arith.constant 1.000000e+00 : f32
    %186 = vector.broadcast %cst_53 : f32 to vector<8x128xf32>
    %187 = arith.addf %186, %185 : vector<8x128xf32>
    %188 = arith.divf %186, %187 : vector<8x128xf32>
    %189 = arith.mulf %180, %128 : vector<8x128xf32>
    %190 = arith.mulf %174, %182 : vector<8x128xf32>
    %191 = arith.addf %189, %190 : vector<8x128xf32>
    %192 = math.tanh %191 : vector<8x128xf32>
    %193 = arith.mulf %188, %192 : vector<8x128xf32>
    %c24 = arith.constant 24 : index
    %c0_54 = arith.constant 0 : index
    %194 = vector.load %arg10[%c24, %c0_54] : memref<64x512xf32, #tpu.memory_space<vmem>>, vector<8x512xf32>
    %195 = arith.truncf %160 : vector<8x128xf32> to vector<8x128xbf16>
    %c0_55 = arith.constant 0 : index
    %c0_56 = arith.constant 0 : index
    %196 = vector.load %arg2[%c0_55, %c0_56] : memref<128x512xbf16, #tpu.memory_space<vmem>>, vector<128x512xbf16>
    %cst_57 = arith.constant dense<0.000000e+00> : vector<8x512xf32>
    %197 = tpu.matmul %195, %196, %cst_57 {dimension_numbers = #tpu.dot_dimension_numbers<[1], [0], [0], [1], [0, 0, 1, 1], [], []>} : vector<8x128xbf16>, vector<128x512xbf16>, vector<8x512xf32> -> vector<8x512xf32>
    %198 = arith.addf %194, %197 : vector<8x512xf32>
    %199 = vector.extract_strided_slice %198 {offsets = [0, 0], sizes = [8, 128], strides = [1, 1]} : vector<8x512xf32> to vector<8x128xf32>
    %200 = arith.negf %199 : vector<8x128xf32>
    %201 = math.exp %200 : vector<8x128xf32>
    %cst_58 = arith.constant 1.000000e+00 : f32
    %202 = vector.broadcast %cst_58 : f32 to vector<8x128xf32>
    %203 = arith.addf %202, %201 : vector<8x128xf32>
    %204 = arith.divf %202, %203 : vector<8x128xf32>
    %205 = vector.extract_strided_slice %198 {offsets = [0, 128], sizes = [8, 128], strides = [1, 1]} : vector<8x512xf32> to vector<8x128xf32>
    %206 = arith.negf %205 : vector<8x128xf32>
    %207 = math.exp %206 : vector<8x128xf32>
    %cst_59 = arith.constant 1.000000e+00 : f32
    %208 = vector.broadcast %cst_59 : f32 to vector<8x128xf32>
    %209 = arith.addf %208, %207 : vector<8x128xf32>
    %210 = arith.divf %208, %209 : vector<8x128xf32>
    %211 = vector.extract_strided_slice %198 {offsets = [0, 256], sizes = [8, 128], strides = [1, 1]} : vector<8x512xf32> to vector<8x128xf32>
    %212 = math.tanh %211 : vector<8x128xf32>
    %213 = vector.extract_strided_slice %198 {offsets = [0, 384], sizes = [8, 128], strides = [1, 1]} : vector<8x512xf32> to vector<8x128xf32>
    %214 = arith.negf %213 : vector<8x128xf32>
    %215 = math.exp %214 : vector<8x128xf32>
    %cst_60 = arith.constant 1.000000e+00 : f32
    %216 = vector.broadcast %cst_60 : f32 to vector<8x128xf32>
    %217 = arith.addf %216, %215 : vector<8x128xf32>
    %218 = arith.divf %216, %217 : vector<8x128xf32>
    %219 = arith.mulf %210, %158 : vector<8x128xf32>
    %220 = arith.mulf %204, %212 : vector<8x128xf32>
    %221 = arith.addf %219, %220 : vector<8x128xf32>
    %222 = math.tanh %221 : vector<8x128xf32>
    %223 = arith.mulf %218, %222 : vector<8x128xf32>
    %224 = arith.truncf %223 : vector<8x128xf32> to vector<8x128xbf16>
    %c0_61 = arith.constant 0 : index
    %c0_62 = arith.constant 0 : index
    %225 = vector.load %arg4[%c0_61, %c0_62] : memref<128x512xbf16, #tpu.memory_space<vmem>>, vector<128x512xbf16>
    %cst_63 = arith.constant dense<0.000000e+00> : vector<8x512xf32>
    %226 = tpu.matmul %224, %225, %cst_63 {dimension_numbers = #tpu.dot_dimension_numbers<[1], [0], [0], [1], [0, 0, 1, 1], [], []>} : vector<8x128xbf16>, vector<128x512xbf16>, vector<8x512xf32> -> vector<8x512xf32>
    %227 = arith.addf %226, %10 : vector<8x512xf32>
    %228 = arith.truncf %193 : vector<8x128xf32> to vector<8x128xbf16>
    %c0_64 = arith.constant 0 : index
    %c0_65 = arith.constant 0 : index
    %229 = vector.load %arg11[%c0_64, %c0_65] : memref<128x512xbf16, #tpu.memory_space<vmem>>, vector<128x512xbf16>
    %cst_66 = arith.constant dense<0.000000e+00> : vector<8x512xf32>
    %230 = tpu.matmul %228, %229, %cst_66 {dimension_numbers = #tpu.dot_dimension_numbers<[1], [0], [0], [1], [0, 0, 1, 1], [], []>} : vector<8x128xbf16>, vector<128x512xbf16>, vector<8x512xf32> -> vector<8x512xf32>
    %231 = arith.addf %227, %230 : vector<8x512xf32>
    %232 = vector.extract_strided_slice %231 {offsets = [0, 0], sizes = [8, 128], strides = [1, 1]} : vector<8x512xf32> to vector<8x128xf32>
    %233 = arith.negf %232 : vector<8x128xf32>
    %234 = math.exp %233 : vector<8x128xf32>
    %cst_67 = arith.constant 1.000000e+00 : f32
    %235 = vector.broadcast %cst_67 : f32 to vector<8x128xf32>
    %236 = arith.addf %235, %234 : vector<8x128xf32>
    %237 = arith.divf %235, %236 : vector<8x128xf32>
    %238 = vector.extract_strided_slice %231 {offsets = [0, 128], sizes = [8, 128], strides = [1, 1]} : vector<8x512xf32> to vector<8x128xf32>
    %239 = arith.negf %238 : vector<8x128xf32>
    %240 = math.exp %239 : vector<8x128xf32>
    %cst_68 = arith.constant 1.000000e+00 : f32
    %241 = vector.broadcast %cst_68 : f32 to vector<8x128xf32>
    %242 = arith.addf %241, %240 : vector<8x128xf32>
    %243 = arith.divf %241, %242 : vector<8x128xf32>
    %244 = vector.extract_strided_slice %231 {offsets = [0, 256], sizes = [8, 128], strides = [1, 1]} : vector<8x512xf32> to vector<8x128xf32>
    %245 = math.tanh %244 : vector<8x128xf32>
    %246 = vector.extract_strided_slice %231 {offsets = [0, 384], sizes = [8, 128], strides = [1, 1]} : vector<8x512xf32> to vector<8x128xf32>
    %247 = arith.negf %246 : vector<8x128xf32>
    %248 = math.exp %247 : vector<8x128xf32>
    %cst_69 = arith.constant 1.000000e+00 : f32
    %249 = vector.broadcast %cst_69 : f32 to vector<8x128xf32>
    %250 = arith.addf %249, %248 : vector<8x128xf32>
    %251 = arith.divf %249, %250 : vector<8x128xf32>
    %252 = arith.mulf %243, %191 : vector<8x128xf32>
    %253 = arith.mulf %237, %245 : vector<8x128xf32>
    %254 = arith.addf %252, %253 : vector<8x128xf32>
    %255 = math.tanh %254 : vector<8x128xf32>
    %256 = arith.mulf %251, %255 : vector<8x128xf32>
    %c32 = arith.constant 32 : index
    %c0_70 = arith.constant 0 : index
    %257 = vector.load %arg10[%c32, %c0_70] : memref<64x512xf32, #tpu.memory_space<vmem>>, vector<8x512xf32>
    %258 = arith.truncf %223 : vector<8x128xf32> to vector<8x128xbf16>
    %c0_71 = arith.constant 0 : index
    %c0_72 = arith.constant 0 : index
    %259 = vector.load %arg2[%c0_71, %c0_72] : memref<128x512xbf16, #tpu.memory_space<vmem>>, vector<128x512xbf16>
    %cst_73 = arith.constant dense<0.000000e+00> : vector<8x512xf32>
    %260 = tpu.matmul %258, %259, %cst_73 {dimension_numbers = #tpu.dot_dimension_numbers<[1], [0], [0], [1], [0, 0, 1, 1], [], []>} : vector<8x128xbf16>, vector<128x512xbf16>, vector<8x512xf32> -> vector<8x512xf32>
    %261 = arith.addf %257, %260 : vector<8x512xf32>
    %262 = vector.extract_strided_slice %261 {offsets = [0, 0], sizes = [8, 128], strides = [1, 1]} : vector<8x512xf32> to vector<8x128xf32>
    %263 = arith.negf %262 : vector<8x128xf32>
    %264 = math.exp %263 : vector<8x128xf32>
    %cst_74 = arith.constant 1.000000e+00 : f32
    %265 = vector.broadcast %cst_74 : f32 to vector<8x128xf32>
    %266 = arith.addf %265, %264 : vector<8x128xf32>
    %267 = arith.divf %265, %266 : vector<8x128xf32>
    %268 = vector.extract_strided_slice %261 {offsets = [0, 128], sizes = [8, 128], strides = [1, 1]} : vector<8x512xf32> to vector<8x128xf32>
    %269 = arith.negf %268 : vector<8x128xf32>
    %270 = math.exp %269 : vector<8x128xf32>
    %cst_75 = arith.constant 1.000000e+00 : f32
    %271 = vector.broadcast %cst_75 : f32 to vector<8x128xf32>
    %272 = arith.addf %271, %270 : vector<8x128xf32>
    %273 = arith.divf %271, %272 : vector<8x128xf32>
    %274 = vector.extract_strided_slice %261 {offsets = [0, 256], sizes = [8, 128], strides = [1, 1]} : vector<8x512xf32> to vector<8x128xf32>
    %275 = math.tanh %274 : vector<8x128xf32>
    %276 = vector.extract_strided_slice %261 {offsets = [0, 384], sizes = [8, 128], strides = [1, 1]} : vector<8x512xf32> to vector<8x128xf32>
    %277 = arith.negf %276 : vector<8x128xf32>
    %278 = math.exp %277 : vector<8x128xf32>
    %cst_76 = arith.constant 1.000000e+00 : f32
    %279 = vector.broadcast %cst_76 : f32 to vector<8x128xf32>
    %280 = arith.addf %279, %278 : vector<8x128xf32>
    %281 = arith.divf %279, %280 : vector<8x128xf32>
    %282 = arith.mulf %273, %221 : vector<8x128xf32>
    %283 = arith.mulf %267, %275 : vector<8x128xf32>
    %284 = arith.addf %282, %283 : vector<8x128xf32>
    %285 = math.tanh %284 : vector<8x128xf32>
    %286 = arith.mulf %281, %285 : vector<8x128xf32>
    %287 = arith.truncf %286 : vector<8x128xf32> to vector<8x128xbf16>
    %c0_77 = arith.constant 0 : index
    %c0_78 = arith.constant 0 : index
    %288 = vector.load %arg4[%c0_77, %c0_78] : memref<128x512xbf16, #tpu.memory_space<vmem>>, vector<128x512xbf16>
    %cst_79 = arith.constant dense<0.000000e+00> : vector<8x512xf32>
    %289 = tpu.matmul %287, %288, %cst_79 {dimension_numbers = #tpu.dot_dimension_numbers<[1], [0], [0], [1], [0, 0, 1, 1], [], []>} : vector<8x128xbf16>, vector<128x512xbf16>, vector<8x512xf32> -> vector<8x512xf32>
    %290 = arith.addf %289, %10 : vector<8x512xf32>
    %291 = arith.truncf %256 : vector<8x128xf32> to vector<8x128xbf16>
    %c0_80 = arith.constant 0 : index
    %c0_81 = arith.constant 0 : index
    %292 = vector.load %arg11[%c0_80, %c0_81] : memref<128x512xbf16, #tpu.memory_space<vmem>>, vector<128x512xbf16>
    %cst_82 = arith.constant dense<0.000000e+00> : vector<8x512xf32>
    %293 = tpu.matmul %291, %292, %cst_82 {dimension_numbers = #tpu.dot_dimension_numbers<[1], [0], [0], [1], [0, 0, 1, 1], [], []>} : vector<8x128xbf16>, vector<128x512xbf16>, vector<8x512xf32> -> vector<8x512xf32>
    %294 = arith.addf %290, %293 : vector<8x512xf32>
    %295 = vector.extract_strided_slice %294 {offsets = [0, 0], sizes = [8, 128], strides = [1, 1]} : vector<8x512xf32> to vector<8x128xf32>
    %296 = arith.negf %295 : vector<8x128xf32>
    %297 = math.exp %296 : vector<8x128xf32>
    %cst_83 = arith.constant 1.000000e+00 : f32
    %298 = vector.broadcast %cst_83 : f32 to vector<8x128xf32>
    %299 = arith.addf %298, %297 : vector<8x128xf32>
    %300 = arith.divf %298, %299 : vector<8x128xf32>
    %301 = vector.extract_strided_slice %294 {offsets = [0, 128], sizes = [8, 128], strides = [1, 1]} : vector<8x512xf32> to vector<8x128xf32>
    %302 = arith.negf %301 : vector<8x128xf32>
    %303 = math.exp %302 : vector<8x128xf32>
    %cst_84 = arith.constant 1.000000e+00 : f32
    %304 = vector.broadcast %cst_84 : f32 to vector<8x128xf32>
    %305 = arith.addf %304, %303 : vector<8x128xf32>
    %306 = arith.divf %304, %305 : vector<8x128xf32>
    %307 = vector.extract_strided_slice %294 {offsets = [0, 256], sizes = [8, 128], strides = [1, 1]} : vector<8x512xf32> to vector<8x128xf32>
    %308 = math.tanh %307 : vector<8x128xf32>
    %309 = vector.extract_strided_slice %294 {offsets = [0, 384], sizes = [8, 128], strides = [1, 1]} : vector<8x512xf32> to vector<8x128xf32>
    %310 = arith.negf %309 : vector<8x128xf32>
    %311 = math.exp %310 : vector<8x128xf32>
    %cst_85 = arith.constant 1.000000e+00 : f32
    %312 = vector.broadcast %cst_85 : f32 to vector<8x128xf32>
    %313 = arith.addf %312, %311 : vector<8x128xf32>
    %314 = arith.divf %312, %313 : vector<8x128xf32>
    %315 = arith.mulf %306, %254 : vector<8x128xf32>
    %316 = arith.mulf %300, %308 : vector<8x128xf32>
    %317 = arith.addf %315, %316 : vector<8x128xf32>
    %318 = math.tanh %317 : vector<8x128xf32>
    %319 = arith.mulf %314, %318 : vector<8x128xf32>
    %c40 = arith.constant 40 : index
    %c0_86 = arith.constant 0 : index
    %320 = vector.load %arg10[%c40, %c0_86] : memref<64x512xf32, #tpu.memory_space<vmem>>, vector<8x512xf32>
    %321 = arith.truncf %286 : vector<8x128xf32> to vector<8x128xbf16>
    %c0_87 = arith.constant 0 : index
    %c0_88 = arith.constant 0 : index
    %322 = vector.load %arg2[%c0_87, %c0_88] : memref<128x512xbf16, #tpu.memory_space<vmem>>, vector<128x512xbf16>
    %cst_89 = arith.constant dense<0.000000e+00> : vector<8x512xf32>
    %323 = tpu.matmul %321, %322, %cst_89 {dimension_numbers = #tpu.dot_dimension_numbers<[1], [0], [0], [1], [0, 0, 1, 1], [], []>} : vector<8x128xbf16>, vector<128x512xbf16>, vector<8x512xf32> -> vector<8x512xf32>
    %324 = arith.addf %320, %323 : vector<8x512xf32>
    %325 = vector.extract_strided_slice %324 {offsets = [0, 0], sizes = [8, 128], strides = [1, 1]} : vector<8x512xf32> to vector<8x128xf32>
    %326 = arith.negf %325 : vector<8x128xf32>
    %327 = math.exp %326 : vector<8x128xf32>
    %cst_90 = arith.constant 1.000000e+00 : f32
    %328 = vector.broadcast %cst_90 : f32 to vector<8x128xf32>
    %329 = arith.addf %328, %327 : vector<8x128xf32>
    %330 = arith.divf %328, %329 : vector<8x128xf32>
    %331 = vector.extract_strided_slice %324 {offsets = [0, 128], sizes = [8, 128], strides = [1, 1]} : vector<8x512xf32> to vector<8x128xf32>
    %332 = arith.negf %331 : vector<8x128xf32>
    %333 = math.exp %332 : vector<8x128xf32>
    %cst_91 = arith.constant 1.000000e+00 : f32
    %334 = vector.broadcast %cst_91 : f32 to vector<8x128xf32>
    %335 = arith.addf %334, %333 : vector<8x128xf32>
    %336 = arith.divf %334, %335 : vector<8x128xf32>
    %337 = vector.extract_strided_slice %324 {offsets = [0, 256], sizes = [8, 128], strides = [1, 1]} : vector<8x512xf32> to vector<8x128xf32>
    %338 = math.tanh %337 : vector<8x128xf32>
    %339 = vector.extract_strided_slice %324 {offsets = [0, 384], sizes = [8, 128], strides = [1, 1]} : vector<8x512xf32> to vector<8x128xf32>
    %340 = arith.negf %339 : vector<8x128xf32>
    %341 = math.exp %340 : vector<8x128xf32>
    %cst_92 = arith.constant 1.000000e+00 : f32
    %342 = vector.broadcast %cst_92 : f32 to vector<8x128xf32>
    %343 = arith.addf %342, %341 : vector<8x128xf32>
    %344 = arith.divf %342, %343 : vector<8x128xf32>
    %345 = arith.mulf %336, %284 : vector<8x128xf32>
    %346 = arith.mulf %330, %338 : vector<8x128xf32>
    %347 = arith.addf %345, %346 : vector<8x128xf32>
    %348 = math.tanh %347 : vector<8x128xf32>
    %349 = arith.mulf %344, %348 : vector<8x128xf32>
    %350 = arith.truncf %349 : vector<8x128xf32> to vector<8x128xbf16>
    %c0_93 = arith.constant 0 : index
    %c0_94 = arith.constant 0 : index
    %351 = vector.load %arg4[%c0_93, %c0_94] : memref<128x512xbf16, #tpu.memory_space<vmem>>, vector<128x512xbf16>
    %cst_95 = arith.constant dense<0.000000e+00> : vector<8x512xf32>
    %352 = tpu.matmul %350, %351, %cst_95 {dimension_numbers = #tpu.dot_dimension_numbers<[1], [0], [0], [1], [0, 0, 1, 1], [], []>} : vector<8x128xbf16>, vector<128x512xbf16>, vector<8x512xf32> -> vector<8x512xf32>
    %353 = arith.addf %352, %10 : vector<8x512xf32>
    %354 = arith.truncf %319 : vector<8x128xf32> to vector<8x128xbf16>
    %c0_96 = arith.constant 0 : index
    %c0_97 = arith.constant 0 : index
    %355 = vector.load %arg11[%c0_96, %c0_97] : memref<128x512xbf16, #tpu.memory_space<vmem>>, vector<128x512xbf16>
    %cst_98 = arith.constant dense<0.000000e+00> : vector<8x512xf32>
    %356 = tpu.matmul %354, %355, %cst_98 {dimension_numbers = #tpu.dot_dimension_numbers<[1], [0], [0], [1], [0, 0, 1, 1], [], []>} : vector<8x128xbf16>, vector<128x512xbf16>, vector<8x512xf32> -> vector<8x512xf32>
    %357 = arith.addf %353, %356 : vector<8x512xf32>
    %358 = vector.extract_strided_slice %357 {offsets = [0, 0], sizes = [8, 128], strides = [1, 1]} : vector<8x512xf32> to vector<8x128xf32>
    %359 = arith.negf %358 : vector<8x128xf32>
    %360 = math.exp %359 : vector<8x128xf32>
    %cst_99 = arith.constant 1.000000e+00 : f32
    %361 = vector.broadcast %cst_99 : f32 to vector<8x128xf32>
    %362 = arith.addf %361, %360 : vector<8x128xf32>
    %363 = arith.divf %361, %362 : vector<8x128xf32>
    %364 = vector.extract_strided_slice %357 {offsets = [0, 128], sizes = [8, 128], strides = [1, 1]} : vector<8x512xf32> to vector<8x128xf32>
    %365 = arith.negf %364 : vector<8x128xf32>
    %366 = math.exp %365 : vector<8x128xf32>
    %cst_100 = arith.constant 1.000000e+00 : f32
    %367 = vector.broadcast %cst_100 : f32 to vector<8x128xf32>
    %368 = arith.addf %367, %366 : vector<8x128xf32>
    %369 = arith.divf %367, %368 : vector<8x128xf32>
    %370 = vector.extract_strided_slice %357 {offsets = [0, 256], sizes = [8, 128], strides = [1, 1]} : vector<8x512xf32> to vector<8x128xf32>
    %371 = math.tanh %370 : vector<8x128xf32>
    %372 = vector.extract_strided_slice %357 {offsets = [0, 384], sizes = [8, 128], strides = [1, 1]} : vector<8x512xf32> to vector<8x128xf32>
    %373 = arith.negf %372 : vector<8x128xf32>
    %374 = math.exp %373 : vector<8x128xf32>
    %cst_101 = arith.constant 1.000000e+00 : f32
    %375 = vector.broadcast %cst_101 : f32 to vector<8x128xf32>
    %376 = arith.addf %375, %374 : vector<8x128xf32>
    %377 = arith.divf %375, %376 : vector<8x128xf32>
    %378 = arith.mulf %369, %317 : vector<8x128xf32>
    %379 = arith.mulf %363, %371 : vector<8x128xf32>
    %380 = arith.addf %378, %379 : vector<8x128xf32>
    %381 = math.tanh %380 : vector<8x128xf32>
    %382 = arith.mulf %377, %381 : vector<8x128xf32>
    %c48 = arith.constant 48 : index
    %c0_102 = arith.constant 0 : index
    %383 = vector.load %arg10[%c48, %c0_102] : memref<64x512xf32, #tpu.memory_space<vmem>>, vector<8x512xf32>
    %384 = arith.truncf %349 : vector<8x128xf32> to vector<8x128xbf16>
    %c0_103 = arith.constant 0 : index
    %c0_104 = arith.constant 0 : index
    %385 = vector.load %arg2[%c0_103, %c0_104] : memref<128x512xbf16, #tpu.memory_space<vmem>>, vector<128x512xbf16>
    %cst_105 = arith.constant dense<0.000000e+00> : vector<8x512xf32>
    %386 = tpu.matmul %384, %385, %cst_105 {dimension_numbers = #tpu.dot_dimension_numbers<[1], [0], [0], [1], [0, 0, 1, 1], [], []>} : vector<8x128xbf16>, vector<128x512xbf16>, vector<8x512xf32> -> vector<8x512xf32>
    %387 = arith.addf %383, %386 : vector<8x512xf32>
    %388 = vector.extract_strided_slice %387 {offsets = [0, 0], sizes = [8, 128], strides = [1, 1]} : vector<8x512xf32> to vector<8x128xf32>
    %389 = arith.negf %388 : vector<8x128xf32>
    %390 = math.exp %389 : vector<8x128xf32>
    %cst_106 = arith.constant 1.000000e+00 : f32
    %391 = vector.broadcast %cst_106 : f32 to vector<8x128xf32>
    %392 = arith.addf %391, %390 : vector<8x128xf32>
    %393 = arith.divf %391, %392 : vector<8x128xf32>
    %394 = vector.extract_strided_slice %387 {offsets = [0, 128], sizes = [8, 128], strides = [1, 1]} : vector<8x512xf32> to vector<8x128xf32>
    %395 = arith.negf %394 : vector<8x128xf32>
    %396 = math.exp %395 : vector<8x128xf32>
    %cst_107 = arith.constant 1.000000e+00 : f32
    %397 = vector.broadcast %cst_107 : f32 to vector<8x128xf32>
    %398 = arith.addf %397, %396 : vector<8x128xf32>
    %399 = arith.divf %397, %398 : vector<8x128xf32>
    %400 = vector.extract_strided_slice %387 {offsets = [0, 256], sizes = [8, 128], strides = [1, 1]} : vector<8x512xf32> to vector<8x128xf32>
    %401 = math.tanh %400 : vector<8x128xf32>
    %402 = vector.extract_strided_slice %387 {offsets = [0, 384], sizes = [8, 128], strides = [1, 1]} : vector<8x512xf32> to vector<8x128xf32>
    %403 = arith.negf %402 : vector<8x128xf32>
    %404 = math.exp %403 : vector<8x128xf32>
    %cst_108 = arith.constant 1.000000e+00 : f32
    %405 = vector.broadcast %cst_108 : f32 to vector<8x128xf32>
    %406 = arith.addf %405, %404 : vector<8x128xf32>
    %407 = arith.divf %405, %406 : vector<8x128xf32>
    %408 = arith.mulf %399, %347 : vector<8x128xf32>
    %409 = arith.mulf %393, %401 : vector<8x128xf32>
    %410 = arith.addf %408, %409 : vector<8x128xf32>
    %411 = math.tanh %410 : vector<8x128xf32>
    %412 = arith.mulf %407, %411 : vector<8x128xf32>
    %413 = arith.truncf %412 : vector<8x128xf32> to vector<8x128xbf16>
    %c0_109 = arith.constant 0 : index
    %c0_110 = arith.constant 0 : index
    %414 = vector.load %arg4[%c0_109, %c0_110] : memref<128x512xbf16, #tpu.memory_space<vmem>>, vector<128x512xbf16>
    %cst_111 = arith.constant dense<0.000000e+00> : vector<8x512xf32>
    %415 = tpu.matmul %413, %414, %cst_111 {dimension_numbers = #tpu.dot_dimension_numbers<[1], [0], [0], [1], [0, 0, 1, 1], [], []>} : vector<8x128xbf16>, vector<128x512xbf16>, vector<8x512xf32> -> vector<8x512xf32>
    %416 = arith.addf %415, %10 : vector<8x512xf32>
    %417 = arith.truncf %382 : vector<8x128xf32> to vector<8x128xbf16>
    %c0_112 = arith.constant 0 : index
    %c0_113 = arith.constant 0 : index
    %418 = vector.load %arg11[%c0_112, %c0_113] : memref<128x512xbf16, #tpu.memory_space<vmem>>, vector<128x512xbf16>
    %cst_114 = arith.constant dense<0.000000e+00> : vector<8x512xf32>
    %419 = tpu.matmul %417, %418, %cst_114 {dimension_numbers = #tpu.dot_dimension_numbers<[1], [0], [0], [1], [0, 0, 1, 1], [], []>} : vector<8x128xbf16>, vector<128x512xbf16>, vector<8x512xf32> -> vector<8x512xf32>
    %420 = arith.addf %416, %419 : vector<8x512xf32>
    %421 = vector.extract_strided_slice %420 {offsets = [0, 0], sizes = [8, 128], strides = [1, 1]} : vector<8x512xf32> to vector<8x128xf32>
    %422 = arith.negf %421 : vector<8x128xf32>
    %423 = math.exp %422 : vector<8x128xf32>
    %cst_115 = arith.constant 1.000000e+00 : f32
    %424 = vector.broadcast %cst_115 : f32 to vector<8x128xf32>
    %425 = arith.addf %424, %423 : vector<8x128xf32>
    %426 = arith.divf %424, %425 : vector<8x128xf32>
    %427 = vector.extract_strided_slice %420 {offsets = [0, 128], sizes = [8, 128], strides = [1, 1]} : vector<8x512xf32> to vector<8x128xf32>
    %428 = arith.negf %427 : vector<8x128xf32>
    %429 = math.exp %428 : vector<8x128xf32>
    %cst_116 = arith.constant 1.000000e+00 : f32
    %430 = vector.broadcast %cst_116 : f32 to vector<8x128xf32>
    %431 = arith.addf %430, %429 : vector<8x128xf32>
    %432 = arith.divf %430, %431 : vector<8x128xf32>
    %433 = vector.extract_strided_slice %420 {offsets = [0, 256], sizes = [8, 128], strides = [1, 1]} : vector<8x512xf32> to vector<8x128xf32>
    %434 = math.tanh %433 : vector<8x128xf32>
    %435 = vector.extract_strided_slice %420 {offsets = [0, 384], sizes = [8, 128], strides = [1, 1]} : vector<8x512xf32> to vector<8x128xf32>
    %436 = arith.negf %435 : vector<8x128xf32>
    %437 = math.exp %436 : vector<8x128xf32>
    %cst_117 = arith.constant 1.000000e+00 : f32
    %438 = vector.broadcast %cst_117 : f32 to vector<8x128xf32>
    %439 = arith.addf %438, %437 : vector<8x128xf32>
    %440 = arith.divf %438, %439 : vector<8x128xf32>
    %441 = arith.mulf %432, %380 : vector<8x128xf32>
    %442 = arith.mulf %426, %434 : vector<8x128xf32>
    %443 = arith.addf %441, %442 : vector<8x128xf32>
    %444 = math.tanh %443 : vector<8x128xf32>
    %445 = arith.mulf %440, %444 : vector<8x128xf32>
    %c56 = arith.constant 56 : index
    %c0_118 = arith.constant 0 : index
    %446 = vector.load %arg10[%c56, %c0_118] : memref<64x512xf32, #tpu.memory_space<vmem>>, vector<8x512xf32>
    %447 = arith.truncf %412 : vector<8x128xf32> to vector<8x128xbf16>
    %c0_119 = arith.constant 0 : index
    %c0_120 = arith.constant 0 : index
    %448 = vector.load %arg2[%c0_119, %c0_120] : memref<128x512xbf16, #tpu.memory_space<vmem>>, vector<128x512xbf16>
    %cst_121 = arith.constant dense<0.000000e+00> : vector<8x512xf32>
    %449 = tpu.matmul %447, %448, %cst_121 {dimension_numbers = #tpu.dot_dimension_numbers<[1], [0], [0], [1], [0, 0, 1, 1], [], []>} : vector<8x128xbf16>, vector<128x512xbf16>, vector<8x512xf32> -> vector<8x512xf32>
    %450 = arith.addf %446, %449 : vector<8x512xf32>
    %451 = vector.extract_strided_slice %450 {offsets = [0, 0], sizes = [8, 128], strides = [1, 1]} : vector<8x512xf32> to vector<8x128xf32>
    %452 = arith.negf %451 : vector<8x128xf32>
    %453 = math.exp %452 : vector<8x128xf32>
    %cst_122 = arith.constant 1.000000e+00 : f32
    %454 = vector.broadcast %cst_122 : f32 to vector<8x128xf32>
    %455 = arith.addf %454, %453 : vector<8x128xf32>
    %456 = arith.divf %454, %455 : vector<8x128xf32>
    %457 = vector.extract_strided_slice %450 {offsets = [0, 128], sizes = [8, 128], strides = [1, 1]} : vector<8x512xf32> to vector<8x128xf32>
    %458 = arith.negf %457 : vector<8x128xf32>
    %459 = math.exp %458 : vector<8x128xf32>
    %cst_123 = arith.constant 1.000000e+00 : f32
    %460 = vector.broadcast %cst_123 : f32 to vector<8x128xf32>
    %461 = arith.addf %460, %459 : vector<8x128xf32>
    %462 = arith.divf %460, %461 : vector<8x128xf32>
    %463 = vector.extract_strided_slice %450 {offsets = [0, 256], sizes = [8, 128], strides = [1, 1]} : vector<8x512xf32> to vector<8x128xf32>
    %464 = math.tanh %463 : vector<8x128xf32>
    %465 = vector.extract_strided_slice %450 {offsets = [0, 384], sizes = [8, 128], strides = [1, 1]} : vector<8x512xf32> to vector<8x128xf32>
    %466 = arith.negf %465 : vector<8x128xf32>
    %467 = math.exp %466 : vector<8x128xf32>
    %cst_124 = arith.constant 1.000000e+00 : f32
    %468 = vector.broadcast %cst_124 : f32 to vector<8x128xf32>
    %469 = arith.addf %468, %467 : vector<8x128xf32>
    %470 = arith.divf %468, %469 : vector<8x128xf32>
    %471 = arith.mulf %462, %410 : vector<8x128xf32>
    %472 = arith.mulf %456, %464 : vector<8x128xf32>
    %473 = arith.addf %471, %472 : vector<8x128xf32>
    %474 = math.tanh %473 : vector<8x128xf32>
    %475 = arith.mulf %470, %474 : vector<8x128xf32>
    %476 = arith.truncf %475 : vector<8x128xf32> to vector<8x128xbf16>
    %c0_125 = arith.constant 0 : index
    %c0_126 = arith.constant 0 : index
    %477 = vector.load %arg4[%c0_125, %c0_126] : memref<128x512xbf16, #tpu.memory_space<vmem>>, vector<128x512xbf16>
    %cst_127 = arith.constant dense<0.000000e+00> : vector<8x512xf32>
    %478 = tpu.matmul %476, %477, %cst_127 {dimension_numbers = #tpu.dot_dimension_numbers<[1], [0], [0], [1], [0, 0, 1, 1], [], []>} : vector<8x128xbf16>, vector<128x512xbf16>, vector<8x512xf32> -> vector<8x512xf32>
    %479 = arith.addf %478, %10 : vector<8x512xf32>
    %480 = arith.truncf %445 : vector<8x128xf32> to vector<8x128xbf16>
    %c0_128 = arith.constant 0 : index
    %c0_129 = arith.constant 0 : index
    %481 = vector.load %arg11[%c0_128, %c0_129] : memref<128x512xbf16, #tpu.memory_space<vmem>>, vector<128x512xbf16>
    %cst_130 = arith.constant dense<0.000000e+00> : vector<8x512xf32>
    %482 = tpu.matmul %480, %481, %cst_130 {dimension_numbers = #tpu.dot_dimension_numbers<[1], [0], [0], [1], [0, 0, 1, 1], [], []>} : vector<8x128xbf16>, vector<128x512xbf16>, vector<8x512xf32> -> vector<8x512xf32>
    %483 = arith.addf %479, %482 : vector<8x512xf32>
    %484 = vector.extract_strided_slice %483 {offsets = [0, 0], sizes = [8, 128], strides = [1, 1]} : vector<8x512xf32> to vector<8x128xf32>
    %485 = arith.negf %484 : vector<8x128xf32>
    %486 = math.exp %485 : vector<8x128xf32>
    %cst_131 = arith.constant 1.000000e+00 : f32
    %487 = vector.broadcast %cst_131 : f32 to vector<8x128xf32>
    %488 = arith.addf %487, %486 : vector<8x128xf32>
    %489 = arith.divf %487, %488 : vector<8x128xf32>
    %490 = vector.extract_strided_slice %483 {offsets = [0, 128], sizes = [8, 128], strides = [1, 1]} : vector<8x512xf32> to vector<8x128xf32>
    %491 = arith.negf %490 : vector<8x128xf32>
    %492 = math.exp %491 : vector<8x128xf32>
    %cst_132 = arith.constant 1.000000e+00 : f32
    %493 = vector.broadcast %cst_132 : f32 to vector<8x128xf32>
    %494 = arith.addf %493, %492 : vector<8x128xf32>
    %495 = arith.divf %493, %494 : vector<8x128xf32>
    %496 = vector.extract_strided_slice %483 {offsets = [0, 256], sizes = [8, 128], strides = [1, 1]} : vector<8x512xf32> to vector<8x128xf32>
    %497 = math.tanh %496 : vector<8x128xf32>
    %498 = vector.extract_strided_slice %483 {offsets = [0, 384], sizes = [8, 128], strides = [1, 1]} : vector<8x512xf32> to vector<8x128xf32>
    %499 = arith.negf %498 : vector<8x128xf32>
    %500 = math.exp %499 : vector<8x128xf32>
    %cst_133 = arith.constant 1.000000e+00 : f32
    %501 = vector.broadcast %cst_133 : f32 to vector<8x128xf32>
    %502 = arith.addf %501, %500 : vector<8x128xf32>
    %503 = arith.divf %501, %502 : vector<8x128xf32>
    %504 = arith.mulf %495, %443 : vector<8x128xf32>
    %505 = arith.mulf %489, %497 : vector<8x128xf32>
    %506 = arith.addf %504, %505 : vector<8x128xf32>
    %507 = math.tanh %506 : vector<8x128xf32>
    %508 = arith.mulf %503, %507 : vector<8x128xf32>
    %509 = arith.truncf %508 : vector<8x128xf32> to vector<8x128xbf16>
    %c0_134 = arith.constant 0 : index
    %c0_135 = arith.constant 0 : index
    %510 = vector.load %arg7[%c0_134, %c0_135] : memref<128x128xbf16, #tpu.memory_space<vmem>>, vector<128x128xbf16>
    %cst_136 = arith.constant dense<0.000000e+00> : vector<8x128xf32>
    %511 = tpu.matmul %509, %510, %cst_136 {dimension_numbers = #tpu.dot_dimension_numbers<[1], [0], [0], [1], [0, 0, 1, 1], [], []>} : vector<8x128xbf16>, vector<128x128xbf16>, vector<8x128xf32> -> vector<8x128xf32>
    %c0_137 = arith.constant 0 : index
    %c0_138 = arith.constant 0 : index
    %512 = vector.load %arg8[%c0_137, %c0_138] : memref<1x128xf32, #tpu.memory_space<vmem>>, vector<1x128xf32>
    %513 = vector.broadcast %512 : vector<1x128xf32> to vector<8x128xf32>
    %514 = arith.addf %511, %513 : vector<8x128xf32>
    %c0_139 = arith.constant 0 : index
    %c0_140 = arith.constant 0 : index
    %515 = vector.load %arg9[%c0_139, %c0_140] : memref<8x128xf32, #tpu.memory_space<vmem>>, vector<8x128xf32>
    tpu.vector_store %arg9[%c0_139, %c0_140], %514 {strides = array<i32>} : memref<8x128xf32, #tpu.memory_space<vmem>>, vector<8x128xf32>,
    return
  }
}

</mosaic_0001>

<bundles_post_ra>
// kernel: lstm_model_forward.1
= control target key start
LH: loop header
LB: loop body
LE: loop exit
PB: predicated region body
PF: predicated region fallthrough
CT: control target
= control target key end

     0   :  { %14 = vsyncpa [#allocation6], 0  ;;  %s6503_s0 = inlined_call_operand.vmem [shape: f32[64,8], index: 0, kind: input, shape index: {}]   ;;  %s6504_s1 = inlined_call_operand.vmem [shape: bf16[8,512], index: 1, kind: input, shape index: {}]   ;;  %s6505_s2 = inlined_call_operand.hbm [shape: bf16[128,512], index: 2, kind: input, shape index: {}]   ;;  %s6506_s3 = inlined_call_operand.vmem [shape: f32[1,512], index: 3, kind: input, shape index: {}]   ;;  %s6507_s4 = inlined_call_operand.hbm [shape: bf16[128,512], index: 4, kind: input, shape index: {}]   ;;  %s6508_s5 = inlined_call_operand.hbm [shape: bf16[128,512], index: 5, kind: input, shape index: {}]   ;;  %s6509_s6 = inlined_call_operand.vmem [shape: f32[1,512], index: 6, kind: input, shape index: {}]   ;;  %s6510_s7 = inlined_call_operand.vmem [shape: bf16[128,128], index: 7, kind: input, shape index: {}]   ;;  %s6511_s8 = inlined_call_operand.vmem [shape: f32[1,128], index: 8, kind: input, shape index: {}]   ;;  %s6512_s9 = inlined_call_operand.vmem [shape: f32[8,128], index: 9, kind: output, shape index: {}]  }
   0x1   :  { %s24_s11 = sshll.u32 %s6505_s2, 4  ;;  %s25_s11 = int_to_ptr.hbm [resolvable:$true] %s24_s11 }
   0x2   :  { %15 = vsyncpa [#allocation8], 0  ;;  %s4854_s12 = smov [#allocation5]   ;;  %s39_s16 = sshll.u32 %s6507_s4, 4  ;;  %s40_s16 = int_to_ptr.hbm [resolvable:$true] %s39_s16 }
   0x3   :  { %s26_s13 = sshll.u32 %s4854_s12, 4  ;;  %s4855_s17 = smov 256   ;;  %s27_s13 = int_to_ptr.vmem [resolvable:$true] %s26_s13 }
   0x4   :  { %s4856_s18 = smov 16   ;;  %s4857_s19 = smov [#allocation7]  }
   0x5   :  { %32 = dma.hbm_to_vmem [thread:$0]  %s25_s11, 4096, %s27_s13, [#allocation6], %s4855_s17, %s4855_s17, %s4856_s18  }
   0x6   :  { %s41_s20 = sshll.u32 %s4857_s19, 4  ;;  %s42_s20 = int_to_ptr.vmem [resolvable:$true] %s41_s20 }
   0x7   :  { %47 = dma.hbm_to_vmem [thread:$0]  %s40_s16, 4096, %s42_s20, [#allocation8], %s4855_s17, %s4855_s17, %s4856_s18  }
   0x8   :  { %4848 = dma.done.wait [#allocation6], 4096  }
   0x9   :  { %4849 = vsyncadd [#allocation6], 4294963200 }
   0xa   :  { %4850 = dma.done.wait [#allocation8], 4096  }
   0xb   :  { %4851 = vsyncadd [#allocation8], 4294963200  ;;  %v88_v0 = vld [vmem:[%s6504_s1] sm:$0xff]  ;;  %v82_v2 = vld [vmem:[%s6503_s0 + $0x30] sm:$0xff]  ;;  %vm123_vm0 = vcmask 1043456   ;;  %vm110_vm1 = vcmask 64512  }
   0xc   :  { %v102_v1 = vunpack.c.l.b16 %v88_v0  ;;  %v103_v3 = vunpack.c.h.b16 %v88_v0  ;;  %v89_v4 = vld [vmem:[%s6504_s1 + $0x8] sm:$0xff]  ;;  %v83_v5 = vld [vmem:[%s6503_s0 + $0x38] sm:$0xff]  ;;  %v76_v6 = vld [vmem:[%s6503_s0] sm:$0xff]  ;;  %s70_s19 = sshll.u32 %s6508_s5, 4  ;;  %s4858_s20 = smov [#allocation3]   ;;  %s71_s19 = int_to_ptr.hbm [resolvable:$true] %s70_s19 }
   0xd   :  { %v77_v7 = vld [vmem:[%s6503_s0 + $0x8] sm:$0xff]  ;;  %v105_v8 = vunpack.c.h.b16 %v89_v4  ;;  %v104_v9 = vunpack.c.l.b16 %v89_v4  ;;  %v4373_v12 = vld [vmem:[#allocation7 + $0xe4] sm:$0xf]  ;;  %v3743_v13 = vld [vmem:[#allocation7 + $0xf0] sm:$0xf0]  ;;  %v4934_v17 = vpack.c.bf16 %v83_v5, %v82_v2  ;;  %s72_s2 = sshll.u32 %s4858_s20, 4  ;;  %s73_s2 = int_to_ptr.vmem [resolvable:$true] %s72_s2 }
   0xe   :  { %v106_v10 = vpack.c.b16 %v102_v1, %v102_v1  ;;  %v107_v11 = vpack.c.b16 %v103_v3, %v103_v3  ;;  %v84_v19 = vpack.c.bf16 %v77_v7, %v76_v6  ;;  %v3746_v22 = vor.u32 %v4373_v12, %v3743_v13  ;;  %v78_v23 = vld [vmem:[%s6503_s0 + $0x10] sm:$0xff]  ;;  %v79_v24 = vld [vmem:[%s6503_s0 + $0x18] sm:$0xff]  ;;  %v4374_v26 = vld [vmem:[#allocation7 + $0xec] sm:$0xf]  ;;  %75 = dma.hbm_to_vmem [thread:$0]  %s71_s19, 4096, %s73_s2, [#allocation4] }
   0xf   :  { %v109_v14 = vpack.c.b16 %v105_v8, %v105_v8  ;;  %v108_v15 = vpack.c.b16 %v104_v9, %v104_v9  ;;  %v85_v25 = vpack.c.bf16 %v79_v24, %v78_v23  ;;  %v3751_v27 = vld [vmem:[#allocation7 + $0xf8] sm:$0xf0]  ;;  %v3749_v28 = vld [vmem:[#allocation7 + $0xe8] sm:$0xf]  ;;  %v4376_v30 = vld [vmem:[#allocation7 + $0xf4] sm:$0xf0] }
  0x10   :  { %v125_v16 = vsel %vm123_vm0, %v106_v10, 0  ;;  %v128_v18 = vsel %vm123_vm0, %v107_v11, 0  ;;  %v3754_v29 = vor.u32 %v4374_v26, %v3751_v27  ;;  %v3741_v31 = vld [vmem:[#allocation7 + $0xe0] sm:$0xf]  ;;  %v4375_v32 = vld [vmem:[#allocation7 + $0xec] sm:$0xf0]  ;;  %v3750_v33 = vor.u32 %v4376_v30, %v3749_v28 }
  0x11   :  { %4513 = vmatpush.bf16.msra.mxu1 %v125_v16  ;;  %143 = vmatpush.bf16.msra.mxu0 %v125_v16  ;;  %v134_v20 = vsel %vm123_vm0, %v109_v14, 0  ;;  %v131_v21 = vsel %vm123_vm0, %v108_v15, 0  ;;  %v3742_v34 = vor.u32 %v4375_v32, %v3741_v31  ;;  %v4369_v35 = vld [vmem:[#allocation7 + $0xc4] sm:$0xf]  ;;  %v3727_v36 = vld [vmem:[#allocation7 + $0xd0] sm:$0xf0] }
  0x12   :  { %230 = vmatpush.bf16.msra.mxu3 %v134_v20  ;;  %201 = vmatpush.bf16.msra.mxu2 %v131_v21  ;;  %v4370_v37 = vld [vmem:[#allocation7 + $0xcc] sm:$0xf]  ;;  %v3730_v38 = vor.u32 %v4369_v35, %v3727_v36  ;;  %v3735_v39 = vld [vmem:[#allocation7 + $0xd8] sm:$0xf0]  ;;  %v3725_v40 = vld [vmem:[#allocation7 + $0xc0] sm:$0xf] }
  0x13   :  { %v4371_v41 = vld [vmem:[#allocation7 + $0xcc] sm:$0xf0]  ;;  %v3738_v42 = vor.u32 %v4370_v37, %v3735_v39  ;;  %v3733_v44 = vld [vmem:[#allocation7 + $0xc8] sm:$0xf]  ;;  %v4372_v45 = vld [vmem:[#allocation7 + $0xd4] sm:$0xf0] }
  0x14   :  { %3611 = vmatmul.msk.bf16.vlgmr.msra.gmra.mxu1 %vm110_vm1, %v4934_v17  ;;  %3608 = vmatmul.msk.bf16.vlgmr.msra.gmra.mxu0 %vm110_vm1, %v84_v19  ;;  %v3726_v43 = vor.u32 %v4371_v41, %v3725_v40  ;;  %v80_v46 = vld [vmem:[%s6503_s0 + $0x20] sm:$0xff]  ;;  %v3734_v47 = vor.u32 %v4372_v45, %v3733_v44  ;;  %v81_v48 = vld [vmem:[%s6503_s0 + $0x28] sm:$0xff]  ;;  %v3711_v50 = vld [vmem:[#allocation7 + $0xb0] sm:$0xf0] }
  0x15   :  { %172 = vmatpush.bf16.msrb.mxu1 %v128_v18  ;;  %3620 = vmatmul.msk.bf16.vlgmr.msra.gmra.mxu3 %vm110_vm1, %v84_v19  ;;  %v4365_v49 = vld [vmem:[#allocation7 + $0xa4] sm:$0xf]  ;;  %v86_v51 = vpack.c.bf16 %v81_v48, %v80_v46  ;;  %v4964_v52 = vld [vmem:[%s6506_s3] sm:$0xf]  ;;  %v4366_v54 = vld [vmem:[#allocation7 + $0xac] sm:$0xf] }
  0x16   :  { %3616 = vmatmul.msk.bf16.vlgmr.msra.gmra.mxu2 %vm110_vm1, %v84_v19  ;;  %593 = vmatpush.bf16.msrb.mxu3 %v3754_v29  ;;  %v3714_v53 = vor.u32 %v4365_v49, %v3711_v50  ;;  %v3719_v55 = vld [vmem:[#allocation7 + $0xb8] sm:$0xf0]  ;;  %v3709_v57 = vld [vmem:[#allocation7 + $0xa0] sm:$0xf]  ;;  %v4367_v58 = vld [vmem:[#allocation7 + $0xac] sm:$0xf0] }
  0x17   :  { %580 = vmatpush.bf16.msrb.mxu2 %v3750_v33  ;;  %554 = vmatpush.bf16.msrb.mxu0 %v3742_v34  ;;  %v3722_v56 = vor.u32 %v4366_v54, %v3719_v55  ;;  %v3717_v59 = vld [vmem:[#allocation7 + $0xa8] sm:$0xf]  ;;  %v3710_v60 = vor.u32 %v4367_v58, %v3709_v57  ;;  %v4368_v61 = vld [vmem:[#allocation7 + $0xb4] sm:$0xf0]  ;;  %v4970_v62 = vperm.slane %v4964_v52, 0  ;;  %v4978_v29 = vperm.slane %v4964_v52, 3 }
  0x18   :  { %v3718_v63 = vor.u32 %v4368_v61, %v3717_v59  ;;  %v4361_v0 = vld [vmem:[#allocation7 + $0x84] sm:$0xf]  ;;  %v3695_v1 = vld [vmem:[#allocation7 + $0x90] sm:$0xf0]  ;;  %v4362_v2 = vld [vmem:[#allocation7 + $0x8c] sm:$0xf] }
  0x19   :  { %567 = vmatpush.bf16.msra.mxu1 %v3746_v22  ;;  %v3698_v3 = vor.u32 %v4361_v0, %v3695_v1  ;;  %v3703_v4 = vld [vmem:[#allocation7 + $0x98] sm:$0xf0]  ;;  %v3693_v5 = vld [vmem:[#allocation7 + $0x80] sm:$0xf]  ;;  %v4363_v6 = vld [vmem:[#allocation7 + $0x8c] sm:$0xf0] }
  0x1a   :  { %594 = vmatpush.bf16.msrb.mxu3 %v3738_v42  ;;  %v3706_v7 = vor.u32 %v4362_v2, %v3703_v4  ;;  %v3694_v8 = vor.u32 %v4363_v6, %v3693_v5  ;;  %v3701_v9 = vld [vmem:[#allocation7 + $0x88] sm:$0xf]  ;;  %v4364_v10 = vld [vmem:[#allocation7 + $0x94] sm:$0xf0]  ;;  %v4357_v14 = vld [vmem:[#allocation7 + $0x64] sm:$0xf] }
  0x1b   :  { %555 = vmatpush.bf16.msrb.mxu0 %v3726_v43  ;;  %581 = vmatpush.bf16.msrb.mxu2 %v3734_v47  ;;  %v3702_v11 = vor.u32 %v4364_v10, %v3701_v9  ;;  %v3679_v15 = vld [vmem:[#allocation7 + $0x70] sm:$0xf0]  ;;  %v3677_v16 = vld [vmem:[#allocation7 + $0x60] sm:$0xf]  ;;  %v4359_v21 = vld [vmem:[#allocation7 + $0x6c] sm:$0xf0] }
  0x1c   :  { %v3682_v20 = vor.u32 %v4357_v14, %v3679_v15  ;;  %v3685_v22 = vld [vmem:[#allocation7 + $0x68] sm:$0xf]  ;;  %v4360_v23 = vld [vmem:[#allocation7 + $0x74] sm:$0xf0]  ;;  %v3678_v24 = vor.u32 %v4359_v21, %v3677_v16  ;;  %v4358_v26 = vld [vmem:[#allocation7 + $0x6c] sm:$0xf] }
  0x1d   :  { %568 = vmatpush.bf16.msra.mxu1 %v3730_v38  ;;  %v3687_v27 = vld [vmem:[#allocation7 + $0x78] sm:$0xf0]  ;;  %v3661_v31 = vld [vmem:[#allocation7 + $0x40] sm:$0xf]  ;;  %v4355_v32 = vld [vmem:[#allocation7 + $0x4c] sm:$0xf0] }
  0x1e   :  { %595 = vmatpush.bf16.msrb.mxu3 %v3722_v56  ;;  %v3690_v30 = vor.u32 %v4358_v26, %v3687_v27  ;;  %v4353_v33 = vld [vmem:[#allocation7 + $0x44] sm:$0xf]  ;;  %v3662_v34 = vor.u32 %v4355_v32, %v3661_v31  ;;  %v3663_v35 = vld [vmem:[#allocation7 + $0x50] sm:$0xf0]  ;;  %v3669_v36 = vld [vmem:[#allocation7 + $0x48] sm:$0xf] }
  0x1f   :  { %556 = vmatpush.bf16.msrb.mxu0 %v3710_v60  ;;  %582 = vmatpush.bf16.msrb.mxu2 %v3718_v63  ;;  %v4356_v37 = vld [vmem:[#allocation7 + $0x54] sm:$0xf0]  ;;  %v3666_v38 = vor.u32 %v4353_v33, %v3663_v35  ;;  %v4354_v40 = vld [vmem:[#allocation7 + $0x4c] sm:$0xf]  ;;  %v3671_v41 = vld [vmem:[#allocation7 + $0x58] sm:$0xf0] }
  0x20   :  { %v3670_v39 = vor.u32 %v4356_v37, %v3669_v36  ;;  %v3674_v43 = vor.u32 %v4354_v40, %v3671_v41  ;;  %v3645_v46 = vld [vmem:[#allocation7 + $0x20] sm:$0xf]  ;;  %v4351_v47 = vld [vmem:[#allocation7 + $0x2c] sm:$0xf0]  ;;  %v4349_v48 = vld [vmem:[#allocation7 + $0x24] sm:$0xf] }
  0x21   :  { %569 = vmatpush.bf16.msra.mxu1 %v3714_v53  ;;  %v3646_v50 = vor.u32 %v4351_v47, %v3645_v46  ;;  %v3653_v53 = vld [vmem:[#allocation7 + $0x28] sm:$0xf]  ;;  %v4352_v54 = vld [vmem:[#allocation7 + $0x34] sm:$0xf0]  ;;  %v4350_v57 = vld [vmem:[#allocation7 + $0x2c] sm:$0xf] }
  0x22   :  { %596 = vmatpush.bf16.msrb.mxu3 %v3706_v7  ;;  %v3654_v56 = vor.u32 %v4352_v54, %v3653_v53  ;;  %v3655_v58 = vld [vmem:[#allocation7 + $0x38] sm:$0xf0]  ;;  %v4993_v0 = vperm.slane %v4964_v52, 1  ;;  %v3629_v1 = vld [vmem:[#allocation7] sm:$0xf] }
  0x23   :  { %557 = vmatpush.bf16.msrb.mxu0 %v3694_v8  ;;  %583 = vmatpush.bf16.msrb.mxu2 %v3702_v11  ;;  %v3658_v61 = vor.u32 %v4350_v57, %v3655_v58  ;;  %v4347_v2 = vld [vmem:[#allocation7 + $0xc] sm:$0xf0]  ;;  %v4345_v4 = vld [vmem:[#allocation7 + $0x4] sm:$0xf]  ;;  %v3631_v5 = vld [vmem:[#allocation7 + $0x10] sm:$0xf0] }
  0x24   :  { %3612 = vmatmul.msk.bf16.vlgmr.msrb.gmra.mxu1 %vm110_vm1, %v84_v19  ;;  %3609 = vmatmul.msk.bf16.gmra.mxu0 %vm110_vm1, %v85_v25  ;;  %v3637_v6 = vld [vmem:[#allocation7 + $0x8] sm:$0xf]  ;;  %v4348_v7 = vld [vmem:[#allocation7 + $0x14] sm:$0xf0]  ;;  %v3634_v8 = vor.u32 %v4345_v4, %v3631_v5  ;;  %v3639_v10 = vld [vmem:[#allocation7 + $0x18] sm:$0xf0] }
  0x25   :  { %3621 = vmatmul.msk.bf16.gmra.mxu3 %vm110_vm1, %v85_v25  ;;  %570 = vmatpush.bf16.msra.mxu1 %v3698_v3  ;;  %v3630_v3 = vor.u32 %v4347_v2, %v3629_v1  ;;  %v3638_v9 = vor.u32 %v4348_v7, %v3637_v6  ;;  %v3872_v11 = vld [vmem:[#allocation5 + $0xe0] sm:$0xf]  ;;  %v4407_v14 = vld [vmem:[#allocation5 + $0xec] sm:$0xf0]  ;;  %v4405_v15 = vld [vmem:[#allocation5 + $0xe4] sm:$0xf] }
  0x26   :  { %3617 = vmatmul.msk.bf16.gmra.mxu2 %vm110_vm1, %v85_v25  ;;  %597 = vmatpush.bf16.msrb.mxu3 %v3690_v30  ;;  %v3880_v21 = vld [vmem:[#allocation5 + $0xe8] sm:$0xf]  ;;  %v3882_v26 = vld [vmem:[#allocation5 + $0xf8] sm:$0xf0]  ;;  %v3856_v27 = vld [vmem:[#allocation5 + $0xc0] sm:$0xf] }
  0x27   :  { %558 = vmatpush.bf16.msrb.mxu0 %v3678_v24  ;;  %v4403_v31 = vld [vmem:[#allocation5 + $0xcc] sm:$0xf0]  ;;  %v4401_v33 = vld [vmem:[#allocation5 + $0xc4] sm:$0xf]  ;;  %v3864_v35 = vld [vmem:[#allocation5 + $0xc8] sm:$0xf] }
  0x28   :  { %v3857_v32 = vor.u32 %v4403_v31, %v3856_v27  ;;  %v4404_v37 = vld [vmem:[#allocation5 + $0xd4] sm:$0xf0]  ;;  %v3866_v40 = vld [vmem:[#allocation5 + $0xd8] sm:$0xf0]  ;;  %v3840_v41 = vld [vmem:[#allocation5 + $0xa0] sm:$0xf] }
  0x29   :  { %571 = vmatpush.bf16.msra.mxu1 %v3682_v20  ;;  %v3874_v20 = vld [vmem:[#allocation5 + $0xf0] sm:$0xf0]  ;;  %v4397_v46 = vld [vmem:[#allocation5 + $0xa4] sm:$0xf]  ;;  %v4400_v54 = vld [vmem:[#allocation5 + $0xb4] sm:$0xf0] }
  0x2a   :  { %598 = vmatpush.bf16.msrb.mxu3 %v3674_v43  ;;  %v3865_v43 = vor.u32 %v4404_v37, %v3864_v35  ;;  %v4393_v1 = vld [vmem:[#allocation5 + $0x84] sm:$0xf]  ;;  %v3832_v4 = vld [vmem:[#allocation5 + $0x88] sm:$0xf]  ;;  %v4396_v5 = vld [vmem:[#allocation5 + $0x94] sm:$0xf0] }
  0x2b   :  { %559 = vmatpush.bf16.msrb.mxu0 %v3662_v34  ;;  %v3858_v34 = vld [vmem:[#allocation5 + $0xd0] sm:$0xf0]  ;;  %v4387_v35 = vld [vmem:[#allocation5 + $0x4c] sm:$0xf0] }
  0x2d   :  { %572 = vmatpush.bf16.msra.mxu1 %v3666_v38  ;;  %v4402_v38 = vld [vmem:[#allocation5 + $0xcc] sm:$0xf] }
  0x2e   :  { %599 = vmatpush.bf16.msrb.mxu3 %v3658_v61  ;;  %v4395_v61 = vld [vmem:[#allocation5 + $0x8c] sm:$0xf0] }
  0x2f   :  { %560 = vmatpush.bf16.msrb.mxu0 %v3646_v50  ;;  %v3842_v50 = vld [vmem:[#allocation5 + $0xb0] sm:$0xf0] }
  0x30   :  { %v3845_v53 = vor.u32 %v4397_v46, %v3842_v50  ;;  %v3776_v46 = vld [vmem:[#allocation5 + $0x20] sm:$0xf] }
  0x33   :  { %561 = vmatpush.bf16.msrb.mxu0 %v3630_v3  ;;  %v3826_v3 = vld [vmem:[#allocation5 + $0x90] sm:$0xf0] }
  0x34   :  { %3613 = vmatmul.msk.bf16.gmra.mxu1 %vm110_vm1, %v85_v25  ;;  %3610 = vmatmul.msk.bf16.gmra.mxu0 %vm110_vm1, %v86_v51  ;;  %v3686_v25 = vor.u32 %v4360_v23, %v3685_v22  ;;  %v4408_v22 = vld [vmem:[#allocation5 + $0xf4] sm:$0xf0]  ;;  %v3877_v23 = vor.u32 %v4405_v15, %v3874_v20  ;;  %v3829_v7 = vor.u32 %v4393_v1, %v3826_v3  ;;  %v3808_v15 = vld [vmem:[#allocation5 + $0x60] sm:$0xf]  ;;  %v4389_v20 = vld [vmem:[#allocation5 + $0x64] sm:$0xf] }
  0x35   :  { %3622 = vmatmul.msk.bf16.gmra.mxu3 %vm110_vm1, %v86_v51  ;;  %v3881_v24 = vor.u32 %v4408_v22, %v3880_v21  ;;  %v3810_v22 = vld [vmem:[#allocation5 + $0x70] sm:$0xf0] }
  0x36   :  { %3618 = vmatmul.msk.bf16.gmra.mxu2 %vm110_vm1, %v86_v51 }
  0x37   :  { %584 = vmatpush.bf16.msrb.mxu2 %v3686_v25  ;;  %v4406_v25 = vld [vmem:[#allocation5 + $0xec] sm:$0xf] }
  0x38   :  { %v3885_v30 = vor.u32 %v4406_v25, %v3882_v26  ;;  %v3813_v26 = vor.u32 %v4389_v20, %v3810_v22  ;;  %v4380_v20 = vld [vmem:[#allocation5 + $0x14] sm:$0xf0]  ;;  %v3770_v22 = vld [vmem:[#allocation5 + $0x18] sm:$0xf0] }
  0x3b   :  { %585 = vmatpush.bf16.msrb.mxu2 %v3670_v39  ;;  %v3861_v39 = vor.u32 %v4401_v33, %v3858_v34  ;;  %v3792_v34 = vld [vmem:[#allocation5 + $0x40] sm:$0xf] }
  0x3c   :  { %v3793_v37 = vor.u32 %v4387_v35, %v3792_v34 }
  0x3f   :  { %586 = vmatpush.bf16.msrb.mxu2 %v3654_v56  ;;  %v3850_v56 = vld [vmem:[#allocation5 + $0xb8] sm:$0xf0] }
  0x43   :  { %587 = vmatpush.bf16.msrb.mxu2 %v3638_v9  ;;  %v3834_v9 = vld [vmem:[#allocation5 + $0x98] sm:$0xf0] }
  0x44   :  { %3614 = vmatmul.msk.bf16.gmra.mxu1 %vm110_vm1, %v86_v51  ;;  %v3647_v51 = vld [vmem:[#allocation7 + $0x30] sm:$0xf0] }
  0x45   :  { %v3650_v55 = vor.u32 %v4349_v48, %v3647_v51  ;;  %3623 = vmatmul.msk.bf16.gmra.mxu3 %vm110_vm1, %v4934_v17  ;;  %v3848_v51 = vld [vmem:[#allocation5 + $0xa8] sm:$0xf] }
  0x46   :  { %3619 = vmatmul.msk.bf16.gmra.mxu2 %vm110_vm1, %v4934_v17  ;;  %v3849_v58 = vor.u32 %v4400_v54, %v3848_v51  ;;  %v4381_v54 = vld [vmem:[#allocation5 + $0x24] sm:$0xf] }
  0x47   :  { %573 = vmatpush.bf16.msra.mxu1 %v3650_v55  ;;  %891 = vmatpush.bf16.msra.mxu2 %v3881_v24  ;;  %v4398_v55 = vld [vmem:[#allocation5 + $0xac] sm:$0xf]  ;;  %v4392_v24 = vld [vmem:[#allocation5 + $0x74] sm:$0xf0] }
  0x4b   :  { %574 = vmatpush.bf16.msra.mxu1 %v3634_v8  ;;  %892 = vmatpush.bf16.msra.mxu2 %v3865_v43  ;;  %v4394_v8 = vld [vmem:[#allocation5 + $0x8c] sm:$0xf] }
  0x4f   :  { %878 = vmatpush.bf16.msrb.mxu1 %v3877_v23  ;;  %893 = vmatpush.bf16.msra.mxu2 %v3849_v58  ;;  %v3816_v23 = vld [vmem:[#allocation5 + $0x68] sm:$0xf] }
  0x50   :  { %v3817_v27 = vor.u32 %v4392_v24, %v3816_v23  ;;  %v3784_v58 = vld [vmem:[#allocation5 + $0x28] sm:$0xf] }
  0x53   :  { %879 = vmatpush.bf16.msrb.mxu1 %v3861_v39  ;;  %v3800_v39 = vld [vmem:[#allocation5 + $0x48] sm:$0xf] }
  0x54   :  { %3615 = vmatmul.msk.bf16.gmra.mxu1 %vm110_vm1, %v4934_v17  ;;  %v4346_v17 = vld [vmem:[#allocation7 + $0xc] sm:$0xf] }
  0x57   :  { %880 = vmatpush.bf16.msrb.mxu1 %v3845_v53  ;;  %v4383_v53 = vld [vmem:[#allocation5 + $0x2c] sm:$0xf0] }
  0x5b   :  { %881 = vmatpush.bf16.msrb.mxu1 %v3829_v7 }
  0x5f   :  { %882 = vmatpush.bf16.msrb.mxu1 %v3813_v26 }
  0x91   :  { %v160_v12 = vpop.f32.mrf.mxu1  ;;  %v145_v13 = vpop.f32.mrf.mxu0 }
  0x92   :  { %v4974_v18 = vadd.f32 %v160_v12, %v4970_v62  ;;  %v146_v19 = vadd.f32 %v145_v13, %v4970_v62  ;;  %v3642_v13 = vor.u32 %v4346_v17, %v3639_v10 }
  0x94   :  { %6701 = vst [vmem:[#allocation16_spill] sm:$0xff] %v4974_v18  ;;  %v3624_v28 = vmul.f32 -1.442695, %v146_v19  ;;  %v3873_v19 = vor.u32 %v4407_v14, %v3872_v11  ;;  %600 = vmatpush.bf16.msrb.mxu3 %v3642_v13  ;;  %v3833_v11 = vor.u32 %v4396_v5, %v3832_v4  ;;  %v5008_v14 = vperm.slane %v4964_v52, 2  ;;  %v4390_v52 = vld [vmem:[#allocation5 + $0x6c] sm:$0xf] }
  0x95   :  { %v3777_v4 = vor.u32 %v4383_v53, %v3776_v46  ;;  %v3786_v5 = vld [vmem:[#allocation5 + $0x38] sm:$0xf0] }
  0x96   :  { %4519 = vpow2.f32 %v3624_v28  ;;  %865 = vmatpush.bf16.msra.mxu0 %v3873_v19  ;;  %894 = vmatpush.bf16.msra.mxu2 %v3833_v11 }
  0x98   :  { %v232_v42 = vpop.f32.mrf.mxu3  ;;  %904 = vmatpush.bf16.msra.mxu3 %v3885_v30 }
  0x99   :  { %v162_v44 = vpop.f32.mrf.mxu1  ;;  %v233_v45 = vadd.f32 %v232_v42, %v4978_v29  ;;  %v203_v19 = vpop.f32.mrf.mxu2 }
  0x9a   :  { %v4982_v49 = vadd.f32 %v162_v44, %v4970_v62  ;;  %866 = vmatpush.bf16.msra.mxu0 %v3857_v32  ;;  %v3869_v44 = vor.u32 %v4402_v38, %v3866_v40  ;;  %v204_v30 = vadd.f32 %v203_v19, %v5008_v14  ;;  %v3794_v38 = vld [vmem:[#allocation5 + $0x50] sm:$0xf0]  ;;  %v4388_v40 = vld [vmem:[#allocation5 + $0x54] sm:$0xf0]  ;;  %895 = vmatpush.bf16.msra.mxu2 %v3817_v27 }
  0x9b   :  { %v3626_v60 = vmul.f32 -1.442695, %v233_v45  ;;  %v4399_v45 = vld [vmem:[#allocation5 + $0xac] sm:$0xf0]  ;;  %v3801_v50 = vor.u32 %v4388_v40, %v3800_v39 }
  0x9c   :  { %6702 = vst [vmem:[#allocation17_spill] sm:$0xff] %v4982_v49  ;;  %v4520_v59 = vpop.eup %4519  ;;  %v3841_v48 = vor.u32 %v4399_v45, %v3840_v41  ;;  %905 = vmatpush.bf16.msra.mxu3 %v3869_v44  ;;  %v4386_v44 = vld [vmem:[#allocation5 + $0x4c] sm:$0xf]  ;;  %v3802_v45 = vld [vmem:[#allocation5 + $0x58] sm:$0xf0] }
  0x9d   :  { %v4990_v63 = vadd.f32 1.0, %v4520_v59  ;;  %4521 = vpow2.f32 %v3626_v60  ;;  %v3853_v59 = vor.u32 %v4398_v55, %v3850_v56  ;;  %v3824_v60 = vld [vmem:[#allocation5 + $0x80] sm:$0xf]  ;;  %v3805_v51 = vor.u32 %v4386_v44, %v3802_v45  ;;  %v3778_v55 = vld [vmem:[#allocation5 + $0x30] sm:$0xf0] }
  0x9e   :  { %867 = vmatpush.bf16.msra.mxu0 %v3841_v48  ;;  %v3825_v2 = vor.u32 %v4395_v61, %v3824_v60  ;;  %v4382_v60 = vld [vmem:[#allocation5 + $0x2c] sm:$0xf]  ;;  %896 = vmatpush.bf16.msra.mxu2 %v3801_v50 }
  0x9f   :  { %4523 = vrcp.f32 %v4990_v63  ;;  %v311_v10 = vand.u32 2147483647, %v4990_v63  ;;  %v313_v25 = vand.u32 2147483648, %v4990_v63  ;;  %vm307_vm3 = vweird.f32 %v4990_v63 }
  0xa0   :  { %906 = vmatpush.bf16.msra.mxu3 %v3853_v59  ;;  %v4384_v59 = vld [vmem:[#allocation5 + $0x34] sm:$0xf0]  ;;  %v3789_v11 = vor.u32 %v4382_v60, %v3786_v5  ;;  %v5056_v50 = vpop.f32.mrf.mxu3 }
  0xa1   :  { %v174_v12 = vpop.f32.mrf.mxu1  ;;  %vm5014_vm2 = vcmp.eq.f32.partialorder %v311_v10, 8.507059e+37  ;;  %v4379_v10 = vld [vmem:[#allocation5 + $0xc] sm:$0xf0] }
  0xa2   :  { %v175_v16 = vadd.f32 %v174_v12, %v4993_v0  ;;  %v3837_v12 = vor.u32 %v4394_v8, %v3834_v9  ;;  %868 = vmatpush.bf16.msra.mxu0 %v3825_v2  ;;  %v314_v2 = vor.u32 1.1754944e-38, %v313_v25  ;;  %v3781_v8 = vor.u32 %v4381_v54, %v3778_v55  ;;  %v3760_v9 = vld [vmem:[#allocation5] sm:$0xf] }
  0xa3   :  { %v4522_v36 = vpop.eup %4521  ;;  %v3761_v24 = vor.u32 %v4379_v10, %v3760_v9 }
  0xa4   :  { %v3625_v28 = vmul.f32 -1.442695, %v175_v16  ;;  %v4999_v47 = vadd.f32 1.0, %v4522_v36  ;;  %v4391_v16 = vld [vmem:[#allocation5 + $0x6c] sm:$0xf0]  ;;  %907 = vmatpush.bf16.msra.mxu3 %v3837_v12 }
  0xa5   :  { %v4997_v42 = vpop.eup %4523  ;;  %v3809_v21 = vor.u32 %v4391_v16, %v3808_v15  ;;  %v4385_v36 = vld [vmem:[#allocation5 + $0x44] sm:$0xf]  ;;  %v3768_v15 = vld [vmem:[#allocation5 + $0x8] sm:$0xf] }
  0xa6   :  { %4525 = vpow2.f32 %v3625_v28  ;;  %v303_v57 = vmul.f32 %v4997_v42, %v4990_v63  ;;  %v3818_v28 = vld [vmem:[#allocation5 + $0x78] sm:$0xf0]  ;;  %vm308_vm4 = vweird.f32 %v4997_v42  ;;  %v3797_v43 = vor.u32 %v4385_v36, %v3794_v38  ;;  %v4377_v12 = vld [vmem:[#allocation5 + $0x4] sm:$0xf] }
  0xa7   :  { %4527 = vrcp.f32 %v4999_v47  ;;  %v3821_v33 = vor.u32 %v4390_v52, %v3818_v28  ;;  %869 = vmatpush.bf16.msra.mxu0 %v3809_v21  ;;  %vm5030_vm5 = vmor %vm307_vm3, %vm308_vm4  ;;  %v3785_v63 = vor.u32 %v4384_v59, %v3784_v58  ;;  %v4378_v21 = vld [vmem:[#allocation5 + $0xc] sm:$0xf]  ;;  %vm346_vm10 = vweird.f32 %v4999_v47 }
  0xa8   :  { %v304_v13 = vsub.f32 1.0, %v303_v57  ;;  %883 = vmatpush.bf16.msrb.mxu1 %v3797_v43  ;;  %v352_v32 = vand.u32 2147483648, %v4999_v47  ;;  %v350_v38 = vand.u32 2147483647, %v4999_v47 }
  0xa9   :  { %908 = vmatpush.bf16.msra.mxu3 %v3821_v33  ;;  %897 = vmatpush.bf16.msra.mxu2 %v3785_v63 }
  0xaa   :  { %v305_v31 = vmul.f32 %v4997_v42, %v304_v13  ;;  %v3762_v13 = vld [vmem:[#allocation5 + $0x10] sm:$0xf0]  ;;  %v353_v39 = vor.u32 1.1754944e-38, %v352_v32  ;;  %vm351_vm13 = vcmp.eq.f32.partialorder %v350_v38, 8.507059e+37  ;;  %v284_v32 = vld [vmem:[%s6509_s6] sm:$0xf] }
  0xab   :  { %870 = vmatpush.bf16.msra.mxu0 %v3793_v37  ;;  %v3765_v27 = vor.u32 %v4377_v12, %v3762_v13  ;;  %v5134_v38 = vperm.slane %v284_v32, 1 }
  0xac   :  { %v4526_v6 = vpop.eup %4525  ;;  %v306_v57 = vadd.f32 %v4997_v42, %v305_v31  ;;  %884 = vmatpush.bf16.msrb.mxu1 %v3781_v8 }
  0xad   :  { %v5003_v17 = vadd.f32 1.0, %v4526_v6  ;;  %v5018_v41 = vpop.eup %4527  ;;  %909 = vmatpush.bf16.msra.mxu3 %v3805_v51  ;;  %6730 = vst [vmem:[#allocation41_spill] sm:$0xff] %v5134_v38 }
  0xae   :  { %v342_v61 = vmul.f32 %v5018_v41, %v4999_v47  ;;  %v310_v19 = vsel %vm5030_vm5, %v4997_v42, %v306_v57  ;;  %v3769_v42 = vor.u32 %v4380_v20, %v3768_v15  ;;  %vm347_vm11 = vweird.f32 %v5018_v41  ;;  %v5052_v47 = vpop.f32.mrf.mxu1 }
  0xaf   :  { %4529 = vrcp.f32 %v5003_v17  ;;  %v330_v3 = vand.u32 2147483647, %v5003_v17  ;;  %v332_v7 = vand.u32 2147483648, %v5003_v17  ;;  %871 = vmatpush.bf16.msra.mxu0 %v3777_v4  ;;  %vm326_vm7 = vweird.f32 %v5003_v17  ;;  %vm348_vm12 = vmor %vm346_vm10, %vm347_vm11 }
  0xb0   :  { %4531 = vtanh.f32 %v204_v30  ;;  %v343_v23 = vsub.f32 1.0, %v342_v61  ;;  %v315_v28 = vsel %vm5014_vm2, %v314_v2, %v310_v19  ;;  %v3773_v30 = vor.u32 %v4378_v21, %v3770_v22  ;;  %885 = vmatpush.bf16.msrb.mxu1 %v3765_v27  ;;  %898 = vmatpush.bf16.msra.mxu2 %v3769_v42 }
  0xb1   :  { %v333_v52 = vor.u32 1.1754944e-38, %v332_v7  ;;  %910 = vmatpush.bf16.msra.mxu3 %v3789_v11  ;;  %vm331_vm9 = vcmp.eq.f32.partialorder %v330_v3, 8.507059e+37 }
  0xb2   :  { %v344_v33 = vmul.f32 %v5018_v41, %v343_v23 }
  0xb3   :  { %872 = vmatpush.bf16.msra.mxu0 %v3761_v24 }
  0xb4   :  { %v345_v37 = vadd.f32 %v5018_v41, %v344_v33 }
  0xb5   :  { %v4530_v48 = vpop.eup %4529  ;;  %911 = vmatpush.bf16.msra.mxu3 %v3773_v30 }
  0xb6   :  { %v322_v56 = vmul.f32 %v4530_v48, %v5003_v17  ;;  %vm327_vm6 = vweird.f32 %v4530_v48  ;;  %v4532_v25 = vpop.eup %4531  ;;  %v349_v40 = vsel %vm348_vm12, %v5018_v41, %v345_v37  ;;  %v5058_v41 = vpop.f32.mrf.mxu2  ;;  %v5132_v37 = vperm.slane %v284_v32, 0 }
  0xb7   :  { %vm328_vm8 = vmor %vm326_vm7, %vm327_vm6  ;;  %v357_v17 = vmul.f32 %v4532_v25, %v315_v28  ;;  %v354_v44 = vsel %vm351_vm13, %v353_v39, %v349_v40  ;;  %v179_v51 = vpop.f32.mrf.mxu1 }
  0xb8   :  { %v323_v6 = vsub.f32 1.0, %v322_v56  ;;  %v5061_v53 = vadd.f32 %v179_v51, %v4993_v0  ;;  %v237_v56 = vpop.f32.mrf.mxu3  ;;  %6729 = vst [vmem:[#allocation40_spill] sm:$0xff] %v5132_v37  ;;  %v5138_v51 = vperm.slane %v284_v32, 3 }
  0xb9   :  { %v5067_v57 = vadd.f32 %v237_v56, %v4978_v29 }
  0xba   :  { %v324_v16 = vmul.f32 %v4530_v48, %v323_v6  ;;  %6707 = vst [vmem:[#allocation18_spill] sm:$0xff] %v5061_v53 }
  0xbb   :  { %6709 = vst [vmem:[#allocation20_spill] sm:$0xff] %v5067_v57 }
  0xbc   :  { %v325_v26 = vadd.f32 %v4530_v48, %v324_v16  ;;  %6731 = vst [vmem:[#allocation42_spill] sm:$0xff] %v5138_v51 }
  0xbe   :  { %v329_v31 = vsel %vm328_vm8, %v4530_v48, %v325_v26  ;;  %v5054_v48 = vpop.f32.mrf.mxu0  ;;  %v208_v58 = vpop.f32.mrf.mxu2 }
  0xbf   :  { %v334_v34 = vsel %vm331_vm9, %v333_v52, %v329_v31  ;;  %v181_v59 = vpop.f32.mrf.mxu1  ;;  %v5070_v60 = vadd.f32 %v208_v58, %v5008_v14 }
  0xc0   :  { %v356_v35 = vmul.f32 0.0, %v334_v34  ;;  %v5073_v61 = vadd.f32 %v181_v59, %v4993_v0  ;;  %v239_v3 = vpop.f32.mrf.mxu3 }
  0xc1   :  { %6710 = vst [vmem:[#allocation21_spill] sm:$0xff] %v5070_v60  ;;  %v5079_v4 = vadd.f32 %v239_v3, %v4978_v29 }
  0xc2   :  { %v5046_v36 = vadd.f32 %v357_v17, %v356_v35  ;;  %6711 = vst [vmem:[#allocation22_spill] sm:$0xff] %v5073_v61 }
  0xc3   :  { %6713 = vst [vmem:[#allocation24_spill] sm:$0xff] %v5079_v4 }
  0xc4   :  { %4533 = vtanh.f32 %v5046_v36 }
  0xc6   :  { %v150_v54 = vpop.f32.mrf.mxu0  ;;  %v210_v5 = vpop.f32.mrf.mxu2 }
  0xc7   :  { %v5064_v55 = vadd.f32 %v150_v54, %v4970_v62  ;;  %v5082_v6 = vadd.f32 %v210_v5, %v5008_v14  ;;  %v184_v7 = vpop.f32.mrf.mxu1 }
  0xc8   :  { %v5085_v8 = vadd.f32 %v184_v7, %v4993_v0  ;;  %v242_v63 = vpop.f32.mrf.mxu3 }
  0xc9   :  { %6708 = vst [vmem:[#allocation19_spill] sm:$0xff] %v5064_v55  ;;  %v5094_v11 = vadd.f32 %v242_v63, %v4978_v29 }
  0xca   :  { %v4534_v43 = vpop.eup %4533  ;;  %6714 = vst [vmem:[#allocation25_spill] sm:$0xff] %v5082_v6 }
  0xcb   :  { %v360_v45 = vmul.f32 %v4534_v43, %v354_v44  ;;  %6715 = vst [vmem:[#allocation26_spill] sm:$0xff] %v5085_v8 }
  0xcc   :  { %6717 = vst [vmem:[#allocation28_spill] sm:$0xff] %v5094_v11 }
  0xcd   :  { %v361_v46 = vpack.c.bf16 %v360_v45, %v360_v45 }
  0xce   :  { %v152_v1 = vpop.f32.mrf.mxu0  ;;  %v213_v12 = vpop.f32.mrf.mxu2 }
  0xcf   :  { %562 = vmatmul.bf16.vlgmr.msrb.gmra.mxu0 %v361_v46  ;;  %575 = vmatmul.bf16.vlgmr.msra.gmra.mxu1 %v361_v46  ;;  %v5076_v2 = vadd.f32 %v152_v1, %v4970_v62  ;;  %v186_v13 = vpop.f32.mrf.mxu1  ;;  %v5097_v15 = vadd.f32 %v213_v12, %v5008_v14  ;;  %v5141_v12 = vperm.slane %v284_v32, 2 }
  0xd0   :  { %588 = vmatmul.bf16.vlgmr.msrb.gmra.mxu2 %v361_v46  ;;  %601 = vmatmul.bf16.vlgmr.msrb.gmra.mxu3 %v361_v46  ;;  %v5100_v16 = vadd.f32 %v186_v13, %v4993_v0  ;;  %v244_v21 = vpop.f32.mrf.mxu3  ;;  %v148_v13 = vadd.f32 %v5054_v48, %v4970_v62 }
  0xd1   :  { %6712 = vst [vmem:[#allocation23_spill] sm:$0xff] %v5076_v2  ;;  %v5106_v22 = vadd.f32 %v244_v21, %v4978_v29 }
  0xd2   :  { %6718 = vst [vmem:[#allocation29_spill] sm:$0xff] %v5097_v15 }
  0xd3   :  { %6719 = vst [vmem:[#allocation30_spill] sm:$0xff] %v5100_v16 }
  0xd4   :  { %6721 = vst [vmem:[#allocation32_spill] sm:$0xff] %v5106_v22 }
  0xd5   :  { %6732 = vst [vmem:[#allocation43_spill] sm:$0xff] %v5141_v12 }
  0xd6   :  { %v155_v9 = vpop.f32.mrf.mxu0  ;;  %v215_v23 = vpop.f32.mrf.mxu2 }
  0xd7   :  { %v5091_v10 = vadd.f32 %v155_v9, %v4970_v62  ;;  %v189_v24 = vpop.f32.mrf.mxu1  ;;  %v5109_v25 = vadd.f32 %v215_v23, %v5008_v14 }
  0xd8   :  { %v5112_v26 = vadd.f32 %v189_v24, %v4993_v0  ;;  %v247_v28 = vpop.f32.mrf.mxu3 }
  0xd9   :  { %6716 = vst [vmem:[#allocation27_spill] sm:$0xff] %v5091_v10  ;;  %v5121_v31 = vadd.f32 %v247_v28, %v4978_v29 }
  0xda   :  { %6722 = vst [vmem:[#allocation33_spill] sm:$0xff] %v5109_v25 }
  0xdb   :  { %6723 = vst [vmem:[#allocation34_spill] sm:$0xff] %v5112_v26 }
  0xdc   :  { %6726 = vst [vmem:[#allocation37_spill] sm:$0xff] %v5121_v31 }
  0xde   :  { %v157_v19 = vpop.f32.mrf.mxu0  ;;  %v218_v27 = vpop.f32.mrf.mxu2 }
  0xdf   :  { %873 = vmatmul.bf16.vlgmr.msra.gmra.mxu0 %v361_v46  ;;  %886 = vmatmul.bf16.vlgmr.msrb.gmra.mxu1 %v361_v46  ;;  %v5103_v20 = vadd.f32 %v157_v19, %v4970_v62  ;;  %v191_v52 = vpop.f32.mrf.mxu1  ;;  %v5115_v42 = vadd.f32 %v218_v27, %v5008_v14  ;;  %v177_v19 = vadd.f32 %v5052_v47, %v4993_v0 }
  0xe0   :  { %899 = vmatmul.bf16.vlgmr.msra.gmra.mxu2 %v361_v46  ;;  %912 = vmatmul.bf16.vlgmr.msra.gmra.mxu3 %v361_v46  ;;  %v5118_v30 = vadd.f32 %v191_v52, %v4993_v0  ;;  %v249_v34 = vpop.f32.mrf.mxu3  ;;  %v235_v47 = vadd.f32 %v5056_v50, %v4978_v29 }
  0xe1   :  { %6720 = vst [vmem:[#allocation31_spill] sm:$0xff] %v5103_v20  ;;  %v5127_v17 = vadd.f32 %v249_v34, %v4978_v29 }
  0xe2   :  { %6724 = vst [vmem:[#allocation35_spill] sm:$0xff] %v5115_v42 }
  0xe3   :  { %6725 = vst [vmem:[#allocation36_spill] sm:$0xff] %v5118_v30 }
  0xe4   :  { %6728 = vst [vmem:[#allocation39_spill] sm:$0xff] %v5127_v17 }
  0xe6   :  { %v220_v33 = vpop.f32.mrf.mxu2 }
  0xe7   :  { %v5124_v35 = vadd.f32 %v220_v33, %v5008_v14 }
  0xe9   :  { %6727 = vst [vmem:[#allocation38_spill] sm:$0xff] %v5124_v35 }
 0x14c   :  { %v563_v39 = vpop.f32.mrf.mxu0  ;;  %v576_v40 = vpop.f32.mrf.mxu1 }
 0x14d   :  { %v564_v43 = vadd.f32 %v563_v39, %v5132_v37  ;;  %v577_v44 = vadd.f32 %v576_v40, %v5134_v38 }
 0x14f   :  { %v3755_v45 = vmul.f32 -1.442695, %v564_v43  ;;  %v3756_v46 = vmul.f32 -1.442695, %v577_v44 }
 0x151   :  { %4535 = vpow2.f32 %v3755_v45 }
 0x152   :  { %4537 = vpow2.f32 %v3756_v46 }
 0x153   :  { %v589_v54 = vpop.f32.mrf.mxu2  ;;  %v602_v56 = vpop.f32.mrf.mxu3 }
 0x154   :  { %v603_v58 = vadd.f32 %v602_v56, %v5138_v51  ;;  %v565_v59 = vpop.f32.mrf.mxu0  ;;  %v578_v1 = vpop.f32.mrf.mxu1  ;;  %v590_v34 = vadd.f32 %v589_v54, %v5141_v12 }
 0x156   :  { %v3757_v3 = vmul.f32 -1.442695, %v603_v58 }
 0x157   :  { %v4536_v5 = vpop.eup %4535 }
 0x158   :  { %v4538_v7 = vpop.eup %4537  ;;  %v609_v9 = vadd.f32 1.0, %v4536_v5  ;;  %4539 = vpow2.f32 %v3757_v3 }
 0x159   :  { %v628_v63 = vadd.f32 1.0, %v4538_v7 }
 0x15a   :  { %4541 = vrcp.f32 %v609_v9  ;;  %v619_v45 = vand.u32 2147483647, %v609_v9  ;;  %v621_v59 = vand.u32 2147483648, %v609_v9  ;;  %vm615_vm1 = vweird.f32 %v609_v9 }
 0x15b   :  { %4543 = vrcp.f32 %v628_v63  ;;  %v591_v21 = vpop.f32.mrf.mxu2  ;;  %v604_v23 = vpop.f32.mrf.mxu3  ;;  %v640_v58 = vand.u32 2147483648, %v628_v63  ;;  %v638_v7 = vand.u32 2147483647, %v628_v63  ;;  %vm634_vm0 = vweird.f32 %v628_v63 }
 0x15c   :  { %v874_v24 = vpop.f32.mrf.mxu0  ;;  %v887_v27 = vpop.f32.mrf.mxu1  ;;  %vm620_vm3 = vcmp.eq.f32.partialorder %v619_v45, 8.507059e+37 }
 0x15d   :  { %v917_v52 = vadd.f32 %v874_v24, %v148_v13  ;;  %v918_v28 = vadd.f32 %v887_v27, %v177_v19  ;;  %v622_v24 = vor.u32 1.1754944e-38, %v621_v59  ;;  %vm639_vm5 = vcmp.eq.f32.partialorder %v638_v7, 8.507059e+37 }
 0x15e   :  { %v4540_v33 = vpop.eup %4539 }
 0x15f   :  { %v5148_v39 = vadd.f32 1.0, %v4540_v33  ;;  %v3886_v32 = vmul.f32 -1.442695, %v917_v52  ;;  %v3887_v43 = vmul.f32 -1.442695, %v918_v28  ;;  %v641_v33 = vor.u32 1.1754944e-38, %v640_v58 }
 0x160   :  { %v4542_v40 = vpop.eup %4541 }
 0x161   :  { %v4544_v44 = vpop.eup %4543  ;;  %v611_v62 = vmul.f32 %v4542_v40, %v609_v9  ;;  %4545 = vrcp.f32 %v5148_v39  ;;  %vm616_vm14 = vweird.f32 %v4542_v40  ;;  %vm654_vm7 = vweird.f32 %v5148_v39 }
 0x162   :  { %v630_v0 = vmul.f32 %v4544_v44, %v628_v63  ;;  %4547 = vtanh.f32 %v590_v34  ;;  %vm635_vm15 = vweird.f32 %v4544_v44  ;;  %vm617_vm2 = vmor %vm615_vm1, %vm616_vm14 }
 0x163   :  { %v612_v48 = vsub.f32 1.0, %v611_v62  ;;  %4549 = vpow2.f32 %v3886_v32  ;;  %v900_v46 = vpop.f32.mrf.mxu2  ;;  %v913_v56 = vpop.f32.mrf.mxu3  ;;  %vm636_vm4 = vmor %vm634_vm0, %vm635_vm15 }
 0x164   :  { %v631_v54 = vsub.f32 1.0, %v630_v0  ;;  %4551 = vpow2.f32 %v3887_v43  ;;  %v876_v1 = vpop.f32.mrf.mxu0  ;;  %v889_v3 = vpop.f32.mrf.mxu1  ;;  %v920_v13 = vadd.f32 %v913_v56, %v235_v47 }
 0x165   :  { %v613_v5 = vmul.f32 %v4542_v40, %v612_v48  ;;  %v206_v1 = vadd.f32 %v5058_v41, %v5008_v14 }
 0x166   :  { %v632_v19 = vmul.f32 %v4544_v44, %v631_v54  ;;  %v3888_v50 = vmul.f32 -1.442695, %v920_v13 }
 0x167   :  { %v4546_v21 = vpop.eup %4545  ;;  %v614_v29 = vadd.f32 %v4542_v40, %v613_v5  ;;  %v658_v5 = vand.u32 2147483647, %v5148_v39  ;;  %v919_v7 = vadd.f32 %v900_v46, %v206_v1 }
 0x168   :  { %v4548_v23 = vpop.eup %4547  ;;  %v633_v27 = vadd.f32 %v4544_v44, %v632_v19  ;;  %v650_v52 = vmul.f32 %v4546_v21, %v5148_v39  ;;  %4553 = vpow2.f32 %v3888_v50  ;;  %vm655_vm6 = vweird.f32 %v4546_v21 }
 0x169   :  { %v4550_v28 = vpop.eup %4549  ;;  %v618_v34 = vsel %vm617_vm2, %v4542_v40, %v614_v29  ;;  %vm656_vm8 = vmor %vm654_vm7, %vm655_vm6  ;;  %vm659_vm9 = vcmp.eq.f32.partialorder %v658_v5, 8.507059e+37 }
 0x16a   :  { %v4552_v32 = vpop.eup %4551  ;;  %v623_v43 = vsel %vm620_vm3, %v622_v24, %v618_v34  ;;  %v637_v63 = vsel %vm636_vm4, %v4544_v44, %v633_v27  ;;  %v651_v62 = vsub.f32 1.0, %v650_v52  ;;  %v924_v9 = vadd.f32 1.0, %v4550_v28 }
 0x16b   :  { %v642_v0 = vsel %vm639_vm5, %v641_v33, %v637_v63  ;;  %v665_v47 = vmul.f32 %v4548_v23, %v623_v43  ;;  %v943_v48 = vadd.f32 1.0, %v4552_v32  ;;  %v902_v45 = vpop.f32.mrf.mxu2  ;;  %v915_v56 = vpop.f32.mrf.mxu3  ;;  %v660_v44 = vand.u32 2147483648, %v5148_v39 }
 0x16c   :  { %v664_v54 = vmul.f32 0.0, %v642_v0  ;;  %v652_v59 = vmul.f32 %v4546_v21, %v651_v62  ;;  %4555 = vrcp.f32 %v924_v9  ;;  %v936_v34 = vand.u32 2147483648, %v924_v9 }
 0x16d   :  { %4557 = vrcp.f32 %v943_v48  ;;  %v661_v24 = vor.u32 1.1754944e-38, %v660_v44  ;;  %v955_v33 = vand.u32 2147483648, %v943_v48  ;;  %v934_v46 = vand.u32 2147483647, %v924_v9 }
 0x16e   :  { %v5155_v58 = vadd.f32 %v665_v47, %v664_v54  ;;  %v4554_v40 = vpop.eup %4553  ;;  %v653_v3 = vadd.f32 %v4546_v21, %v652_v59  ;;  %vm930_vm12 = vweird.f32 %v924_v9  ;;  %vm949_vm13 = vweird.f32 %v943_v48 }
 0x16f   :  { %v963_v13 = vadd.f32 1.0, %v4554_v40  ;;  %v937_v0 = vor.u32 1.1754944e-38, %v936_v34  ;;  %v956_v54 = vor.u32 1.1754944e-38, %v955_v33  ;;  %vm935_vm0 = vcmp.eq.f32.partialorder %v934_v46, 8.507059e+37 }
 0x170   :  { %6733 = vst [vmem:[#allocation44_spill] sm:$0xff] %v5155_v58  ;;  %4559 = vtanh.f32 %v5155_v58  ;;  %v657_v50 = vsel %vm656_vm8, %v4546_v21, %v653_v3  ;;  %v953_v21 = vand.u32 2147483647, %v943_v48 }
 0x171   :  { %4561 = vrcp.f32 %v963_v13  ;;  %v662_v52 = vsel %vm659_vm9, %v661_v24, %v657_v50  ;;  %vm969_vm3 = vweird.f32 %v963_v13  ;;  %v973_v24 = vand.u32 2147483647, %v963_v13 }
 0x172   :  { %v4556_v19 = vpop.eup %4555  ;;  %4563 = vtanh.f32 %v919_v7  ;;  %vm954_vm1 = vcmp.eq.f32.partialorder %v953_v21, 8.507059e+37 }
 0x173   :  { %v4558_v29 = vpop.eup %4557  ;;  %v926_v23 = vmul.f32 %v4556_v19, %v924_v9  ;;  %vm931_vm10 = vweird.f32 %v4556_v19  ;;  %vm974_vm5 = vcmp.eq.f32.partialorder %v973_v24, 8.507059e+37 }
 0x174   :  { %v945_v14 = vmul.f32 %v4558_v29, %v943_v48  ;;  %vm950_vm11 = vweird.f32 %v4558_v29  ;;  %vm932_vm14 = vmor %vm930_vm12, %vm931_vm10 }
 0x175   :  { %v927_v41 = vsub.f32 1.0, %v926_v23  ;;  %vm951_vm15 = vmor %vm949_vm13, %vm950_vm11  ;;  %v975_v23 = vand.u32 2147483648, %v963_v13 }
 0x176   :  { %v4560_v27 = vpop.eup %4559  ;;  %v946_v28 = vsub.f32 1.0, %v945_v14 }
 0x177   :  { %v5163_v32 = vmul.f32 %v4560_v27, %v662_v52  ;;  %v928_v39 = vmul.f32 %v4556_v19, %v927_v41  ;;  %v4562_v63 = vpop.eup %4561  ;;  %v976_v14 = vor.u32 1.1754944e-38, %v975_v23 }
 0x178   :  { %v947_v43 = vmul.f32 %v4558_v29, %v946_v28  ;;  %v965_v45 = vmul.f32 %v4562_v63, %v963_v13  ;;  %v4564_v56 = vpop.eup %4563  ;;  %vm970_vm2 = vweird.f32 %v4562_v63 }
 0x179   :  { %v929_v62 = vadd.f32 %v4556_v19, %v928_v39  ;;  %vm971_vm4 = vmor %vm969_vm3, %vm970_vm2 }
 0x17a   :  { %v948_v47 = vadd.f32 %v4558_v29, %v947_v43  ;;  %v966_v3 = vsub.f32 1.0, %v965_v45 }
 0x17b   :  { %v933_v59 = vsel %vm932_vm14, %v4556_v19, %v929_v62 }
 0x17c   :  { %v938_v40 = vsel %vm935_vm0, %v937_v0, %v933_v59  ;;  %v952_v1 = vsel %vm951_vm15, %v4558_v29, %v948_v47  ;;  %v967_v50 = vmul.f32 %v4562_v63, %v966_v3 }
 0x17d   :  { %v957_v44 = vsel %vm954_vm1, %v956_v54, %v952_v1  ;;  %v980_v5 = vmul.f32 %v4564_v56, %v938_v40 }
 0x17e   :  { %v979_v7 = vmul.f32 %v957_v44, %v5046_v36  ;;  %v968_v48 = vadd.f32 %v4562_v63, %v967_v50 }
 0x180   :  { %v5166_v9 = vadd.f32 %v980_v5, %v979_v7  ;;  %v972_v19 = vsel %vm971_vm4, %v4562_v63, %v968_v48 }
 0x181   :  { %v977_v41 = vsel %vm974_vm5, %v976_v14, %v972_v19 }
 0x182   :  { %6734 = vst [vmem:[#allocation45_spill] sm:$0xff] %v5166_v9  ;;  %4565 = vtanh.f32 %v5166_v9 }
 0x188   :  { %v4566_v29 = vpop.eup %4565 }
 0x189   :  { %v5169_v27 = vmul.f32 %v4566_v29, %v977_v41 }
 0x18a   :  { %4852 = dma.done.wait [#allocation4], 4096 }
 0x18b   :  { %4853 = vsyncadd [#allocation4], 4294963200  ;;  %v4003_v36 = vld [vmem:[#allocation7 + $0xe0] sm:$0xf]  ;;  %v4439_v52 = vld [vmem:[#allocation7 + $0xec] sm:$0xf0] }
 0x18c   :  { %v4437_v28 = vld [vmem:[#allocation7 + $0xe4] sm:$0xf]  ;;  %v5171_v33 = vor.u32 %v4439_v52, %v4003_v36  ;;  %v4005_v34 = vld [vmem:[#allocation7 + $0xf0] sm:$0xf0]  ;;  %v4438_v39 = vld [vmem:[#allocation7 + $0xec] sm:$0xf] }
 0x18d   :  { %v4013_v46 = vld [vmem:[#allocation7 + $0xf8] sm:$0xf0]  ;;  %v5173_v43 = vor.u32 %v4437_v28, %v4005_v34  ;;  %v3987_v21 = vld [vmem:[#allocation7 + $0xc0] sm:$0xf]  ;;  %v4435_v63 = vld [vmem:[#allocation7 + $0xcc] sm:$0xf0] }
 0x18e   :  { %6735 = vst [vmem:[#allocation46_spill] sm:$0xff] %v5171_v33  ;;  %v5175_v13 = vor.u32 %v4438_v39, %v4013_v46  ;;  %v4433_v62 = vld [vmem:[#allocation7 + $0xc4] sm:$0xf]  ;;  %1181 = vmatpush.bf16.msrb.mxu0 %v5171_v33  ;;  %v5178_v0 = vor.u32 %v4435_v63, %v3987_v21  ;;  %v3989_v47 = vld [vmem:[#allocation7 + $0xd0] sm:$0xf0] }
 0x18f   :  { %6736 = vst [vmem:[#allocation47_spill] sm:$0xff] %v5173_v43  ;;  %v4434_v45 = vld [vmem:[#allocation7 + $0xcc] sm:$0xf]  ;;  %v3997_v56 = vld [vmem:[#allocation7 + $0xd8] sm:$0xf0]  ;;  %1194 = vmatpush.bf16.msra.mxu1 %v5173_v43  ;;  %v5182_v54 = vor.u32 %v4433_v62, %v3989_v47 }
 0x190   :  { %6737 = vst [vmem:[#allocation48_spill] sm:$0xff] %v5175_v13  ;;  %1220 = vmatpush.bf16.msrb.mxu3 %v5175_v13  ;;  %v5184_v59 = vor.u32 %v4434_v45, %v3997_v56  ;;  %v4011_v40 = vld [vmem:[#allocation7 + $0xe8] sm:$0xf]  ;;  %v4440_v1 = vld [vmem:[#allocation7 + $0xf4] sm:$0xf0] }
 0x191   :  { %6738 = vst [vmem:[#allocation49_spill] sm:$0xff] %v5178_v0  ;;  %v3971_v3 = vld [vmem:[#allocation7 + $0xa0] sm:$0xf]  ;;  %v5186_v44 = vor.u32 %v4440_v1, %v4011_v40  ;;  %v4431_v5 = vld [vmem:[#allocation7 + $0xac] sm:$0xf0] }
 0x192   :  { %6739 = vst [vmem:[#allocation50_spill] sm:$0xff] %v5182_v54  ;;  %v4429_v7 = vld [vmem:[#allocation7 + $0xa4] sm:$0xf]  ;;  %v3973_v50 = vld [vmem:[#allocation7 + $0xb0] sm:$0xf0]  ;;  %1182 = vmatpush.bf16.msrb.mxu0 %v5178_v0  ;;  %v5190_v19 = vor.u32 %v4431_v5, %v3971_v3 }
 0x193   :  { %6740 = vst [vmem:[#allocation51_spill] sm:$0xff] %v5184_v59  ;;  %v4430_v48 = vld [vmem:[#allocation7 + $0xac] sm:$0xf]  ;;  %v3981_v23 = vld [vmem:[#allocation7 + $0xb8] sm:$0xf0]  ;;  %1207 = vmatpush.bf16.msrb.mxu2 %v5186_v44  ;;  %1195 = vmatpush.bf16.msra.mxu1 %v5182_v54  ;;  %v5194_v36 = vor.u32 %v4429_v7, %v3973_v50 }
 0x194   :  { %6741 = vst [vmem:[#allocation52_spill] sm:$0xff] %v5186_v44  ;;  %v3995_v24 = vld [vmem:[#allocation7 + $0xc8] sm:$0xf]  ;;  %v4436_v14 = vld [vmem:[#allocation7 + $0xd4] sm:$0xf0]  ;;  %1221 = vmatpush.bf16.msrb.mxu3 %v5184_v59  ;;  %v5196_v52 = vor.u32 %v4430_v48, %v3981_v23 }
 0x195   :  { %6742 = vst [vmem:[#allocation53_spill] sm:$0xff] %v5190_v19  ;;  %v3955_v29 = vld [vmem:[#allocation7 + $0x80] sm:$0xf]  ;;  %v4427_v41 = vld [vmem:[#allocation7 + $0x8c] sm:$0xf0]  ;;  %v5198_v28 = vor.u32 %v4436_v14, %v3995_v24 }
 0x196   :  { %6743 = vst [vmem:[#allocation54_spill] sm:$0xff] %v5194_v36  ;;  %v4425_v34 = vld [vmem:[#allocation7 + $0x84] sm:$0xf]  ;;  %v3957_v39 = vld [vmem:[#allocation7 + $0x90] sm:$0xf0]  ;;  %1183 = vmatpush.bf16.msrb.mxu0 %v5190_v19  ;;  %v5202_v47 = vor.u32 %v4427_v41, %v3955_v29 }
 0x197   :  { %6744 = vst [vmem:[#allocation55_spill] sm:$0xff] %v5196_v52  ;;  %v4426_v46 = vld [vmem:[#allocation7 + $0x8c] sm:$0xf]  ;;  %v3965_v21 = vld [vmem:[#allocation7 + $0x98] sm:$0xf0]  ;;  %1208 = vmatpush.bf16.msrb.mxu2 %v5198_v28  ;;  %1196 = vmatpush.bf16.msra.mxu1 %v5194_v36  ;;  %v5208_v1 = vor.u32 %v4425_v34, %v3957_v39 }
 0x198   :  { %6745 = vst [vmem:[#allocation56_spill] sm:$0xff] %v5198_v28  ;;  %v3979_v63 = vld [vmem:[#allocation7 + $0xa8] sm:$0xf]  ;;  %v4432_v62 = vld [vmem:[#allocation7 + $0xb4] sm:$0xf0]  ;;  %1222 = vmatpush.bf16.msrb.mxu3 %v5196_v52  ;;  %v5210_v3 = vor.u32 %v4426_v46, %v3965_v21 }
 0x199   :  { %6746 = vst [vmem:[#allocation57_spill] sm:$0xff] %v5202_v47  ;;  %v5204_v45 = vor.u32 %v4432_v62, %v3979_v63  ;;  %v3939_v56 = vld [vmem:[#allocation7 + $0x60] sm:$0xf]  ;;  %v4423_v40 = vld [vmem:[#allocation7 + $0x6c] sm:$0xf0] }
 0x19a   :  { %6748 = vst [vmem:[#allocation59_spill] sm:$0xff] %v5208_v1  ;;  %v4421_v5 = vld [vmem:[#allocation7 + $0x64] sm:$0xf]  ;;  %v3963_v7 = vld [vmem:[#allocation7 + $0x88] sm:$0xf]  ;;  %1184 = vmatpush.bf16.msrb.mxu0 %v5202_v47  ;;  %v5214_v14 = vor.u32 %v4423_v40, %v3939_v56 }
 0x19b   :  { %6747 = vst [vmem:[#allocation58_spill] sm:$0xff] %v5204_v45  ;;  %v4428_v50 = vld [vmem:[#allocation7 + $0x94] sm:$0xf0]  ;;  %v3941_v48 = vld [vmem:[#allocation7 + $0x70] sm:$0xf0]  ;;  %1209 = vmatpush.bf16.msrb.mxu2 %v5204_v45  ;;  %1197 = vmatpush.bf16.msra.mxu1 %v5208_v1 }
 0x19c   :  { %6749 = vst [vmem:[#allocation60_spill] sm:$0xff] %v5210_v3  ;;  %v4422_v23 = vld [vmem:[#allocation7 + $0x6c] sm:$0xf]  ;;  %v3949_v24 = vld [vmem:[#allocation7 + $0x78] sm:$0xf0]  ;;  %v5216_v29 = vor.u32 %v4428_v50, %v3963_v7  ;;  %1223 = vmatpush.bf16.msrb.mxu3 %v5210_v3  ;;  %v5220_v34 = vor.u32 %v4421_v5, %v3941_v48 }
 0x19d   :  { %6750 = vst [vmem:[#allocation61_spill] sm:$0xff] %v5214_v14  ;;  %v3923_v41 = vld [vmem:[#allocation7 + $0x40] sm:$0xf]  ;;  %v4419_v63 = vld [vmem:[#allocation7 + $0x4c] sm:$0xf0]  ;;  %v5222_v39 = vor.u32 %v4422_v23, %v3949_v24 }
 0x19e   :  { %6751 = vst [vmem:[#allocation62_spill] sm:$0xff] %v5216_v29  ;;  %v4417_v46 = vld [vmem:[#allocation7 + $0x44] sm:$0xf]  ;;  %v3947_v21 = vld [vmem:[#allocation7 + $0x68] sm:$0xf]  ;;  %1185 = vmatpush.bf16.msrb.mxu0 %v5214_v14  ;;  %v5226_v56 = vor.u32 %v4419_v63, %v3923_v41 }
 0x19f   :  { %6752 = vst [vmem:[#allocation63_spill] sm:$0xff] %v5220_v34  ;;  %v4424_v62 = vld [vmem:[#allocation7 + $0x74] sm:$0xf0]  ;;  %v3925_v35 = vld [vmem:[#allocation7 + $0x50] sm:$0xf0]  ;;  %1210 = vmatpush.bf16.msrb.mxu2 %v5216_v29  ;;  %1198 = vmatpush.bf16.msra.mxu1 %v5220_v34 }
 0x1a0   :  { %6753 = vst [vmem:[#allocation64_spill] sm:$0xff] %v5222_v39  ;;  %v4418_v17 = vld [vmem:[#allocation7 + $0x4c] sm:$0xf]  ;;  %v3933_v30 = vld [vmem:[#allocation7 + $0x58] sm:$0xf0]  ;;  %v5228_v40 = vor.u32 %v4424_v62, %v3947_v21  ;;  %1224 = vmatpush.bf16.msrb.mxu3 %v5222_v39  ;;  %v5232_v5 = vor.u32 %v4417_v46, %v3925_v35 }
 0x1a1   :  { %6754 = vst [vmem:[#allocation65_spill] sm:$0xff] %v5226_v56  ;;  %v3907_v7 = vld [vmem:[#allocation7 + $0x20] sm:$0xf]  ;;  %v4415_v50 = vld [vmem:[#allocation7 + $0x2c] sm:$0xf0]  ;;  %v5234_v48 = vor.u32 %v4418_v17, %v3933_v30 }
 0x1a2   :  { %6755 = vst [vmem:[#allocation66_spill] sm:$0xff] %v5228_v40  ;;  %v4413_v23 = vld [vmem:[#allocation7 + $0x24] sm:$0xf]  ;;  %v3931_v24 = vld [vmem:[#allocation7 + $0x48] sm:$0xf]  ;;  %1186 = vmatpush.bf16.msrb.mxu0 %v5226_v56  ;;  %v5238_v41 = vor.u32 %v4415_v50, %v3907_v7 }
 0x1a3   :  { %6756 = vst [vmem:[#allocation67_spill] sm:$0xff] %v5232_v5  ;;  %v4420_v49 = vld [vmem:[#allocation7 + $0x54] sm:$0xf0]  ;;  %v3909_v42 = vld [vmem:[#allocation7 + $0x30] sm:$0xf0]  ;;  %1211 = vmatpush.bf16.msrb.mxu2 %v5228_v40  ;;  %1199 = vmatpush.bf16.msra.mxu1 %v5232_v5 }
 0x1a4   :  { %6757 = vst [vmem:[#allocation68_spill] sm:$0xff] %v5234_v48  ;;  %v4414_v31 = vld [vmem:[#allocation7 + $0x2c] sm:$0xf]  ;;  %v3917_v26 = vld [vmem:[#allocation7 + $0x38] sm:$0xf0]  ;;  %v5240_v63 = vor.u32 %v4420_v49, %v3931_v24  ;;  %1225 = vmatpush.bf16.msrb.mxu3 %v5234_v48  ;;  %v5244_v30 = vor.u32 %v4413_v23, %v3909_v42 }
 0x1a5   :  { %6758 = vst [vmem:[#allocation69_spill] sm:$0xff] %v5238_v41  ;;  %v3891_v21 = vld [vmem:[#allocation7] sm:$0xf]  ;;  %v4411_v62 = vld [vmem:[#allocation7 + $0xc] sm:$0xf0]  ;;  %v5246_v17 = vor.u32 %v4414_v31, %v3917_v26 }
 0x1a6   :  { %6759 = vst [vmem:[#allocation70_spill] sm:$0xff] %v5240_v63  ;;  %v4409_v35 = vld [vmem:[#allocation7 + $0x4] sm:$0xf]  ;;  %v3893_v46 = vld [vmem:[#allocation7 + $0x10] sm:$0xf0]  ;;  %1187 = vmatpush.bf16.msrb.mxu0 %v5238_v41  ;;  %v5250_v20 = vor.u32 %v4411_v62, %v3891_v21 }
 0x1a7   :  { %6760 = vst [vmem:[#allocation71_spill] sm:$0xff] %v5244_v30  ;;  %v3915_v18 = vld [vmem:[#allocation7 + $0x28] sm:$0xf]  ;;  %v4416_v25 = vld [vmem:[#allocation7 + $0x34] sm:$0xf0]  ;;  %1212 = vmatpush.bf16.msrb.mxu2 %v5240_v63  ;;  %1200 = vmatpush.bf16.msra.mxu1 %v5244_v30  ;;  %v5256_v26 = vor.u32 %v4409_v35, %v3893_v46  ;;  %v5268_v35 = vpack.c.bf16 %v5169_v27, %v5169_v27 }
 0x1a8   :  { %6761 = vst [vmem:[#allocation72_spill] sm:$0xff] %v5246_v17  ;;  %v4410_v22 = vld [vmem:[#allocation7 + $0xc] sm:$0xf]  ;;  %v3901_v16 = vld [vmem:[#allocation7 + $0x18] sm:$0xf0]  ;;  %v5252_v23 = vor.u32 %v4416_v25, %v3915_v18  ;;  %1226 = vmatpush.bf16.msrb.mxu3 %v5246_v17 }
 0x1a9   :  { %v4131_v7 = vld [vmem:[#allocation3 + $0xe0] sm:$0xf]  ;;  %v4471_v50 = vld [vmem:[#allocation3 + $0xec] sm:$0xf0]  ;;  %v4469_v49 = vld [vmem:[#allocation3 + $0xe4] sm:$0xf]  ;;  %v5258_v31 = vor.u32 %v4410_v22, %v3901_v16 }
 0x1aa   :  { %v4133_v24 = vld [vmem:[#allocation3 + $0xf0] sm:$0xf0]  ;;  %6762 = vst [vmem:[#allocation73_spill] sm:$0xff] %v5250_v20  ;;  %v4470_v15 = vld [vmem:[#allocation3 + $0xec] sm:$0xf]  ;;  %v5260_v10 = vor.u32 %v4471_v50, %v4131_v7  ;;  %1188 = vmatpush.bf16.msrb.mxu0 %v5250_v20 }
 0x1ab   :  { %v4141_v42 = vld [vmem:[#allocation3 + $0xf8] sm:$0xf0]  ;;  %6763 = vst [vmem:[#allocation74_spill] sm:$0xff] %v5252_v23  ;;  %v3899_v11 = vld [vmem:[#allocation7 + $0x8] sm:$0xf]  ;;  %v5262_v6 = vor.u32 %v4469_v49, %v4133_v24  ;;  %1213 = vmatpush.bf16.msrb.mxu2 %v5252_v23  ;;  %1201 = vmatpush.bf16.msra.mxu1 %v5256_v26 }
 0x1ac   :  { %6764 = vst [vmem:[#allocation75_spill] sm:$0xff] %v5256_v26  ;;  %v4412_v8 = vld [vmem:[#allocation7 + $0x14] sm:$0xf0]  ;;  %v4115_v21 = vld [vmem:[#allocation3 + $0xc0] sm:$0xf]  ;;  %v5264_v61 = vor.u32 %v4470_v15, %v4141_v42  ;;  %1227 = vmatpush.bf16.msrb.mxu3 %v5258_v31 }
 0x1ad   :  { %6765 = vst [vmem:[#allocation76_spill] sm:$0xff] %v5258_v31  ;;  %v4139_v62 = vld [vmem:[#allocation3 + $0xe8] sm:$0xf]  ;;  %v4472_v4 = vld [vmem:[#allocation3 + $0xf4] sm:$0xf0]  ;;  %v5272_v46 = vor.u32 %v4412_v8, %v3899_v11  ;;  %1189 = vmatmul.bf16.vlgmr.msrb.gmra.mxu0 %v5268_v35 }
 0x1ae   :  { %6766 = vst [vmem:[#allocation77_spill] sm:$0xff] %v5260_v10  ;;  %v4467_v18 = vld [vmem:[#allocation3 + $0xcc] sm:$0xf0]  ;;  %v4465_v25 = vld [vmem:[#allocation3 + $0xc4] sm:$0xf]  ;;  %v5276_v15 = vor.u32 %v4472_v4, %v4139_v62  ;;  %1426 = vmatpush.bf16.msra.mxu0 %v5260_v10  ;;  %1202 = vmatmul.bf16.vlgmr.msra.gmra.mxu1 %v5268_v35 }
 0x1af   :  { %6767 = vst [vmem:[#allocation78_spill] sm:$0xff] %v5262_v6  ;;  %v4117_v2 = vld [vmem:[#allocation3 + $0xd0] sm:$0xf0]  ;;  %v4466_v16 = vld [vmem:[#allocation3 + $0xcc] sm:$0xf]  ;;  %1439 = vmatpush.bf16.msrb.mxu1 %v5262_v6  ;;  %v5280_v27 = vor.u32 %v4467_v18, %v4115_v21  ;;  %1214 = vmatpush.bf16.msrb.mxu2 %v5272_v46 }
 0x1b0   :  { %6768 = vst [vmem:[#allocation79_spill] sm:$0xff] %v5264_v61  ;;  %v4125_v22 = vld [vmem:[#allocation3 + $0xd8] sm:$0xf0]  ;;  %v5282_v7 = vor.u32 %v4465_v25, %v4117_v2  ;;  %v4099_v50 = vld [vmem:[#allocation3 + $0xa0] sm:$0xf]  ;;  %1465 = vmatpush.bf16.msra.mxu3 %v5264_v61 }
 0x1b1   :  { %6769 = vst [vmem:[#allocation80_spill] sm:$0xff] %v5272_v46  ;;  %v4123_v49 = vld [vmem:[#allocation3 + $0xc8] sm:$0xf]  ;;  %v4468_v24 = vld [vmem:[#allocation3 + $0xd4] sm:$0xf0]  ;;  %v5285_v8 = vor.u32 %v4466_v16, %v4125_v22  ;;  %1228 = vmatmul.bf16.vlgmr.msrb.gmra.mxu3 %v5268_v35 }
 0x1b2   :  { %6770 = vst [vmem:[#allocation81_spill] sm:$0xff] %v5276_v15  ;;  %v4463_v11 = vld [vmem:[#allocation3 + $0xac] sm:$0xf0]  ;;  %v4461_v42 = vld [vmem:[#allocation3 + $0xa4] sm:$0xf]  ;;  %v5291_v2 = vor.u32 %v4468_v24, %v4123_v49  ;;  %1427 = vmatpush.bf16.msra.mxu0 %v5280_v27  ;;  %1215 = vmatmul.bf16.vlgmr.msrb.gmra.mxu2 %v5268_v35 }
 0x1b3   :  { %6771 = vst [vmem:[#allocation82_spill] sm:$0xff] %v5280_v27  ;;  %v4101_v9 = vld [vmem:[#allocation3 + $0xb0] sm:$0xf0]  ;;  %v4462_v4 = vld [vmem:[#allocation3 + $0xac] sm:$0xf]  ;;  %1452 = vmatpush.bf16.msra.mxu2 %v5276_v15  ;;  %1440 = vmatpush.bf16.msrb.mxu1 %v5282_v7  ;;  %v5296_v21 = vor.u32 %v4463_v11, %v4099_v50 }
 0x1b4   :  { %6772 = vst [vmem:[#allocation83_spill] sm:$0xff] %v5282_v7  ;;  %v4109_v62 = vld [vmem:[#allocation3 + $0xb8] sm:$0xf0]  ;;  %v5298_v18 = vor.u32 %v4461_v42, %v4101_v9  ;;  %v4083_v25 = vld [vmem:[#allocation3 + $0x80] sm:$0xf]  ;;  %1466 = vmatpush.bf16.msra.mxu3 %v5285_v8 }
 0x1b5   :  { %6773 = vst [vmem:[#allocation84_spill] sm:$0xff] %v5285_v8  ;;  %v4107_v16 = vld [vmem:[#allocation3 + $0xa8] sm:$0xf]  ;;  %v4464_v22 = vld [vmem:[#allocation3 + $0xb4] sm:$0xf0]  ;;  %v5301_v60 = vor.u32 %v4462_v4, %v4109_v62 }
 0x1b6   :  { %6774 = vst [vmem:[#allocation85_spill] sm:$0xff] %v5291_v2  ;;  %v4459_v57 = vld [vmem:[#allocation3 + $0x8c] sm:$0xf0]  ;;  %v4457_v49 = vld [vmem:[#allocation3 + $0x84] sm:$0xf]  ;;  %v5305_v50 = vor.u32 %v4464_v22, %v4107_v16  ;;  %1428 = vmatpush.bf16.msra.mxu0 %v5296_v21 }
 0x1b7   :  { %6775 = vst [vmem:[#allocation86_spill] sm:$0xff] %v5296_v21  ;;  %v4085_v24 = vld [vmem:[#allocation3 + $0x90] sm:$0xf0]  ;;  %v4458_v58 = vld [vmem:[#allocation3 + $0x8c] sm:$0xf]  ;;  %1453 = vmatpush.bf16.msra.mxu2 %v5291_v2  ;;  %1441 = vmatpush.bf16.msrb.mxu1 %v5298_v18  ;;  %v5309_v9 = vor.u32 %v4459_v57, %v4083_v25 }
 0x1b8   :  { %6776 = vst [vmem:[#allocation87_spill] sm:$0xff] %v5298_v18  ;;  %v4093_v53 = vld [vmem:[#allocation3 + $0x98] sm:$0xf0]  ;;  %v5311_v11 = vor.u32 %v4457_v49, %v4085_v24  ;;  %v4067_v42 = vld [vmem:[#allocation3 + $0x60] sm:$0xf]  ;;  %1467 = vmatpush.bf16.msra.mxu3 %v5301_v60 }
 0x1b9   :  { %6777 = vst [vmem:[#allocation88_spill] sm:$0xff] %v5301_v60  ;;  %v4091_v4 = vld [vmem:[#allocation3 + $0x88] sm:$0xf]  ;;  %v4460_v62 = vld [vmem:[#allocation3 + $0x94] sm:$0xf0]  ;;  %v5314_v55 = vor.u32 %v4458_v58, %v4093_v53 }
 0x1ba   :  { %6778 = vst [vmem:[#allocation89_spill] sm:$0xff] %v5305_v50  ;;  %v4455_v51 = vld [vmem:[#allocation3 + $0x6c] sm:$0xf0]  ;;  %v4453_v12 = vld [vmem:[#allocation3 + $0x64] sm:$0xf]  ;;  %v5317_v37 = vor.u32 %v4460_v62, %v4091_v4  ;;  %1429 = vmatpush.bf16.msra.mxu0 %v5309_v9 }
 0x1bb   :  { %6779 = vst [vmem:[#allocation90_spill] sm:$0xff] %v5309_v9  ;;  %v4069_v38 = vld [vmem:[#allocation3 + $0x70] sm:$0xf0]  ;;  %v4454_v16 = vld [vmem:[#allocation3 + $0x6c] sm:$0xf]  ;;  %1454 = vmatpush.bf16.msra.mxu2 %v5305_v50  ;;  %1442 = vmatpush.bf16.msrb.mxu1 %v5311_v11  ;;  %v5321_v57 = vor.u32 %v4455_v51, %v4067_v42 }
 0x1bc   :  { %6780 = vst [vmem:[#allocation91_spill] sm:$0xff] %v5311_v11  ;;  %v4077_v22 = vld [vmem:[#allocation3 + $0x78] sm:$0xf0]  ;;  %v5323_v25 = vor.u32 %v4453_v12, %v4069_v38  ;;  %v4051_v49 = vld [vmem:[#allocation3 + $0x40] sm:$0xf]  ;;  %1468 = vmatpush.bf16.msra.mxu3 %v5314_v55 }
 0x1bd   :  { %6781 = vst [vmem:[#allocation92_spill] sm:$0xff] %v5314_v55  ;;  %v4075_v53 = vld [vmem:[#allocation3 + $0x68] sm:$0xf]  ;;  %v4456_v58 = vld [vmem:[#allocation3 + $0x74] sm:$0xf0]  ;;  %v5326_v24 = vor.u32 %v4454_v16, %v4077_v22 }
 0x1be   :  { %6782 = vst [vmem:[#allocation93_spill] sm:$0xff] %v5317_v37  ;;  %v4451_v60 = vld [vmem:[#allocation3 + $0x4c] sm:$0xf0]  ;;  %v4449_v18 = vld [vmem:[#allocation3 + $0x44] sm:$0xf]  ;;  %v5329_v9 = vor.u32 %v4456_v58, %v4075_v53  ;;  %1430 = vmatpush.bf16.msra.mxu0 %v5321_v57 }
 0x1bf   :  { %6783 = vst [vmem:[#allocation94_spill] sm:$0xff] %v5321_v57  ;;  %v4053_v50 = vld [vmem:[#allocation3 + $0x50] sm:$0xf0]  ;;  %v4450_v4 = vld [vmem:[#allocation3 + $0x4c] sm:$0xf]  ;;  %1455 = vmatpush.bf16.msra.mxu2 %v5317_v37  ;;  %1443 = vmatpush.bf16.msrb.mxu1 %v5323_v25  ;;  %v5333_v38 = vor.u32 %v4451_v60, %v4051_v49 }
 0x1c0   :  { %6784 = vst [vmem:[#allocation95_spill] sm:$0xff] %v5323_v25  ;;  %v4061_v62 = vld [vmem:[#allocation3 + $0x58] sm:$0xf0]  ;;  %v5335_v51 = vor.u32 %v4449_v18, %v4053_v50  ;;  %v4035_v12 = vld [vmem:[#allocation3 + $0x20] sm:$0xf]  ;;  %1469 = vmatpush.bf16.msra.mxu3 %v5326_v24 }
 0x1c1   :  { %6785 = vst [vmem:[#allocation96_spill] sm:$0xff] %v5326_v24  ;;  %v4059_v42 = vld [vmem:[#allocation3 + $0x48] sm:$0xf]  ;;  %v4452_v16 = vld [vmem:[#allocation3 + $0x54] sm:$0xf0]  ;;  %v5338_v22 = vor.u32 %v4450_v4, %v4061_v62 }
 0x1c2   :  { %6786 = vst [vmem:[#allocation97_spill] sm:$0xff] %v5329_v9  ;;  %v4447_v55 = vld [vmem:[#allocation3 + $0x2c] sm:$0xf0]  ;;  %v4445_v11 = vld [vmem:[#allocation3 + $0x24] sm:$0xf]  ;;  %v5341_v57 = vor.u32 %v4452_v16, %v4059_v42  ;;  %1431 = vmatpush.bf16.msra.mxu0 %v5333_v38 }
 0x1c3   :  { %6787 = vst [vmem:[#allocation98_spill] sm:$0xff] %v5333_v38  ;;  %v4037_v37 = vld [vmem:[#allocation3 + $0x30] sm:$0xf0]  ;;  %v4446_v53 = vld [vmem:[#allocation3 + $0x2c] sm:$0xf]  ;;  %1456 = vmatpush.bf16.msra.mxu2 %v5329_v9  ;;  %1444 = vmatpush.bf16.msrb.mxu1 %v5335_v51  ;;  %v5345_v18 = vor.u32 %v4447_v55, %v4035_v12 }
 0x1c4   :  { %6788 = vst [vmem:[#allocation99_spill] sm:$0xff] %v5335_v51  ;;  %v4045_v58 = vld [vmem:[#allocation3 + $0x38] sm:$0xf0]  ;;  %v4019_v60 = vld [vmem:[#allocation3] sm:$0xf]  ;;  %v5347_v50 = vor.u32 %v4445_v11, %v4037_v37  ;;  %1470 = vmatpush.bf16.msra.mxu3 %v5338_v22 }
 0x1c5   :  { %6789 = vst [vmem:[#allocation100_spill] sm:$0xff] %v5338_v22  ;;  %v4443_v49 = vld [vmem:[#allocation3 + $0xc] sm:$0xf0]  ;;  %v4441_v4 = vld [vmem:[#allocation3 + $0x4] sm:$0xf]  ;;  %v5350_v25 = vor.u32 %v4446_v53, %v4045_v58 }
 0x1c6   :  { %6790 = vst [vmem:[#allocation101_spill] sm:$0xff] %v5341_v57  ;;  %v4043_v62 = vld [vmem:[#allocation3 + $0x28] sm:$0xf]  ;;  %v4448_v24 = vld [vmem:[#allocation3 + $0x34] sm:$0xf0]  ;;  %1432 = vmatpush.bf16.msra.mxu0 %v5345_v18  ;;  %v5357_v11 = vor.u32 %v4443_v49, %v4019_v60 }
 0x1c7   :  { %6791 = vst [vmem:[#allocation102_spill] sm:$0xff] %v5345_v18  ;;  %v4021_v9 = vld [vmem:[#allocation3 + $0x10] sm:$0xf0]  ;;  %v4442_v42 = vld [vmem:[#allocation3 + $0xc] sm:$0xf]  ;;  %1457 = vmatpush.bf16.msra.mxu2 %v5341_v57  ;;  %v5353_v37 = vor.u32 %v4448_v24, %v4043_v62  ;;  %1445 = vmatpush.bf16.msrb.mxu1 %v5347_v50 }
 0x1c8   :  { %6792 = vst [vmem:[#allocation103_spill] sm:$0xff] %v5347_v50  ;;  %v4029_v16 = vld [vmem:[#allocation3 + $0x18] sm:$0xf0]  ;;  %v4262_v21 = vld [vmem:[#allocation5 + $0xe0] sm:$0xf]  ;;  %v5359_v53 = vor.u32 %v4441_v4, %v4021_v9  ;;  %1471 = vmatpush.bf16.msra.mxu3 %v5350_v25  ;;  %v1233_v9 = vpack.c.bf16 %v5163_v32, %v5163_v32 }
 0x1c9   :  { %6793 = vst [vmem:[#allocation104_spill] sm:$0xff] %v5350_v25  ;;  %v4503_v2 = vld [vmem:[#allocation5 + $0xec] sm:$0xf0]  ;;  %v4501_v8 = vld [vmem:[#allocation5 + $0xe4] sm:$0xf]  ;;  %v5362_v22 = vor.u32 %v4442_v42, %v4029_v16 }
 0x1ca   :  { %v4264_v51 = vld [vmem:[#allocation5 + $0xf0] sm:$0xf0]  ;;  %v4502_v55 = vld [vmem:[#allocation5 + $0xec] sm:$0xf]  ;;  %v4272_v12 = vld [vmem:[#allocation5 + $0xf8] sm:$0xf0]  ;;  %v5364_v38 = vor.u32 %v4503_v2, %v4262_v21  ;;  %1433 = vmatpush.bf16.msra.mxu0 %v5357_v11 }
 0x1cb   :  { %6794 = vst [vmem:[#allocation105_spill] sm:$0xff] %v5353_v37  ;;  %v4246_v58 = vld [vmem:[#allocation5 + $0xc0] sm:$0xf]  ;;  %v4499_v57 = vld [vmem:[#allocation5 + $0xcc] sm:$0xf0]  ;;  %v5366_v24 = vor.u32 %v4501_v8, %v4264_v51  ;;  %v5368_v62 = vor.u32 %v4502_v55, %v4272_v12  ;;  %1458 = vmatpush.bf16.msra.mxu2 %v5353_v37  ;;  %1446 = vmatpush.bf16.msrb.mxu1 %v5359_v53 }
 0x1cc   :  { %6795 = vst [vmem:[#allocation106_spill] sm:$0xff] %v5357_v11  ;;  %v4027_v7 = vld [vmem:[#allocation3 + $0x8] sm:$0xf]  ;;  %v4444_v27 = vld [vmem:[#allocation3 + $0x14] sm:$0xf0]  ;;  %1472 = vmatpush.bf16.msra.mxu3 %v5362_v22  ;;  %v5379_v8 = vor.u32 %v4499_v57, %v4246_v58 }
 0x1cd   :  { %6796 = vst [vmem:[#allocation107_spill] sm:$0xff] %v5359_v53  ;;  %v4497_v18 = vld [vmem:[#allocation5 + $0xc4] sm:$0xf]  ;;  %v4270_v50 = vld [vmem:[#allocation5 + $0xe8] sm:$0xf]  ;;  %v5375_v2 = vor.u32 %v4444_v27, %v4027_v7  ;;  %1434 = vmatmul.bf16.vlgmr.msra.gmra.mxu0 %v1233_v9 }
 0x1ce   :  { %6797 = vst [vmem:[#allocation108_spill] sm:$0xff] %v5362_v22  ;;  %v4504_v60 = vld [vmem:[#allocation5 + $0xf4] sm:$0xf0]  ;;  %v4248_v49 = vld [vmem:[#allocation5 + $0xd0] sm:$0xf0]  ;;  %1741 = vmatpush.bf16.msrb.mxu0 %v5364_v38  ;;  %1447 = vmatmul.bf16.vlgmr.msrb.gmra.mxu1 %v1233_v9 }
 0x1cf   :  { %6798 = vst [vmem:[#allocation109_spill] sm:$0xff] %v5364_v38  ;;  %v4498_v4 = vld [vmem:[#allocation5 + $0xcc] sm:$0xf]  ;;  %v4256_v42 = vld [vmem:[#allocation5 + $0xd8] sm:$0xf0]  ;;  %v5381_v21 = vor.u32 %v4504_v60, %v4270_v50  ;;  %1754 = vmatpush.bf16.msra.mxu1 %v5366_v24  ;;  %v5385_v55 = vor.u32 %v4497_v18, %v4248_v49  ;;  %1473 = vmatmul.bf16.vlgmr.msra.gmra.mxu3 %v1233_v9 }
 0x1d0   :  { %6799 = vst [vmem:[#allocation110_spill] sm:$0xff] %v5366_v24  ;;  %v4230_v32 = vld [vmem:[#allocation5 + $0xa0] sm:$0xf]  ;;  %v4495_v51 = vld [vmem:[#allocation5 + $0xac] sm:$0xf0]  ;;  %1780 = vmatpush.bf16.msrb.mxu3 %v5368_v62  ;;  %v5387_v12 = vor.u32 %v4498_v4, %v4256_v42  ;;  %1459 = vmatpush.bf16.msra.mxu2 %v5375_v2 }
 0x1d1   :  { %6800 = vst [vmem:[#allocation111_spill] sm:$0xff] %v5368_v62  ;;  %v4493_v16 = vld [vmem:[#allocation5 + $0xa4] sm:$0xf]  ;;  %v4232_v27 = vld [vmem:[#allocation5 + $0xb0] sm:$0xf0]  ;;  %v5392_v50 = vor.u32 %v4495_v51, %v4230_v32 }
 0x1d2   :  { %6801 = vst [vmem:[#allocation112_spill] sm:$0xff] %v5375_v2  ;;  %v4254_v7 = vld [vmem:[#allocation5 + $0xc8] sm:$0xf]  ;;  %v4500_v22 = vld [vmem:[#allocation5 + $0xd4] sm:$0xf0]  ;;  %1742 = vmatpush.bf16.msrb.mxu0 %v5379_v8  ;;  %v5398_v4 = vor.u32 %v4493_v16, %v4232_v27 }
 0x1d3   :  { %6802 = vst [vmem:[#allocation113_spill] sm:$0xff] %v5379_v8  ;;  %v4494_v57 = vld [vmem:[#allocation5 + $0xac] sm:$0xf]  ;;  %v4240_v58 = vld [vmem:[#allocation5 + $0xb8] sm:$0xf0]  ;;  %v5394_v18 = vor.u32 %v4500_v22, %v4254_v7  ;;  %1755 = vmatpush.bf16.msra.mxu1 %v5385_v55  ;;  %1460 = vmatmul.bf16.vlgmr.msra.gmra.mxu2 %v1233_v9 }
 0x1d4   :  { %6803 = vst [vmem:[#allocation114_spill] sm:$0xff] %v5381_v21  ;;  %1767 = vmatpush.bf16.msrb.mxu2 %v5381_v21  ;;  %v4214_v60 = vld [vmem:[#allocation5 + $0x80] sm:$0xf]  ;;  %v4491_v49 = vld [vmem:[#allocation5 + $0x8c] sm:$0xf0]  ;;  %1781 = vmatpush.bf16.msrb.mxu3 %v5387_v12  ;;  %v5400_v42 = vor.u32 %v4494_v57, %v4240_v58 }
 0x1d5   :  { %6804 = vst [vmem:[#allocation115_spill] sm:$0xff] %v5387_v12  ;;  %v4489_v62 = vld [vmem:[#allocation5 + $0x84] sm:$0xf]  ;;  %v4238_v24 = vld [vmem:[#allocation5 + $0xa8] sm:$0xf]  ;;  %v5404_v22 = vor.u32 %v4491_v49, %v4214_v60 }
 0x1d6   :  { %6805 = vst [vmem:[#allocation116_spill] sm:$0xff] %v5392_v50  ;;  %v4496_v38 = vld [vmem:[#allocation5 + $0xb4] sm:$0xf0]  ;;  %v4216_v8 = vld [vmem:[#allocation5 + $0x90] sm:$0xf0]  ;;  %1743 = vmatpush.bf16.msrb.mxu0 %v5392_v50 }
 0x1d7   :  { %6806 = vst [vmem:[#allocation117_spill] sm:$0xff] %v5394_v18  ;;  %v4490_v2 = vld [vmem:[#allocation5 + $0x8c] sm:$0xf]  ;;  %v4224_v21 = vld [vmem:[#allocation5 + $0x98] sm:$0xf0]  ;;  %v5406_v32 = vor.u32 %v4496_v38, %v4238_v24  ;;  %1756 = vmatpush.bf16.msra.mxu1 %v5398_v4  ;;  %v5410_v27 = vor.u32 %v4489_v62, %v4216_v8 }
 0x1d8   :  { %6807 = vst [vmem:[#allocation118_spill] sm:$0xff] %v5398_v4  ;;  %1768 = vmatpush.bf16.msrb.mxu2 %v5394_v18  ;;  %v4198_v51 = vld [vmem:[#allocation5 + $0x60] sm:$0xf]  ;;  %v4487_v16 = vld [vmem:[#allocation5 + $0x6c] sm:$0xf0]  ;;  %1782 = vmatpush.bf16.msrb.mxu3 %v5400_v42  ;;  %v5412_v7 = vor.u32 %v4490_v2, %v4224_v21 }
 0x1d9   :  { %6808 = vst [vmem:[#allocation119_spill] sm:$0xff] %v5400_v42  ;;  %v4485_v57 = vld [vmem:[#allocation5 + $0x64] sm:$0xf]  ;;  %v4222_v9 = vld [vmem:[#allocation5 + $0x88] sm:$0xf]  ;;  %v5416_v38 = vor.u32 %v4487_v16, %v4198_v51 }
 0x1da   :  { %6809 = vst [vmem:[#allocation120_spill] sm:$0xff] %v5404_v22  ;;  %v4492_v58 = vld [vmem:[#allocation5 + $0x94] sm:$0xf0]  ;;  %v4200_v50 = vld [vmem:[#allocation5 + $0x70] sm:$0xf0]  ;;  %1744 = vmatpush.bf16.msrb.mxu0 %v5404_v22 }
 0x1db   :  { %6810 = vst [vmem:[#allocation121_spill] sm:$0xff] %v5406_v32  ;;  %v4486_v12 = vld [vmem:[#allocation5 + $0x6c] sm:$0xf]  ;;  %v4208_v18 = vld [vmem:[#allocation5 + $0x78] sm:$0xf0]  ;;  %v5418_v24 = vor.u32 %v4492_v58, %v4222_v9  ;;  %1757 = vmatpush.bf16.msra.mxu1 %v5410_v27  ;;  %v5422_v62 = vor.u32 %v4485_v57, %v4200_v50 }
 0x1dc   :  { %6811 = vst [vmem:[#allocation122_spill] sm:$0xff] %v5410_v27  ;;  %1769 = vmatpush.bf16.msrb.mxu2 %v5406_v32  ;;  %v4182_v60 = vld [vmem:[#allocation5 + $0x40] sm:$0xf]  ;;  %v4483_v49 = vld [vmem:[#allocation5 + $0x4c] sm:$0xf0]  ;;  %1783 = vmatpush.bf16.msrb.mxu3 %v5412_v7  ;;  %v5424_v2 = vor.u32 %v4486_v12, %v4208_v18 }
 0x1dd   :  { %6812 = vst [vmem:[#allocation123_spill] sm:$0xff] %v5412_v7  ;;  %v4481_v8 = vld [vmem:[#allocation5 + $0x44] sm:$0xf]  ;;  %v4206_v21 = vld [vmem:[#allocation5 + $0x68] sm:$0xf]  ;;  %v5428_v51 = vor.u32 %v4483_v49, %v4182_v60 }
 0x1de   :  { %6813 = vst [vmem:[#allocation124_spill] sm:$0xff] %v5416_v38  ;;  %v4488_v42 = vld [vmem:[#allocation5 + $0x74] sm:$0xf0]  ;;  %v4184_v22 = vld [vmem:[#allocation5 + $0x50] sm:$0xf0]  ;;  %1745 = vmatpush.bf16.msrb.mxu0 %v5416_v38 }
 0x1df   :  { %6814 = vst [vmem:[#allocation125_spill] sm:$0xff] %v5418_v24  ;;  %v4482_v4 = vld [vmem:[#allocation5 + $0x4c] sm:$0xf]  ;;  %v4192_v32 = vld [vmem:[#allocation5 + $0x58] sm:$0xf0]  ;;  %v5430_v16 = vor.u32 %v4488_v42, %v4206_v21  ;;  %1758 = vmatpush.bf16.msra.mxu1 %v5422_v62  ;;  %v5434_v12 = vor.u32 %v4481_v8, %v4184_v22 }
 0x1e0   :  { %6815 = vst [vmem:[#allocation126_spill] sm:$0xff] %v5422_v62  ;;  %1770 = vmatpush.bf16.msrb.mxu2 %v5418_v24  ;;  %v4166_v9 = vld [vmem:[#allocation5 + $0x20] sm:$0xf]  ;;  %v4479_v58 = vld [vmem:[#allocation5 + $0x2c] sm:$0xf0]  ;;  %1784 = vmatpush.bf16.msrb.mxu3 %v5424_v2  ;;  %v5436_v50 = vor.u32 %v4482_v4, %v4192_v32 }
 0x1e1   :  { %6816 = vst [vmem:[#allocation127_spill] sm:$0xff] %v5424_v2  ;;  %v4477_v18 = vld [vmem:[#allocation5 + $0x24] sm:$0xf]  ;;  %v4190_v57 = vld [vmem:[#allocation5 + $0x48] sm:$0xf]  ;;  %v5440_v42 = vor.u32 %v4479_v58, %v4166_v9 }
 0x1e2   :  { %6817 = vst [vmem:[#allocation128_spill] sm:$0xff] %v5428_v51  ;;  %v4484_v7 = vld [vmem:[#allocation5 + $0x54] sm:$0xf0]  ;;  %v4168_v38 = vld [vmem:[#allocation5 + $0x30] sm:$0xf0]  ;;  %1746 = vmatpush.bf16.msrb.mxu0 %v5428_v51 }
 0x1e3   :  { %6818 = vst [vmem:[#allocation129_spill] sm:$0xff] %v5430_v16  ;;  %v4478_v27 = vld [vmem:[#allocation5 + $0x2c] sm:$0xf]  ;;  %v4176_v24 = vld [vmem:[#allocation5 + $0x38] sm:$0xf0]  ;;  %v5442_v60 = vor.u32 %v4484_v7, %v4190_v57  ;;  %1759 = vmatpush.bf16.msra.mxu1 %v5434_v12  ;;  %v5446_v4 = vor.u32 %v4477_v18, %v4168_v38  ;;  %v6828_v18 = vld [vmem:[#allocation86_spill] sm:$0xff] }
 0x1e4   :  { %1771 = vmatpush.bf16.msrb.mxu2 %v5430_v16  ;;  %v4150_v49 = vld [vmem:[#allocation5] sm:$0xf]  ;;  %v4475_v21 = vld [vmem:[#allocation5 + $0xc] sm:$0xf0]  ;;  %1785 = vmatpush.bf16.msrb.mxu3 %v5436_v50  ;;  %v5448_v22 = vor.u32 %v4478_v27, %v4176_v24  ;;  %v4473_v32 = vld [vmem:[#allocation5 + $0x4] sm:$0xf] }
 0x1e5   :  { %v4174_v8 = vld [vmem:[#allocation5 + $0x28] sm:$0xf]  ;;  %v4480_v2 = vld [vmem:[#allocation5 + $0x34] sm:$0xf0]  ;;  %v4152_v51 = vld [vmem:[#allocation5 + $0x10] sm:$0xf0]  ;;  %v5452_v7 = vor.u32 %v4475_v21, %v4150_v49 }
 0x1e6   :  { %6819 = vst [vmem:[#allocation130_spill] sm:$0xff] %v5448_v22  ;;  %v4474_v62 = vld [vmem:[#allocation5 + $0xc] sm:$0xf]  ;;  %v4160_v16 = vld [vmem:[#allocation5 + $0x18] sm:$0xf0]  ;;  %1747 = vmatpush.bf16.msrb.mxu0 %v5440_v42  ;;  %v5454_v9 = vor.u32 %v4480_v2, %v4174_v8  ;;  %v5458_v27 = vor.u32 %v4473_v32, %v4152_v51  ;;  %v6826_v51 = vld [vmem:[#allocation84_spill] sm:$0xff] }
 0x1e7   :  { %6820 = vst [vmem:[#allocation131_spill] sm:$0xff] %v5452_v7  ;;  %1760 = vmatpush.bf16.msra.mxu1 %v5446_v4  ;;  %v5460_v38 = vor.u32 %v4474_v62, %v4160_v16  ;;  %v4158_v24 = vld [vmem:[#allocation5 + $0x8] sm:$0xf]  ;;  %v4476_v58 = vld [vmem:[#allocation5 + $0x14] sm:$0xf0]  ;;  %v6830_v49 = vld [vmem:[#allocation88_spill] sm:$0xff] }
 0x1e8   :  { %1772 = vmatpush.bf16.msrb.mxu2 %v5442_v60  ;;  %1786 = vmatpush.bf16.msrb.mxu3 %v5448_v22  ;;  %6821 = vst [vmem:[#allocation132_spill] sm:$0xff] %v5458_v27  ;;  %v5466_v2 = vor.u32 %v4476_v58, %v4158_v24  ;;  %v6825_v62 = vld [vmem:[#allocation83_spill] sm:$0xff]  ;;  %v6827_v16 = vld [vmem:[#allocation85_spill] sm:$0xff]  ;;  %v6832_v32 = vld [vmem:[#allocation90_spill] sm:$0xff] }
 0x1e9   :  { %6822 = vst [vmem:[#allocation133_spill] sm:$0xff] %v5460_v38  ;;  %v6829_v57 = vld [vmem:[#allocation87_spill] sm:$0xff]  ;;  %v6831_v21 = vld [vmem:[#allocation89_spill] sm:$0xff]  ;;  %v6834_v24 = vld [vmem:[#allocation92_spill] sm:$0xff] }
 0x1ea   :  { %1748 = vmatpush.bf16.msrb.mxu0 %v5452_v7  ;;  %6823 = vst [vmem:[#allocation134_spill] sm:$0xff] %v5466_v2  ;;  %v6833_v8 = vld [vmem:[#allocation91_spill] sm:$0xff]  ;;  %v6835_v58 = vld [vmem:[#allocation93_spill] sm:$0xff] }
 0x1eb   :  { %1761 = vmatpush.bf16.msra.mxu1 %v5458_v27 }
 0x1ec   :  { %1773 = vmatpush.bf16.msrb.mxu2 %v5454_v9  ;;  %1787 = vmatpush.bf16.msrb.mxu3 %v5460_v38 }
 0x1ed   :  { %1749 = vmatmul.bf16.vlgmr.msrb.gmra.mxu0 %v5268_v35 }
 0x1ee   :  { %1861 = vmatpush.bf16.msra.mxu0 %v5171_v33  ;;  %1762 = vmatmul.bf16.vlgmr.msra.gmra.mxu1 %v5268_v35 }
 0x1ef   :  { %1874 = vmatpush.bf16.msrb.mxu1 %v5173_v43  ;;  %1788 = vmatmul.bf16.vlgmr.msrb.gmra.mxu3 %v5268_v35 }
 0x1f0   :  { %1900 = vmatpush.bf16.msra.mxu3 %v5175_v13  ;;  %1774 = vmatpush.bf16.msrb.mxu2 %v5466_v2 }
 0x1f2   :  { %1862 = vmatpush.bf16.msra.mxu0 %v5178_v0 }
 0x1f3   :  { %1875 = vmatpush.bf16.msrb.mxu1 %v5182_v54  ;;  %1775 = vmatmul.bf16.vlgmr.msrb.gmra.mxu2 %v5268_v35  ;;  %v6824_v35 = vld [vmem:[#allocation82_spill] sm:$0xff] }
 0x1f4   :  { %1887 = vmatpush.bf16.msra.mxu2 %v5186_v44  ;;  %1901 = vmatpush.bf16.msra.mxu3 %v5184_v59 }
 0x1f6   :  { %1863 = vmatpush.bf16.msra.mxu0 %v5190_v19 }
 0x1f7   :  { %1876 = vmatpush.bf16.msrb.mxu1 %v5194_v36 }
 0x1f8   :  { %1888 = vmatpush.bf16.msra.mxu2 %v5198_v28  ;;  %1902 = vmatpush.bf16.msra.mxu3 %v5196_v52 }
 0x1fa   :  { %1864 = vmatpush.bf16.msra.mxu0 %v5202_v47 }
 0x1fb   :  { %1877 = vmatpush.bf16.msrb.mxu1 %v5208_v1 }
 0x1fc   :  { %1889 = vmatpush.bf16.msra.mxu2 %v5204_v45  ;;  %1903 = vmatpush.bf16.msra.mxu3 %v5210_v3 }
 0x1fe   :  { %1865 = vmatpush.bf16.msra.mxu0 %v5214_v14 }
 0x1ff   :  { %1878 = vmatpush.bf16.msrb.mxu1 %v5220_v34 }
 0x200   :  { %1890 = vmatpush.bf16.msra.mxu2 %v5216_v29  ;;  %1904 = vmatpush.bf16.msra.mxu3 %v5222_v39 }
 0x202   :  { %1866 = vmatpush.bf16.msra.mxu0 %v5226_v56 }
 0x203   :  { %1879 = vmatpush.bf16.msrb.mxu1 %v5232_v5 }
 0x204   :  { %1891 = vmatpush.bf16.msra.mxu2 %v5228_v40  ;;  %1905 = vmatpush.bf16.msra.mxu3 %v5234_v48 }
 0x206   :  { %1867 = vmatpush.bf16.msra.mxu0 %v5238_v41  ;;  %v6854_v41 = vld [vmem:[#allocation44_spill] sm:$0xff] }
 0x207   :  { %1880 = vmatpush.bf16.msrb.mxu1 %v5244_v30  ;;  %v6853_v30 = vld [vmem:[#allocation18_spill] sm:$0xff] }
 0x208   :  { %1892 = vmatpush.bf16.msra.mxu2 %v5240_v63  ;;  %1906 = vmatpush.bf16.msra.mxu3 %v5246_v17 }
 0x20a   :  { %1868 = vmatpush.bf16.msra.mxu0 %v5250_v20 }
 0x20b   :  { %1881 = vmatpush.bf16.msrb.mxu1 %v5256_v26 }
 0x20c   :  { %1893 = vmatpush.bf16.msra.mxu2 %v5252_v23  ;;  %1907 = vmatpush.bf16.msra.mxu3 %v5258_v31 }
 0x20e   :  { %1914 = vmatpush.bf16.msrb.mxu0 %v5260_v10 }
 0x20f   :  { %1927 = vmatpush.bf16.msra.mxu1 %v5262_v6 }
 0x210   :  { %1953 = vmatpush.bf16.msrb.mxu3 %v5264_v61  ;;  %1894 = vmatpush.bf16.msra.mxu2 %v5272_v46 }
 0x212   :  { %1915 = vmatpush.bf16.msrb.mxu0 %v6824_v35  ;;  %v6849_v35 = vld [vmem:[#allocation41_spill] sm:$0xff] }
 0x213   :  { %1928 = vmatpush.bf16.msra.mxu1 %v6825_v62  ;;  %v6836_v62 = vld [vmem:[#allocation94_spill] sm:$0xff] }
 0x214   :  { %1940 = vmatpush.bf16.msrb.mxu2 %v5276_v15  ;;  %1954 = vmatpush.bf16.msrb.mxu3 %v6826_v51  ;;  %v6837_v51 = vld [vmem:[#allocation95_spill] sm:$0xff] }
 0x216   :  { %1916 = vmatpush.bf16.msrb.mxu0 %v6828_v18  ;;  %v6839_v18 = vld [vmem:[#allocation97_spill] sm:$0xff] }
 0x217   :  { %1929 = vmatpush.bf16.msra.mxu1 %v6829_v57  ;;  %v6840_v57 = vld [vmem:[#allocation98_spill] sm:$0xff] }
 0x218   :  { %1941 = vmatpush.bf16.msrb.mxu2 %v6827_v16  ;;  %1955 = vmatpush.bf16.msrb.mxu3 %v6830_v49  ;;  %v6838_v16 = vld [vmem:[#allocation96_spill] sm:$0xff]  ;;  %v6841_v49 = vld [vmem:[#allocation99_spill] sm:$0xff] }
 0x21a   :  { %1917 = vmatpush.bf16.msrb.mxu0 %v6832_v32  ;;  %v6843_v32 = vld [vmem:[#allocation101_spill] sm:$0xff] }
 0x21b   :  { %1930 = vmatpush.bf16.msra.mxu1 %v6833_v8  ;;  %v6844_v8 = vld [vmem:[#allocation102_spill] sm:$0xff] }
 0x21c   :  { %1942 = vmatpush.bf16.msrb.mxu2 %v6831_v21  ;;  %1956 = vmatpush.bf16.msrb.mxu3 %v6834_v24  ;;  %v6842_v21 = vld [vmem:[#allocation100_spill] sm:$0xff]  ;;  %v6845_v24 = vld [vmem:[#allocation103_spill] sm:$0xff] }
 0x21e   :  { %1918 = vmatpush.bf16.msrb.mxu0 %v6836_v62 }
 0x21f   :  { %1931 = vmatpush.bf16.msra.mxu1 %v6837_v51 }
 0x220   :  { %1943 = vmatpush.bf16.msrb.mxu2 %v6835_v58  ;;  %1957 = vmatpush.bf16.msrb.mxu3 %v6838_v16  ;;  %v6846_v16 = vld [vmem:[#allocation108_spill] sm:$0xff] }
 0x221   :  { %v6848_v58 = vld [vmem:[#allocation40_spill] sm:$0xff] }
 0x222   :  { %1919 = vmatpush.bf16.msrb.mxu0 %v6840_v57  ;;  %v6847_v57 = vld [vmem:[#allocation112_spill] sm:$0xff] }
 0x223   :  { %1932 = vmatpush.bf16.msra.mxu1 %v6841_v49 }
 0x224   :  { %1944 = vmatpush.bf16.msrb.mxu2 %v6839_v18  ;;  %1958 = vmatpush.bf16.msrb.mxu3 %v6842_v21 }
 0x226   :  { %1920 = vmatpush.bf16.msrb.mxu0 %v6844_v8 }
 0x227   :  { %1933 = vmatpush.bf16.msra.mxu1 %v6845_v24 }
 0x228   :  { %1945 = vmatpush.bf16.msrb.mxu2 %v6843_v32  ;;  %1959 = vmatpush.bf16.msrb.mxu3 %v5350_v25 }
 0x22a   :  { %1921 = vmatpush.bf16.msrb.mxu0 %v5357_v11  ;;  %v1190_v49 = vpop.f32.mrf.mxu0 }
 0x22b   :  { %1934 = vmatpush.bf16.msra.mxu1 %v5359_v53  ;;  %v1203_v21 = vpop.f32.mrf.mxu1  ;;  %v1191_v25 = vadd.f32 %v1190_v49, %v6848_v58  ;;  %v6850_v49 = vld [vmem:[#allocation43_spill] sm:$0xff] }
 0x22c   :  { %1946 = vmatpush.bf16.msrb.mxu2 %v5353_v37  ;;  %1960 = vmatpush.bf16.msrb.mxu3 %v6846_v16  ;;  %v1204_v37 = vadd.f32 %v1203_v21, %v6849_v35 }
 0x230   :  { %1947 = vmatpush.bf16.msrb.mxu2 %v6847_v57 }
 0x232   :  { %v1192_v32 = vpop.f32.mrf.mxu0 }
 0x233   :  { %v1205_v51 = vpop.f32.mrf.mxu1 }
 0x234   :  { %v1229_v18 = vpop.f32.mrf.mxu3 }
 0x235   :  { %v1216_v8 = vpop.f32.mrf.mxu2 }
 0x236   :  { %v1217_v58 = vadd.f32 %v1216_v8, %v6850_v49 }
 0x23c   :  { %v1231_v62 = vpop.f32.mrf.mxu3 }
 0x23d   :  { %v1218_v24 = vpop.f32.mrf.mxu2 }
 0x24a   :  { %v1435_v61 = vpop.f32.mrf.mxu0 }
 0x24b   :  { %v1448_v11 = vpop.f32.mrf.mxu1  ;;  %v1478_v15 = vadd.f32 %v1435_v61, %v1191_v25 }
 0x24c   :  { %v1479_v53 = vadd.f32 %v1448_v11, %v1204_v37 }
 0x24d   :  { %v4145_v31 = vmul.f32 -1.442695, %v1478_v15 }
 0x24e   :  { %v4146_v16 = vmul.f32 -1.442695, %v1479_v53 }
 0x24f   :  { %4568 = vpow2.f32 %v4145_v31 }
 0x250   :  { %4570 = vpow2.f32 %v4146_v16 }
 0x252   :  { %v1474_v57 = vpop.f32.mrf.mxu3  ;;  %v1437_v46 = vpop.f32.mrf.mxu0 }
 0x253   :  { %v1450_v6 = vpop.f32.mrf.mxu1 }
 0x255   :  { %v4569_v51 = vpop.eup %4568 }
 0x256   :  { %v1461_v32 = vpop.f32.mrf.mxu2  ;;  %v4571_v10 = vpop.eup %4570  ;;  %v1485_v62 = vadd.f32 1.0, %v4569_v51 }
 0x257   :  { %v1504_v24 = vadd.f32 1.0, %v4571_v10  ;;  %v1480_v35 = vadd.f32 %v1461_v32, %v1217_v58 }
 0x258   :  { %4572 = vrcp.f32 %v1485_v62  ;;  %v1497_v6 = vand.u32 2147483648, %v1485_v62  ;;  %v1495_v51 = vand.u32 2147483647, %v1485_v62  ;;  %vm1491_vm8 = vweird.f32 %v1485_v62 }
 0x259   :  { %4574 = vrcp.f32 %v1504_v24  ;;  %v1516_v53 = vand.u32 2147483648, %v1504_v24  ;;  %v1514_v26 = vand.u32 2147483647, %v1504_v24  ;;  %vm1510_vm9 = vweird.f32 %v1504_v24 }
 0x25a   :  { %v1476_v21 = vpop.f32.mrf.mxu3  ;;  %4576 = vtanh.f32 %v1480_v35  ;;  %v1498_v58 = vor.u32 1.1754944e-38, %v1497_v6  ;;  %vm1496_vm11 = vcmp.eq.f32.partialorder %v1495_v51, 8.507059e+37  ;;  %v6855_v51 = vld [vmem:[#allocation20_spill] sm:$0xff] }
 0x25b   :  { %v1517_v35 = vor.u32 1.1754944e-38, %v1516_v53  ;;  %vm1515_vm13 = vcmp.eq.f32.partialorder %v1514_v26, 8.507059e+37 }
 0x25e   :  { %v1463_v61 = vpop.f32.mrf.mxu2  ;;  %v4573_v25 = vpop.eup %4572 }
 0x25f   :  { %v4575_v15 = vpop.eup %4574  ;;  %v1487_v37 = vmul.f32 %v4573_v25, %v1485_v62  ;;  %vm1492_vm6 = vweird.f32 %v4573_v25  ;;  %v6851_v61 = vld [vmem:[#allocation42_spill] sm:$0xff] }
 0x260   :  { %v1506_v31 = vmul.f32 %v4575_v15, %v1504_v24  ;;  %vm1511_vm7 = vweird.f32 %v4575_v15  ;;  %v4577_v21 = vpop.eup %4576  ;;  %vm1493_vm10 = vmor %vm1491_vm8, %vm1492_vm6  ;;  %v1230_v49 = vadd.f32 %v1229_v18, %v6851_v61 }
 0x261   :  { %v1488_v11 = vsub.f32 1.0, %v1487_v37  ;;  %vm1512_vm12 = vmor %vm1510_vm9, %vm1511_vm7 }
 0x262   :  { %v1507_v46 = vsub.f32 1.0, %v1506_v31  ;;  %v1481_v18 = vadd.f32 %v1474_v57, %v1230_v49  ;;  %v6856_v57 = vld [vmem:[#allocation21_spill] sm:$0xff] }
 0x263   :  { %v1489_v16 = vmul.f32 %v4573_v25, %v1488_v11 }
 0x264   :  { %v1508_v10 = vmul.f32 %v4575_v15, %v1507_v46  ;;  %v6852_v46 = vld [vmem:[#allocation19_spill] sm:$0xff] }
 0x265   :  { %v1490_v8 = vadd.f32 %v4573_v25, %v1489_v16 }
 0x266   :  { %v1509_v32 = vadd.f32 %v4575_v15, %v1508_v10 }
 0x267   :  { %v1494_v37 = vsel %vm1493_vm10, %v4573_v25, %v1490_v8  ;;  %v4147_v8 = vmul.f32 -1.442695, %v1481_v18 }
 0x268   :  { %v1499_v11 = vsel %vm1496_vm11, %v1498_v58, %v1494_v37  ;;  %v1513_v20 = vsel %vm1512_vm12, %v4575_v15, %v1509_v32 }
 0x269   :  { %v1518_v16 = vsel %vm1515_vm13, %v1517_v35, %v1513_v20  ;;  %v1541_v62 = vmul.f32 %v4577_v21, %v1499_v11 }
 0x26a   :  { %v1750_v31 = vpop.f32.mrf.mxu0  ;;  %v1540_v6 = vmul.f32 %v1518_v16, %v6854_v41 }
 0x26b   :  { %v1793_v17 = vadd.f32 %v1750_v31, %v6852_v46  ;;  %v1763_v23 = vpop.f32.mrf.mxu1 }
 0x26c   :  { %v1794_v24 = vadd.f32 %v1763_v23, %v6853_v30  ;;  %v5544_v53 = vadd.f32 %v1541_v62, %v1540_v6 }
 0x26d   :  { %v4276_v10 = vmul.f32 -1.442695, %v1793_v17 }
 0x26e   :  { %v4277_v48 = vmul.f32 -1.442695, %v1794_v24 }
 0x26f   :  { %4578 = vpow2.f32 %v4276_v10 }
 0x270   :  { %4580 = vpow2.f32 %v4277_v48 }
 0x272   :  { %v1789_v25 = vpop.f32.mrf.mxu3  ;;  %v1752_v26 = vpop.f32.mrf.mxu0 }
 0x273   :  { %v1796_v15 = vadd.f32 %v1789_v25, %v6855_v51  ;;  %v1765_v58 = vpop.f32.mrf.mxu1 }
 0x275   :  { %v4278_v32 = vmul.f32 -1.442695, %v1796_v15  ;;  %v4579_v20 = vpop.eup %4578 }
 0x276   :  { %v1776_v21 = vpop.f32.mrf.mxu2  ;;  %v4581_v35 = vpop.eup %4580  ;;  %v1800_v30 = vadd.f32 1.0, %v4579_v20 }
 0x277   :  { %4582 = vpow2.f32 %v4278_v32  ;;  %v1819_v41 = vadd.f32 1.0, %v4581_v35  ;;  %v1795_v48 = vadd.f32 %v1776_v21, %v6856_v57 }
 0x278   :  { %4584 = vpow2.f32 %v4147_v8  ;;  %v1812_v18 = vand.u32 2147483648, %v1800_v30  ;;  %v1810_v15 = vand.u32 2147483647, %v1800_v30  ;;  %vm1806_vm0 = vweird.f32 %v1800_v30 }
 0x279   :  { %4586 = vrcp.f32 %v1800_v30  ;;  %v1831_v25 = vand.u32 2147483648, %v1819_v41  ;;  %v1829_v8 = vand.u32 2147483647, %v1819_v41  ;;  %vm1825_vm1 = vweird.f32 %v1819_v41 }
 0x27a   :  { %4588 = vrcp.f32 %v1819_v41  ;;  %v1791_v17 = vpop.f32.mrf.mxu3  ;;  %v1813_v35 = vor.u32 1.1754944e-38, %v1812_v18  ;;  %vm1811_vm3 = vcmp.eq.f32.partialorder %v1810_v15, 8.507059e+37 }
 0x27b   :  { %vm1830_vm5 = vcmp.eq.f32.partialorder %v1829_v8, 8.507059e+37 }
 0x27d   :  { %v4583_v23 = vpop.eup %4582 }
 0x27e   :  { %v4585_v49 = vpop.eup %4584  ;;  %v1839_v37 = vadd.f32 1.0, %v4583_v23  ;;  %v1778_v31 = vpop.f32.mrf.mxu2  ;;  %v1832_v23 = vor.u32 1.1754944e-38, %v1831_v25 }
 0x27f   :  { %v4587_v11 = vpop.eup %4586  ;;  %v5548_v24 = vadd.f32 1.0, %v4585_v49 }
 0x280   :  { %v4589_v46 = vpop.eup %4588  ;;  %v1802_v16 = vmul.f32 %v4587_v11, %v1800_v30  ;;  %4590 = vrcp.f32 %v1839_v37  ;;  %vm1807_vm14 = vweird.f32 %v4587_v11  ;;  %v1851_v18 = vand.u32 2147483648, %v1839_v37 }
 0x281   :  { %v1821_v62 = vmul.f32 %v4589_v46, %v1819_v41  ;;  %4592 = vtanh.f32 %v1795_v48  ;;  %vm1826_vm15 = vweird.f32 %v4589_v46  ;;  %vm1808_vm2 = vmor %vm1806_vm0, %vm1807_vm14  ;;  %vm1845_vm7 = vweird.f32 %v1839_v37 }
 0x282   :  { %v1803_v6 = vsub.f32 1.0, %v1802_v16  ;;  %4594 = vrcp.f32 %v5548_v24  ;;  %vm1827_vm4 = vmor %vm1825_vm1, %vm1826_vm15  ;;  %v1849_v25 = vand.u32 2147483647, %v1839_v37  ;;  %v1852_v15 = vor.u32 1.1754944e-38, %v1851_v18  ;;  %v6865_v18 = vld [vmem:[#allocation116_spill] sm:$0xff] }
 0x283   :  { %v1822_v10 = vsub.f32 1.0, %v1821_v62  ;;  %vm1530_vm11 = vweird.f32 %v5548_v24 }
 0x284   :  { %v1804_v51 = vmul.f32 %v4587_v11, %v1803_v6  ;;  %vm1850_vm9 = vcmp.eq.f32.partialorder %v1849_v25, 8.507059e+37 }
 0x285   :  { %v1823_v26 = vmul.f32 %v4589_v46, %v1822_v10  ;;  %v6857_v10 = vld [vmem:[#allocation45_spill] sm:$0xff] }
 0x286   :  { %v4591_v58 = vpop.eup %4590  ;;  %v1805_v32 = vadd.f32 %v4587_v11, %v1804_v51 }
 0x287   :  { %v4593_v20 = vpop.eup %4592  ;;  %v1841_v21 = vmul.f32 %v4591_v58, %v1839_v37  ;;  %v1824_v17 = vadd.f32 %v4589_v46, %v1823_v26  ;;  %vm1846_vm6 = vweird.f32 %v4591_v58 }
 0x288   :  { %v1809_v57 = vsel %vm1808_vm2, %v4587_v11, %v1805_v32  ;;  %v4595_v51 = vpop.eup %4594  ;;  %vm1847_vm8 = vmor %vm1845_vm7, %vm1846_vm6 }
 0x289   :  { %v1842_v48 = vsub.f32 1.0, %v1841_v21  ;;  %v1814_v49 = vsel %vm1811_vm3, %v1813_v35, %v1809_v57  ;;  %v1828_v31 = vsel %vm1827_vm4, %v4589_v46, %v1824_v17  ;;  %v1526_v11 = vmul.f32 %v4595_v51, %v5548_v24  ;;  %v6858_v17 = vld [vmem:[#allocation109_spill] sm:$0xff] }
 0x28a   :  { %v1833_v16 = vsel %vm1830_vm5, %v1832_v23, %v1828_v31  ;;  %v1856_v62 = vmul.f32 %v4593_v20, %v1814_v49  ;;  %v6859_v23 = vld [vmem:[#allocation110_spill] sm:$0xff]  ;;  %vm1531_vm10 = vweird.f32 %v4595_v51  ;;  %v1536_v57 = vand.u32 2147483648, %v5548_v24  ;;  %v6862_v49 = vld [vmem:[#allocation113_spill] sm:$0xff] }
 0x28b   :  { %v1843_v6 = vmul.f32 %v4591_v58, %v1842_v48  ;;  %v1855_v30 = vmul.f32 %v1833_v16, %v6857_v10  ;;  %v1527_v26 = vsub.f32 1.0, %v1526_v11  ;;  %v1534_v48 = vand.u32 2147483647, %v5548_v24  ;;  %vm1532_vm12 = vmor %vm1530_vm11, %vm1531_vm10  ;;  %v6866_v11 = vld [vmem:[#allocation118_spill] sm:$0xff]  ;;  %v6867_v24 = vld [vmem:[#allocation121_spill] sm:$0xff] }
 0x28c   :  { %v1537_v10 = vor.u32 1.1754944e-38, %v1536_v57  ;;  %v6876_v57 = vld [vmem:[#allocation127_spill] sm:$0xff] }
 0x28d   :  { %v5553_v41 = vadd.f32 %v1856_v62, %v1855_v30  ;;  %v1844_v61 = vadd.f32 %v4591_v58, %v1843_v6  ;;  %v1528_v35 = vmul.f32 %v4595_v51, %v1527_v26  ;;  %v6863_v62 = vld [vmem:[#allocation117_spill] sm:$0xff]  ;;  %v6864_v6 = vld [vmem:[#allocation115_spill] sm:$0xff]  ;;  %vm1535_vm13 = vcmp.eq.f32.partialorder %v1534_v48, 8.507059e+37  ;;  %v6877_v48 = vld [vmem:[#allocation128_spill] sm:$0xff] }
 0x28f   :  { %4596 = vtanh.f32 %v5553_v41  ;;  %v1848_v46 = vsel %vm1847_vm8, %v4591_v58, %v1844_v61  ;;  %v1529_v37 = vadd.f32 %v4595_v51, %v1528_v35  ;;  %v6860_v61 = vld [vmem:[#allocation114_spill] sm:$0xff]  ;;  %v6861_v58 = vld [vmem:[#allocation111_spill] sm:$0xff] }
 0x290   :  { %v1853_v32 = vsel %vm1850_vm9, %v1852_v15, %v1848_v46  ;;  %4598 = vtanh.f32 %v5544_v53  ;;  %v6868_v46 = vld [vmem:[#allocation119_spill] sm:$0xff]  ;;  %v6869_v15 = vld [vmem:[#allocation120_spill] sm:$0xff]  ;;  %v6874_v35 = vld [vmem:[#allocation126_spill] sm:$0xff] }
 0x291   :  { %v1533_v31 = vsel %vm1532_vm12, %v4595_v51, %v1529_v37  ;;  %v6870_v51 = vld [vmem:[#allocation122_spill] sm:$0xff]  ;;  %v6875_v37 = vld [vmem:[#allocation129_spill] sm:$0xff] }
 0x292   :  { %v1538_v30 = vsel %vm1535_vm13, %v1537_v10, %v1533_v31  ;;  %v6879_v31 = vld [vmem:[#allocation69_spill] sm:$0xff]  ;;  %v6881_v10 = vld [vmem:[#allocation74_spill] sm:$0xff] }
 0x295   :  { %v4597_v8 = vpop.eup %4596 }
 0x296   :  { %v1859_v20 = vmul.f32 %v4597_v8, %v1853_v32  ;;  %v4599_v16 = vpop.eup %4598  ;;  %v6871_v8 = vld [vmem:[#allocation125_spill] sm:$0xff]  ;;  %v6872_v32 = vld [vmem:[#allocation123_spill] sm:$0xff] }
 0x297   :  { %v1544_v25 = vmul.f32 %v4599_v16, %v1538_v30  ;;  %v6880_v16 = vld [vmem:[#allocation71_spill] sm:$0xff]  ;;  %v6882_v30 = vld [vmem:[#allocation72_spill] sm:$0xff] }
 0x298   :  { %v1860_v21 = vpack.c.bf16 %v1859_v20, %v1859_v20  ;;  %v6873_v20 = vld [vmem:[#allocation124_spill] sm:$0xff] }
 0x299   :  { %v1913_v26 = vpack.c.bf16 %v1544_v25, %v1544_v25  ;;  %v6883_v25 = vld [vmem:[#allocation73_spill] sm:$0xff] }
 0x29a   :  { %1869 = vmatmul.bf16.vlgmr.msra.gmra.mxu0 %v1860_v21  ;;  %1882 = vmatmul.bf16.vlgmr.msrb.gmra.mxu1 %v1860_v21 }
 0x29b   :  { %1895 = vmatmul.bf16.vlgmr.msra.gmra.mxu2 %v1860_v21  ;;  %1908 = vmatmul.bf16.vlgmr.msra.gmra.mxu3 %v1860_v21 }
 0x29c   :  { %2037 = vmatpush.bf16.msra.mxu0 %v6858_v17  ;;  %2050 = vmatpush.bf16.msrb.mxu1 %v6859_v23 }
 0x29d   :  { %2063 = vmatpush.bf16.msra.mxu2 %v6860_v61  ;;  %2076 = vmatpush.bf16.msra.mxu3 %v6861_v58 }
 0x2a0   :  { %2038 = vmatpush.bf16.msra.mxu0 %v6862_v49  ;;  %2051 = vmatpush.bf16.msrb.mxu1 %v5385_v55 }
 0x2a1   :  { %2064 = vmatpush.bf16.msra.mxu2 %v6863_v62  ;;  %2077 = vmatpush.bf16.msra.mxu3 %v6864_v6 }
 0x2a4   :  { %2039 = vmatpush.bf16.msra.mxu0 %v6865_v18  ;;  %2052 = vmatpush.bf16.msrb.mxu1 %v6866_v11 }
 0x2a5   :  { %2065 = vmatpush.bf16.msra.mxu2 %v6867_v24  ;;  %2078 = vmatpush.bf16.msra.mxu3 %v6868_v46 }
 0x2a8   :  { %2040 = vmatpush.bf16.msra.mxu0 %v6869_v15  ;;  %2053 = vmatpush.bf16.msrb.mxu1 %v6870_v51 }
 0x2a9   :  { %2066 = vmatpush.bf16.msra.mxu2 %v6871_v8  ;;  %2079 = vmatpush.bf16.msra.mxu3 %v6872_v32 }
 0x2aa   :  { %1922 = vmatmul.bf16.vlgmr.msrb.gmra.mxu0 %v1913_v26  ;;  %1935 = vmatmul.bf16.vlgmr.msra.gmra.mxu1 %v1913_v26 }
 0x2ab   :  { %1948 = vmatmul.bf16.vlgmr.msrb.gmra.mxu2 %v1913_v26  ;;  %1961 = vmatmul.bf16.vlgmr.msrb.gmra.mxu3 %v1913_v26  ;;  %v6884_v26 = vld [vmem:[#allocation75_spill] sm:$0xff] }
 0x2ac   :  { %2041 = vmatpush.bf16.msra.mxu0 %v6873_v20  ;;  %2054 = vmatpush.bf16.msrb.mxu1 %v6874_v35 }
 0x2ad   :  { %2067 = vmatpush.bf16.msra.mxu2 %v6875_v37  ;;  %2080 = vmatpush.bf16.msra.mxu3 %v6876_v57 }
 0x2b0   :  { %2042 = vmatpush.bf16.msra.mxu0 %v6877_v48  ;;  %2055 = vmatpush.bf16.msrb.mxu1 %v5434_v12 }
 0x2b1   :  { %2068 = vmatpush.bf16.msra.mxu2 %v5442_v60  ;;  %2081 = vmatpush.bf16.msra.mxu3 %v5436_v50 }
 0x2b4   :  { %2043 = vmatpush.bf16.msra.mxu0 %v5440_v42  ;;  %2056 = vmatpush.bf16.msrb.mxu1 %v5446_v4 }
 0x2b5   :  { %2069 = vmatpush.bf16.msra.mxu2 %v5454_v9  ;;  %2082 = vmatpush.bf16.msra.mxu3 %v5448_v22 }
 0x2b8   :  { %2044 = vmatpush.bf16.msra.mxu0 %v5452_v7  ;;  %2057 = vmatpush.bf16.msrb.mxu1 %v5458_v27 }
 0x2b9   :  { %2070 = vmatpush.bf16.msra.mxu2 %v5466_v2  ;;  %2083 = vmatpush.bf16.msra.mxu3 %v5460_v38 }
 0x2bb   :  { %2045 = vmatmul.bf16.vlgmr.msra.gmra.mxu0 %v1860_v21  ;;  %2058 = vmatmul.bf16.vlgmr.msrb.gmra.mxu1 %v1860_v21 }
 0x2bc   :  { %2157 = vmatpush.bf16.msrb.mxu0 %v5171_v33  ;;  %2170 = vmatpush.bf16.msra.mxu1 %v5173_v43 }
 0x2bd   :  { %2071 = vmatmul.bf16.vlgmr.msra.gmra.mxu2 %v1860_v21  ;;  %2084 = vmatmul.bf16.vlgmr.msra.gmra.mxu3 %v1860_v21  ;;  %v6878_v21 = vld [vmem:[#allocation68_spill] sm:$0xff] }
 0x2be   :  { %2183 = vmatpush.bf16.msrb.mxu2 %v5186_v44  ;;  %2196 = vmatpush.bf16.msrb.mxu3 %v5175_v13 }
 0x2c0   :  { %2158 = vmatpush.bf16.msrb.mxu0 %v5178_v0  ;;  %2171 = vmatpush.bf16.msra.mxu1 %v5182_v54 }
 0x2c2   :  { %2184 = vmatpush.bf16.msrb.mxu2 %v5198_v28  ;;  %2197 = vmatpush.bf16.msrb.mxu3 %v5184_v59  ;;  %v6921_v28 = vld [vmem:[#allocation23_spill] sm:$0xff] }
 0x2c4   :  { %2159 = vmatpush.bf16.msrb.mxu0 %v5190_v19  ;;  %2172 = vmatpush.bf16.msra.mxu1 %v5194_v36 }
 0x2c6   :  { %2185 = vmatpush.bf16.msrb.mxu2 %v5204_v45  ;;  %2198 = vmatpush.bf16.msrb.mxu3 %v5196_v52 }
 0x2c8   :  { %2160 = vmatpush.bf16.msrb.mxu0 %v5202_v47  ;;  %2173 = vmatpush.bf16.msra.mxu1 %v5208_v1 }
 0x2ca   :  { %2186 = vmatpush.bf16.msrb.mxu2 %v5216_v29  ;;  %2199 = vmatpush.bf16.msrb.mxu3 %v5210_v3 }
 0x2cc   :  { %2161 = vmatpush.bf16.msrb.mxu0 %v5214_v14  ;;  %2174 = vmatpush.bf16.msra.mxu1 %v5220_v34 }
 0x2ce   :  { %2187 = vmatpush.bf16.msrb.mxu2 %v5228_v40  ;;  %2200 = vmatpush.bf16.msrb.mxu3 %v5222_v39  ;;  %v6885_v39 = vld [vmem:[#allocation77_spill] sm:$0xff] }
 0x2d0   :  { %2162 = vmatpush.bf16.msrb.mxu0 %v5226_v56  ;;  %2175 = vmatpush.bf16.msra.mxu1 %v5232_v5  ;;  %v6886_v56 = vld [vmem:[#allocation78_spill] sm:$0xff]  ;;  %v6887_v5 = vld [vmem:[#allocation80_spill] sm:$0xff] }
 0x2d2   :  { %2188 = vmatpush.bf16.msrb.mxu2 %v5240_v63  ;;  %2201 = vmatpush.bf16.msrb.mxu3 %v6878_v21  ;;  %v6888_v63 = vld [vmem:[#allocation76_spill] sm:$0xff]  ;;  %v6889_v21 = vld [vmem:[#allocation81_spill] sm:$0xff] }
 0x2d4   :  { %2163 = vmatpush.bf16.msrb.mxu0 %v6879_v31  ;;  %2176 = vmatpush.bf16.msra.mxu1 %v6880_v16  ;;  %v6890_v31 = vld [vmem:[#allocation79_spill] sm:$0xff]  ;;  %v6891_v16 = vld [vmem:[#allocation82_spill] sm:$0xff] }
 0x2d6   :  { %2189 = vmatpush.bf16.msrb.mxu2 %v6881_v10  ;;  %2202 = vmatpush.bf16.msrb.mxu3 %v6882_v30  ;;  %v6892_v10 = vld [vmem:[#allocation83_spill] sm:$0xff]  ;;  %v6893_v30 = vld [vmem:[#allocation85_spill] sm:$0xff] }
 0x2d8   :  { %2164 = vmatpush.bf16.msrb.mxu0 %v6883_v25  ;;  %2177 = vmatpush.bf16.msra.mxu1 %v6884_v26  ;;  %v6894_v25 = vld [vmem:[#allocation84_spill] sm:$0xff]  ;;  %v6895_v26 = vld [vmem:[#allocation86_spill] sm:$0xff] }
 0x2da   :  { %2190 = vmatpush.bf16.msrb.mxu2 %v6887_v5  ;;  %2203 = vmatpush.bf16.msrb.mxu3 %v6888_v63  ;;  %v6898_v5 = vld [vmem:[#allocation88_spill] sm:$0xff]  ;;  %v6899_v63 = vld [vmem:[#allocation90_spill] sm:$0xff] }
 0x2dc   :  { %2210 = vmatpush.bf16.msra.mxu0 %v6885_v39  ;;  %2223 = vmatpush.bf16.msrb.mxu1 %v6886_v56  ;;  %v6896_v39 = vld [vmem:[#allocation87_spill] sm:$0xff]  ;;  %v6897_v56 = vld [vmem:[#allocation89_spill] sm:$0xff] }
 0x2de   :  { %2236 = vmatpush.bf16.msra.mxu2 %v6889_v21  ;;  %2249 = vmatpush.bf16.msra.mxu3 %v6890_v31  ;;  %v6900_v21 = vld [vmem:[#allocation91_spill] sm:$0xff]  ;;  %v6901_v31 = vld [vmem:[#allocation93_spill] sm:$0xff] }
 0x2e0   :  { %2211 = vmatpush.bf16.msra.mxu0 %v6891_v16  ;;  %2224 = vmatpush.bf16.msrb.mxu1 %v6892_v10  ;;  %v6902_v16 = vld [vmem:[#allocation92_spill] sm:$0xff]  ;;  %v6903_v10 = vld [vmem:[#allocation94_spill] sm:$0xff] }
 0x2e2   :  { %2237 = vmatpush.bf16.msra.mxu2 %v6893_v30  ;;  %2250 = vmatpush.bf16.msra.mxu3 %v6894_v25  ;;  %v6904_v30 = vld [vmem:[#allocation95_spill] sm:$0xff]  ;;  %v6905_v25 = vld [vmem:[#allocation97_spill] sm:$0xff] }
 0x2e4   :  { %2212 = vmatpush.bf16.msra.mxu0 %v6895_v26  ;;  %2225 = vmatpush.bf16.msrb.mxu1 %v6896_v39  ;;  %v6906_v26 = vld [vmem:[#allocation96_spill] sm:$0xff]  ;;  %v6907_v39 = vld [vmem:[#allocation98_spill] sm:$0xff] }
 0x2e6   :  { %2238 = vmatpush.bf16.msra.mxu2 %v6897_v56  ;;  %2251 = vmatpush.bf16.msra.mxu3 %v6898_v5  ;;  %v6908_v56 = vld [vmem:[#allocation99_spill] sm:$0xff]  ;;  %v6909_v5 = vld [vmem:[#allocation101_spill] sm:$0xff] }
 0x2e8   :  { %2213 = vmatpush.bf16.msra.mxu0 %v6899_v63  ;;  %2226 = vmatpush.bf16.msrb.mxu1 %v6900_v21  ;;  %v6910_v63 = vld [vmem:[#allocation100_spill] sm:$0xff]  ;;  %v6911_v21 = vld [vmem:[#allocation102_spill] sm:$0xff] }
 0x2ea   :  { %2239 = vmatpush.bf16.msra.mxu2 %v6901_v31  ;;  %2252 = vmatpush.bf16.msra.mxu3 %v6902_v16  ;;  %v6912_v31 = vld [vmem:[#allocation103_spill] sm:$0xff]  ;;  %v6913_v16 = vld [vmem:[#allocation105_spill] sm:$0xff] }
 0x2ec   :  { %2214 = vmatpush.bf16.msra.mxu0 %v6903_v10  ;;  %2227 = vmatpush.bf16.msrb.mxu1 %v6904_v30  ;;  %v6914_v10 = vld [vmem:[#allocation104_spill] sm:$0xff]  ;;  %v6915_v30 = vld [vmem:[#allocation106_spill] sm:$0xff] }
 0x2ee   :  { %2240 = vmatpush.bf16.msra.mxu2 %v6905_v25  ;;  %2253 = vmatpush.bf16.msra.mxu3 %v6906_v26  ;;  %v6916_v25 = vld [vmem:[#allocation107_spill] sm:$0xff]  ;;  %v6917_v26 = vld [vmem:[#allocation112_spill] sm:$0xff] }
 0x2f0   :  { %2215 = vmatpush.bf16.msra.mxu0 %v6907_v39  ;;  %2228 = vmatpush.bf16.msrb.mxu1 %v6908_v56  ;;  %v6918_v39 = vld [vmem:[#allocation108_spill] sm:$0xff] }
 0x2f2   :  { %2241 = vmatpush.bf16.msra.mxu2 %v6909_v5  ;;  %2254 = vmatpush.bf16.msra.mxu3 %v6910_v63 }
 0x2f4   :  { %2216 = vmatpush.bf16.msra.mxu0 %v6911_v21  ;;  %2229 = vmatpush.bf16.msrb.mxu1 %v6912_v31  ;;  %v6919_v31 = vld [vmem:[#allocation40_spill] sm:$0xff] }
 0x2f6   :  { %2242 = vmatpush.bf16.msra.mxu2 %v6913_v16  ;;  %2255 = vmatpush.bf16.msra.mxu3 %v6914_v10 }
 0x2f8   :  { %2217 = vmatpush.bf16.msra.mxu0 %v6915_v30  ;;  %2230 = vmatpush.bf16.msrb.mxu1 %v6916_v25  ;;  %v6920_v30 = vld [vmem:[#allocation41_spill] sm:$0xff] }
 0x2fa   :  { %2243 = vmatpush.bf16.msra.mxu2 %v6917_v26  ;;  %2256 = vmatpush.bf16.msra.mxu3 %v6918_v39 }
 0x317   :  { %v1870_v56 = vpop.f32.mrf.mxu0  ;;  %v1883_v5 = vpop.f32.mrf.mxu1 }
 0x318   :  { %v1871_v14 = vadd.f32 %v1870_v56, %v6919_v31  ;;  %v1884_v1 = vadd.f32 %v1883_v5, %v6920_v30 }
 0x31e   :  { %v5657_v40 = vpop.f32.mrf.mxu2  ;;  %v1909_v63 = vpop.f32.mrf.mxu3 }
 0x31f   :  { %v1872_v21 = vpop.f32.mrf.mxu0  ;;  %v1885_v34 = vpop.f32.mrf.mxu1 }
 0x326   :  { %v1898_v16 = vpop.f32.mrf.mxu2  ;;  %v1911_v3 = vpop.f32.mrf.mxu3 }
 0x327   :  { %v1923_v10 = vpop.f32.mrf.mxu0  ;;  %v1936_v29 = vpop.f32.mrf.mxu1 }
 0x328   :  { %v1966_v25 = vadd.f32 %v1923_v10, %v1871_v14  ;;  %v1967_v47 = vadd.f32 %v1936_v29, %v1884_v1  ;;  %v6922_v14 = vld [vmem:[#allocation22_spill] sm:$0xff] }
 0x329   :  { %v6923_v29 = vld [vmem:[#allocation42_spill] sm:$0xff] }
 0x32a   :  { %v4279_v26 = vmul.f32 -1.442695, %v1966_v25  ;;  %v4280_v52 = vmul.f32 -1.442695, %v1967_v47  ;;  %v1910_v47 = vadd.f32 %v1909_v63, %v6923_v29 }
 0x32c   :  { %4600 = vpow2.f32 %v4279_v26  ;;  %v6924_v26 = vld [vmem:[#allocation24_spill] sm:$0xff] }
 0x32d   :  { %4602 = vpow2.f32 %v4280_v52 }
 0x32e   :  { %v1949_v39 = vpop.f32.mrf.mxu2  ;;  %v1962_v45 = vpop.f32.mrf.mxu3 }
 0x32f   :  { %v1925_v36 = vpop.f32.mrf.mxu0  ;;  %v1938_v19 = vpop.f32.mrf.mxu1 }
 0x330   :  { %v1969_v19 = vadd.f32 %v1962_v45, %v1910_v47 }
 0x332   :  { %v4601_v21 = vpop.eup %4600 }
 0x333   :  { %v4603_v56 = vpop.eup %4602  ;;  %v5661_v16 = vadd.f32 1.0, %v4601_v21 }
 0x334   :  { %v5666_v10 = vadd.f32 1.0, %v4603_v56 }
 0x335   :  { %4604 = vrcp.f32 %v5661_v16  ;;  %vm1979_vm14 = vweird.f32 %v5661_v16 }
 0x336   :  { %v1951_v34 = vpop.f32.mrf.mxu2  ;;  %v1964_v59 = vpop.f32.mrf.mxu3  ;;  %vm1998_vm9 = vweird.f32 %v5666_v10 }
 0x338   :  { %v2046_v3 = vpop.f32.mrf.mxu0  ;;  %v2059_v31 = vpop.f32.mrf.mxu1 }
 0x339   :  { %v2089_v5 = vadd.f32 %v2046_v3, %v6921_v28  ;;  %v2090_v1 = vadd.f32 %v2059_v31, %v6922_v14  ;;  %v4281_v31 = vmul.f32 -1.442695, %v1969_v19 }
 0x33b   :  { %v4282_v25 = vmul.f32 -1.442695, %v2089_v5  ;;  %v4283_v36 = vmul.f32 -1.442695, %v2090_v1  ;;  %v5671_v3 = vpop.eup %4604 }
 0x33c   :  { %v1975_v47 = vmul.f32 %v5671_v3, %v5661_v16  ;;  %vm1980_vm15 = vweird.f32 %v5671_v3 }
 0x33d   :  { %4606 = vpow2.f32 %v4282_v25  ;;  %vm5706_vm10 = vmor %vm1979_vm14, %vm1980_vm15 }
 0x33e   :  { %4608 = vpow2.f32 %v4283_v36 }
 0x33f   :  { %4610 = vrcp.f32 %v5666_v10 }
 0x340   :  { %v2072_v59 = vpop.f32.mrf.mxu2  ;;  %v2085_v52 = vpop.f32.mrf.mxu3 }
 0x341   :  { %v2092_v21 = vadd.f32 %v2085_v52, %v6924_v26  ;;  %v2048_v28 = vpop.f32.mrf.mxu0  ;;  %v2061_v34 = vpop.f32.mrf.mxu1 }
 0x343   :  { %v4284_v63 = vmul.f32 -1.442695, %v2092_v21  ;;  %v4607_v56 = vpop.eup %4606  ;;  %v1976_v21 = vsub.f32 1.0, %v1975_v47  ;;  %v1983_v47 = vand.u32 2147483647, %v5661_v16 }
 0x344   :  { %v4609_v5 = vpop.eup %4608  ;;  %v2096_v14 = vadd.f32 1.0, %v4607_v56 }
 0x345   :  { %4612 = vpow2.f32 %v4284_v63  ;;  %v5673_v1 = vpop.eup %4610  ;;  %v2115_v45 = vadd.f32 1.0, %v4609_v5  ;;  %v6925_v63 = vld [vmem:[#allocation43_spill] sm:$0xff]  ;;  %v6926_v5 = vld [vmem:[#allocation25_spill] sm:$0xff]  ;;  %v1977_v13 = vmul.f32 %v5671_v3, %v1976_v21  ;;  %vm1984_vm12 = vcmp.eq.f32.partialorder %v1983_v47, 8.507059e+37 }
 0x346   :  { %4614 = vpow2.f32 %v4281_v31  ;;  %v1994_v19 = vmul.f32 %v5673_v1, %v5666_v10  ;;  %v1897_v31 = vadd.f32 %v5657_v40, %v6925_v63  ;;  %v2091_v29 = vadd.f32 %v2072_v59, %v6926_v5 }
 0x347   :  { %4616 = vrcp.f32 %v2096_v14  ;;  %v2127_v5 = vand.u32 2147483648, %v2115_v45  ;;  %v2125_v21 = vand.u32 2147483647, %v2115_v45  ;;  %vm1999_vm2 = vweird.f32 %v5673_v1 }
 0x348   :  { %4618 = vrcp.f32 %v2115_v45  ;;  %v2074_v25 = vpop.f32.mrf.mxu2  ;;  %v2087_v36 = vpop.f32.mrf.mxu3  ;;  %v1995_v56 = vsub.f32 1.0, %v1994_v19  ;;  %v1978_v44 = vadd.f32 %v5671_v3, %v1977_v13  ;;  %vm2102_vm3 = vweird.f32 %v2096_v14  ;;  %vm5714_vm11 = vmor %vm1998_vm9, %vm1999_vm2 }
 0x349   :  { %v1968_v25 = vadd.f32 %v1949_v39, %v1897_v31  ;;  %v2106_v39 = vand.u32 2147483647, %v2096_v14  ;;  %vm2121_vm4 = vweird.f32 %v2115_v45  ;;  %v2128_v43 = vor.u32 1.1754944e-38, %v2127_v5 }
 0x34a   :  { %v1996_v19 = vmul.f32 %v5673_v1, %v1995_v56  ;;  %vm2126_vm8 = vcmp.eq.f32.partialorder %v2125_v21, 8.507059e+37  ;;  %v2004_v13 = vand.u32 2147483648, %v5666_v10 }
 0x34b   :  { %v4613_v52 = vpop.eup %4612  ;;  %vm2107_vm7 = vcmp.eq.f32.partialorder %v2106_v39, 8.507059e+37 }
 0x34c   :  { %v4615_v26 = vpop.eup %4614  ;;  %v5679_v28 = vadd.f32 1.0, %v4613_v52  ;;  %v2108_v52 = vand.u32 2147483648, %v2096_v14 }
 0x34d   :  { %v4617_v34 = vpop.eup %4616  ;;  %v5685_v36 = vadd.f32 1.0, %v4615_v26 }
 0x34e   :  { %v4619_v30 = vpop.eup %4618  ;;  %v2098_v54 = vmul.f32 %v4617_v34, %v2096_v14  ;;  %4620 = vrcp.f32 %v5679_v28  ;;  %vm2103_vm0 = vweird.f32 %v4617_v34  ;;  %v1985_v14 = vand.u32 2147483648, %v5661_v16 }
 0x34f   :  { %v2117_v0 = vmul.f32 %v4619_v30, %v2115_v45  ;;  %4622 = vtanh.f32 %v2091_v29  ;;  %vm2122_vm1 = vweird.f32 %v4619_v30  ;;  %vm2104_vm5 = vmor %vm2102_vm3, %vm2103_vm0  ;;  %vm2141_vm15 = vweird.f32 %v5679_v28 }
 0x350   :  { %v2099_v40 = vsub.f32 1.0, %v2098_v54  ;;  %4624 = vrcp.f32 %v5685_v36  ;;  %vm2123_vm6 = vmor %vm2121_vm4, %vm2122_vm1  ;;  %vm2018_vm3 = vweird.f32 %v5685_v36 }
 0x351   :  { %v2118_v59 = vsub.f32 1.0, %v2117_v0  ;;  %v2109_v0 = vor.u32 1.1754944e-38, %v2108_v52  ;;  %4626 = vtanh.f32 %v1968_v25  ;;  %v2147_v25 = vand.u32 2147483648, %v5679_v28 }
 0x352   :  { %v2100_v63 = vmul.f32 %v4617_v34, %v2099_v40  ;;  %v1997_v40 = vadd.f32 %v5673_v1, %v1996_v19 }
 0x353   :  { %v2119_v26 = vmul.f32 %v4619_v30, %v2118_v59 }
 0x354   :  { %v4621_v31 = vpop.eup %4620  ;;  %v2101_v54 = vadd.f32 %v4617_v34, %v2100_v63 }
 0x355   :  { %v2120_v29 = vadd.f32 %v4619_v30, %v2119_v26  ;;  %v2137_v56 = vmul.f32 %v4621_v31, %v5679_v28  ;;  %v4623_v33 = vpop.eup %4622  ;;  %vm2142_vm13 = vweird.f32 %v4621_v31 }
 0x356   :  { %v2105_v59 = vsel %vm2104_vm5, %v4617_v34, %v2101_v54  ;;  %v5699_v52 = vpop.eup %4624  ;;  %vm2143_vm0 = vmor %vm2141_vm15, %vm2142_vm13  ;;  %v2148_v54 = vor.u32 1.1754944e-38, %v2147_v25  ;;  %v6940_v25 = vld [vmem:[#allocation56_spill] sm:$0xff] }
 0x357   :  { %v2110_v38 = vsel %vm2107_vm7, %v2109_v0, %v2105_v59  ;;  %v2124_v2 = vsel %vm2123_vm6, %v4619_v30, %v2120_v29  ;;  %v2138_v27 = vsub.f32 1.0, %v2137_v56  ;;  %v2002_v30 = vand.u32 2147483647, %v5666_v10  ;;  %v4627_v47 = vpop.eup %4626 }
 0x358   :  { %v2129_v45 = vsel %vm2126_vm8, %v2128_v43, %v2124_v2  ;;  %v2152_v63 = vmul.f32 %v4623_v33, %v2110_v38  ;;  %v1982_v43 = vsel %vm5706_vm10, %v5671_v3, %v1978_v44  ;;  %v2001_v38 = vsel %vm5714_vm11, %v5673_v1, %v1997_v40  ;;  %v6933_v33 = vld [vmem:[#allocation133_spill] sm:$0xff] }
 0x359   :  { %v2151_v19 = vmul.f32 %v2129_v45, %v5553_v41  ;;  %v2139_v5 = vmul.f32 %v4621_v31, %v2138_v27  ;;  %v2005_v41 = vor.u32 1.1754944e-38, %v2004_v13  ;;  %v1986_v27 = vor.u32 1.1754944e-38, %v1985_v14 }
 0x35a   :  { %vm2003_vm14 = vcmp.eq.f32.partialorder %v2002_v30, 8.507059e+37  ;;  %v2014_v10 = vmul.f32 %v5699_v52, %v5685_v36  ;;  %v2145_v1 = vand.u32 2147483647, %v5679_v28  ;;  %vm2019_vm2 = vweird.f32 %v5699_v52 }
 0x35b   :  { %v5724_v2 = vadd.f32 %v2152_v63, %v2151_v19  ;;  %v2140_v16 = vadd.f32 %v4621_v31, %v2139_v5  ;;  %v1987_v44 = vsel %vm1984_vm12, %v1986_v27, %v1982_v43  ;;  %v2006_v3 = vsel %vm2003_vm14, %v2005_v41, %v2001_v38  ;;  %vm2020_vm4 = vmor %vm2018_vm3, %vm2019_vm2  ;;  %v6931_v19 = vld [vmem:[#allocation132_spill] sm:$0xff]  ;;  %v6932_v5 = vld [vmem:[#allocation134_spill] sm:$0xff] }
 0x35c   :  { %v2028_v26 = vmul.f32 %v2006_v3, %v5544_v53  ;;  %v2029_v21 = vmul.f32 %v4627_v47, %v1987_v44  ;;  %v2015_v0 = vsub.f32 1.0, %v2014_v10  ;;  %vm2146_vm1 = vcmp.eq.f32.partialorder %v2145_v1, 8.507059e+37  ;;  %v6934_v43 = vld [vmem:[#allocation46_spill] sm:$0xff]  ;;  %v6935_v38 = vld [vmem:[#allocation47_spill] sm:$0xff]  ;;  %v6936_v41 = vld [vmem:[#allocation52_spill] sm:$0xff] }
 0x35d   :  { %4628 = vtanh.f32 %v5724_v2  ;;  %v2144_v39 = vsel %vm2143_vm0, %v4621_v31, %v2140_v16  ;;  %v2024_v28 = vand.u32 2147483648, %v5685_v36  ;;  %v2022_v31 = vand.u32 2147483647, %v5685_v36  ;;  %v6937_v27 = vld [vmem:[#allocation48_spill] sm:$0xff]  ;;  %v6938_v16 = vld [vmem:[#allocation49_spill] sm:$0xff]  ;;  %v6939_v10 = vld [vmem:[#allocation50_spill] sm:$0xff] }
 0x35e   :  { %v2149_v56 = vsel %vm2146_vm1, %v2148_v54, %v2144_v39  ;;  %v5733_v59 = vadd.f32 %v2029_v21, %v2028_v26  ;;  %v2016_v14 = vmul.f32 %v5699_v52, %v2015_v0  ;;  %v6941_v44 = vld [vmem:[#allocation51_spill] sm:$0xff]  ;;  %v6942_v3 = vld [vmem:[#allocation53_spill] sm:$0xff]  ;;  %v6943_v1 = vld [vmem:[#allocation54_spill] sm:$0xff] }
 0x35f   :  { %v2025_v34 = vor.u32 1.1754944e-38, %v2024_v28  ;;  %vm2023_vm5 = vcmp.eq.f32.partialorder %v2022_v31, 8.507059e+37  ;;  %v6944_v47 = vld [vmem:[#allocation58_spill] sm:$0xff]  ;;  %v6945_v39 = vld [vmem:[#allocation55_spill] sm:$0xff]  ;;  %v6946_v26 = vld [vmem:[#allocation57_spill] sm:$0xff] }
 0x360   :  { %4630 = vtanh.f32 %v5733_v59  ;;  %v2017_v53 = vadd.f32 %v5699_v52, %v2016_v14  ;;  %v6947_v21 = vld [vmem:[#allocation59_spill] sm:$0xff]  ;;  %v6948_v54 = vld [vmem:[#allocation62_spill] sm:$0xff]  ;;  %v6949_v0 = vld [vmem:[#allocation60_spill] sm:$0xff] }
 0x361   :  { %v6954_v14 = vld [vmem:[#allocation65_spill] sm:$0xff]  ;;  %v6956_v28 = vld [vmem:[#allocation70_spill] sm:$0xff]  ;;  %v6957_v31 = vld [vmem:[#allocation68_spill] sm:$0xff] }
 0x362   :  { %v2021_v45 = vsel %vm2020_vm4, %v5699_v52, %v2017_v53  ;;  %v6955_v53 = vld [vmem:[#allocation67_spill] sm:$0xff] }
 0x363   :  { %v4629_v29 = vpop.eup %4628  ;;  %v2026_v30 = vsel %vm2023_vm5, %v2025_v34, %v2021_v45  ;;  %v6958_v45 = vld [vmem:[#allocation69_spill] sm:$0xff]  ;;  %v6960_v34 = vld [vmem:[#allocation74_spill] sm:$0xff] }
 0x364   :  { %v2155_v40 = vmul.f32 %v4629_v29, %v2149_v56  ;;  %v6950_v29 = vld [vmem:[#allocation61_spill] sm:$0xff]  ;;  %v6951_v56 = vld [vmem:[#allocation63_spill] sm:$0xff] }
 0x366   :  { %v2156_v13 = vpack.c.bf16 %v2155_v40, %v2155_v40  ;;  %v4631_v63 = vpop.eup %4630  ;;  %v6952_v40 = vld [vmem:[#allocation66_spill] sm:$0xff] }
 0x367   :  { %v2032_v36 = vmul.f32 %v4631_v63, %v2026_v30  ;;  %v6959_v63 = vld [vmem:[#allocation71_spill] sm:$0xff]  ;;  %v6961_v30 = vld [vmem:[#allocation72_spill] sm:$0xff] }
 0x368   :  { %2165 = vmatmul.bf16.vlgmr.msrb.gmra.mxu0 %v2156_v13  ;;  %2178 = vmatmul.bf16.vlgmr.msra.gmra.mxu1 %v2156_v13 }
 0x369   :  { %2191 = vmatmul.bf16.vlgmr.msrb.gmra.mxu2 %v2156_v13  ;;  %2204 = vmatmul.bf16.vlgmr.msrb.gmra.mxu3 %v2156_v13  ;;  %v2209_v52 = vpack.c.bf16 %v2032_v36, %v2032_v36  ;;  %v6962_v36 = vld [vmem:[#allocation73_spill] sm:$0xff] }
 0x36a   :  { %2333 = vmatpush.bf16.msrb.mxu0 %v6858_v17  ;;  %2346 = vmatpush.bf16.msra.mxu1 %v6859_v23 }
 0x36b   :  { %2359 = vmatpush.bf16.msrb.mxu2 %v6860_v61  ;;  %2372 = vmatpush.bf16.msrb.mxu3 %v6861_v58 }
 0x36e   :  { %2334 = vmatpush.bf16.msrb.mxu0 %v6862_v49  ;;  %2347 = vmatpush.bf16.msra.mxu1 %v5385_v55 }
 0x36f   :  { %2360 = vmatpush.bf16.msrb.mxu2 %v6863_v62  ;;  %2373 = vmatpush.bf16.msrb.mxu3 %v6864_v6 }
 0x372   :  { %2335 = vmatpush.bf16.msrb.mxu0 %v6865_v18  ;;  %2348 = vmatpush.bf16.msra.mxu1 %v6866_v11 }
 0x373   :  { %2361 = vmatpush.bf16.msrb.mxu2 %v6867_v24  ;;  %2374 = vmatpush.bf16.msrb.mxu3 %v6868_v46 }
 0x376   :  { %2336 = vmatpush.bf16.msrb.mxu0 %v6869_v15  ;;  %2349 = vmatpush.bf16.msra.mxu1 %v6870_v51 }
 0x377   :  { %2362 = vmatpush.bf16.msrb.mxu2 %v6871_v8  ;;  %2375 = vmatpush.bf16.msrb.mxu3 %v6872_v32 }
 0x378   :  { %2218 = vmatmul.bf16.vlgmr.msra.gmra.mxu0 %v2209_v52  ;;  %2231 = vmatmul.bf16.vlgmr.msrb.gmra.mxu1 %v2209_v52 }
 0x379   :  { %2244 = vmatmul.bf16.vlgmr.msra.gmra.mxu2 %v2209_v52  ;;  %2257 = vmatmul.bf16.vlgmr.msra.gmra.mxu3 %v2209_v52  ;;  %v6963_v52 = vld [vmem:[#allocation75_spill] sm:$0xff] }
 0x37a   :  { %2337 = vmatpush.bf16.msrb.mxu0 %v6873_v20  ;;  %2350 = vmatpush.bf16.msra.mxu1 %v6874_v35 }
 0x37b   :  { %2363 = vmatpush.bf16.msrb.mxu2 %v6875_v37  ;;  %2376 = vmatpush.bf16.msrb.mxu3 %v6876_v57 }
 0x37e   :  { %2338 = vmatpush.bf16.msrb.mxu0 %v6877_v48  ;;  %2351 = vmatpush.bf16.msra.mxu1 %v5434_v12 }
 0x37f   :  { %2364 = vmatpush.bf16.msrb.mxu2 %v5442_v60  ;;  %2377 = vmatpush.bf16.msrb.mxu3 %v5436_v50 }
 0x382   :  { %2339 = vmatpush.bf16.msrb.mxu0 %v5440_v42  ;;  %2352 = vmatpush.bf16.msra.mxu1 %v5446_v4 }
 0x383   :  { %2365 = vmatpush.bf16.msrb.mxu2 %v5454_v9  ;;  %2378 = vmatpush.bf16.msrb.mxu3 %v5448_v22 }
 0x386   :  { %2340 = vmatpush.bf16.msrb.mxu0 %v5452_v7  ;;  %2353 = vmatpush.bf16.msra.mxu1 %v6931_v19 }
 0x387   :  { %2366 = vmatpush.bf16.msrb.mxu2 %v6932_v5  ;;  %2379 = vmatpush.bf16.msrb.mxu3 %v6933_v33 }
 0x389   :  { %2341 = vmatmul.bf16.vlgmr.msrb.gmra.mxu0 %v2156_v13  ;;  %2354 = vmatmul.bf16.vlgmr.msra.gmra.mxu1 %v2156_v13 }
 0x38a   :  { %2453 = vmatpush.bf16.msra.mxu0 %v6934_v43  ;;  %2466 = vmatpush.bf16.msrb.mxu1 %v6935_v38 }
 0x38b   :  { %2367 = vmatmul.bf16.vlgmr.msrb.gmra.mxu2 %v2156_v13  ;;  %2380 = vmatmul.bf16.vlgmr.msrb.gmra.mxu3 %v2156_v13  ;;  %v6953_v13 = vld [vmem:[#allocation64_spill] sm:$0xff] }
 0x38c   :  { %2479 = vmatpush.bf16.msra.mxu2 %v6936_v41  ;;  %2492 = vmatpush.bf16.msra.mxu3 %v6937_v27 }
 0x38e   :  { %2454 = vmatpush.bf16.msra.mxu0 %v6938_v16  ;;  %2467 = vmatpush.bf16.msrb.mxu1 %v6939_v10 }
 0x390   :  { %2480 = vmatpush.bf16.msra.mxu2 %v6940_v25  ;;  %2493 = vmatpush.bf16.msra.mxu3 %v6941_v44  ;;  %v7000_v25 = vld [vmem:[#allocation27_spill] sm:$0xff] }
 0x392   :  { %2455 = vmatpush.bf16.msra.mxu0 %v6942_v3  ;;  %2468 = vmatpush.bf16.msrb.mxu1 %v6943_v1 }
 0x394   :  { %2481 = vmatpush.bf16.msra.mxu2 %v6944_v47  ;;  %2494 = vmatpush.bf16.msra.mxu3 %v6945_v39 }
 0x396   :  { %2456 = vmatpush.bf16.msra.mxu0 %v6946_v26  ;;  %2469 = vmatpush.bf16.msrb.mxu1 %v6947_v21 }
 0x398   :  { %2482 = vmatpush.bf16.msra.mxu2 %v6948_v54  ;;  %2495 = vmatpush.bf16.msra.mxu3 %v6949_v0 }
 0x39a   :  { %2457 = vmatpush.bf16.msra.mxu0 %v6950_v29  ;;  %2470 = vmatpush.bf16.msrb.mxu1 %v6951_v56 }
 0x39c   :  { %2483 = vmatpush.bf16.msra.mxu2 %v6952_v40  ;;  %2496 = vmatpush.bf16.msra.mxu3 %v6953_v13  ;;  %v6964_v13 = vld [vmem:[#allocation77_spill] sm:$0xff] }
 0x39e   :  { %2458 = vmatpush.bf16.msra.mxu0 %v6954_v14  ;;  %2471 = vmatpush.bf16.msrb.mxu1 %v6955_v53  ;;  %v6965_v14 = vld [vmem:[#allocation78_spill] sm:$0xff]  ;;  %v6966_v53 = vld [vmem:[#allocation80_spill] sm:$0xff] }
 0x3a0   :  { %2484 = vmatpush.bf16.msra.mxu2 %v6956_v28  ;;  %2497 = vmatpush.bf16.msra.mxu3 %v6957_v31  ;;  %v6967_v28 = vld [vmem:[#allocation76_spill] sm:$0xff]  ;;  %v6968_v31 = vld [vmem:[#allocation81_spill] sm:$0xff] }
 0x3a2   :  { %2459 = vmatpush.bf16.msra.mxu0 %v6958_v45  ;;  %2472 = vmatpush.bf16.msrb.mxu1 %v6959_v63  ;;  %v6969_v45 = vld [vmem:[#allocation79_spill] sm:$0xff]  ;;  %v6970_v63 = vld [vmem:[#allocation82_spill] sm:$0xff] }
 0x3a4   :  { %2485 = vmatpush.bf16.msra.mxu2 %v6960_v34  ;;  %2498 = vmatpush.bf16.msra.mxu3 %v6961_v30  ;;  %v6971_v34 = vld [vmem:[#allocation83_spill] sm:$0xff]  ;;  %v6972_v30 = vld [vmem:[#allocation85_spill] sm:$0xff] }
 0x3a6   :  { %2460 = vmatpush.bf16.msra.mxu0 %v6962_v36  ;;  %2473 = vmatpush.bf16.msrb.mxu1 %v6963_v52  ;;  %v6973_v36 = vld [vmem:[#allocation84_spill] sm:$0xff]  ;;  %v6974_v52 = vld [vmem:[#allocation86_spill] sm:$0xff] }
 0x3a8   :  { %2486 = vmatpush.bf16.msra.mxu2 %v6966_v53  ;;  %2499 = vmatpush.bf16.msra.mxu3 %v6967_v28  ;;  %v6977_v53 = vld [vmem:[#allocation88_spill] sm:$0xff]  ;;  %v6978_v28 = vld [vmem:[#allocation90_spill] sm:$0xff] }
 0x3aa   :  { %2506 = vmatpush.bf16.msrb.mxu0 %v6964_v13  ;;  %2519 = vmatpush.bf16.msra.mxu1 %v6965_v14  ;;  %v6975_v13 = vld [vmem:[#allocation87_spill] sm:$0xff]  ;;  %v6976_v14 = vld [vmem:[#allocation89_spill] sm:$0xff] }
 0x3ac   :  { %2532 = vmatpush.bf16.msrb.mxu2 %v6968_v31  ;;  %2545 = vmatpush.bf16.msrb.mxu3 %v6969_v45  ;;  %v6979_v31 = vld [vmem:[#allocation91_spill] sm:$0xff]  ;;  %v6980_v45 = vld [vmem:[#allocation93_spill] sm:$0xff] }
 0x3ae   :  { %2507 = vmatpush.bf16.msrb.mxu0 %v6970_v63  ;;  %2520 = vmatpush.bf16.msra.mxu1 %v6971_v34  ;;  %v6981_v63 = vld [vmem:[#allocation92_spill] sm:$0xff]  ;;  %v6982_v34 = vld [vmem:[#allocation94_spill] sm:$0xff] }
 0x3b0   :  { %2533 = vmatpush.bf16.msrb.mxu2 %v6972_v30  ;;  %2546 = vmatpush.bf16.msrb.mxu3 %v6973_v36  ;;  %v6983_v30 = vld [vmem:[#allocation95_spill] sm:$0xff]  ;;  %v6984_v36 = vld [vmem:[#allocation97_spill] sm:$0xff] }
 0x3b2   :  { %2508 = vmatpush.bf16.msrb.mxu0 %v6974_v52  ;;  %2521 = vmatpush.bf16.msra.mxu1 %v6975_v13  ;;  %v6985_v52 = vld [vmem:[#allocation96_spill] sm:$0xff]  ;;  %v6986_v13 = vld [vmem:[#allocation98_spill] sm:$0xff] }
 0x3b4   :  { %2534 = vmatpush.bf16.msrb.mxu2 %v6976_v14  ;;  %2547 = vmatpush.bf16.msrb.mxu3 %v6977_v53  ;;  %v6987_v14 = vld [vmem:[#allocation99_spill] sm:$0xff]  ;;  %v6988_v53 = vld [vmem:[#allocation101_spill] sm:$0xff] }
 0x3b6   :  { %2509 = vmatpush.bf16.msrb.mxu0 %v6978_v28  ;;  %2522 = vmatpush.bf16.msra.mxu1 %v6979_v31  ;;  %v6989_v28 = vld [vmem:[#allocation100_spill] sm:$0xff]  ;;  %v6990_v31 = vld [vmem:[#allocation102_spill] sm:$0xff] }
 0x3b8   :  { %2535 = vmatpush.bf16.msrb.mxu2 %v6980_v45  ;;  %2548 = vmatpush.bf16.msrb.mxu3 %v6981_v63  ;;  %v6991_v45 = vld [vmem:[#allocation103_spill] sm:$0xff]  ;;  %v6992_v63 = vld [vmem:[#allocation105_spill] sm:$0xff] }
 0x3ba   :  { %2510 = vmatpush.bf16.msrb.mxu0 %v6982_v34  ;;  %2523 = vmatpush.bf16.msra.mxu1 %v6983_v30  ;;  %v6993_v34 = vld [vmem:[#allocation104_spill] sm:$0xff]  ;;  %v6994_v30 = vld [vmem:[#allocation106_spill] sm:$0xff] }
 0x3bc   :  { %2536 = vmatpush.bf16.msrb.mxu2 %v6984_v36  ;;  %2549 = vmatpush.bf16.msrb.mxu3 %v6985_v52  ;;  %v6995_v36 = vld [vmem:[#allocation107_spill] sm:$0xff]  ;;  %v6996_v52 = vld [vmem:[#allocation112_spill] sm:$0xff] }
 0x3be   :  { %2511 = vmatpush.bf16.msrb.mxu0 %v6986_v13  ;;  %2524 = vmatpush.bf16.msra.mxu1 %v6987_v14  ;;  %v6997_v13 = vld [vmem:[#allocation108_spill] sm:$0xff] }
 0x3c0   :  { %2537 = vmatpush.bf16.msrb.mxu2 %v6988_v53  ;;  %2550 = vmatpush.bf16.msrb.mxu3 %v6989_v28 }
 0x3c2   :  { %2512 = vmatpush.bf16.msrb.mxu0 %v6990_v31  ;;  %2525 = vmatpush.bf16.msra.mxu1 %v6991_v45  ;;  %v6998_v45 = vld [vmem:[#allocation40_spill] sm:$0xff] }
 0x3c4   :  { %2538 = vmatpush.bf16.msrb.mxu2 %v6992_v63  ;;  %2551 = vmatpush.bf16.msrb.mxu3 %v6993_v34 }
 0x3c6   :  { %2513 = vmatpush.bf16.msrb.mxu0 %v6994_v30  ;;  %2526 = vmatpush.bf16.msra.mxu1 %v6995_v36  ;;  %v6999_v30 = vld [vmem:[#allocation41_spill] sm:$0xff] }
 0x3c8   :  { %2539 = vmatpush.bf16.msrb.mxu2 %v6996_v52  ;;  %2552 = vmatpush.bf16.msrb.mxu3 %v6997_v13 }
 0x3e5   :  { %v2166_v14 = vpop.f32.mrf.mxu0  ;;  %v2179_v53 = vpop.f32.mrf.mxu1 }
 0x3e6   :  { %v2167_v29 = vadd.f32 %v2166_v14, %v6998_v45  ;;  %v2180_v21 = vadd.f32 %v2179_v53, %v6999_v30 }
 0x3ec   :  { %v5839_v40 = vpop.f32.mrf.mxu2  ;;  %v2205_v28 = vpop.f32.mrf.mxu3 }
 0x3ed   :  { %v2168_v31 = vpop.f32.mrf.mxu0  ;;  %v2181_v56 = vpop.f32.mrf.mxu1 }
 0x3f4   :  { %v2194_v63 = vpop.f32.mrf.mxu2  ;;  %v2207_v0 = vpop.f32.mrf.mxu3 }
 0x3f5   :  { %v2219_v34 = vpop.f32.mrf.mxu0  ;;  %v2232_v54 = vpop.f32.mrf.mxu1 }
 0x3f6   :  { %v2262_v36 = vadd.f32 %v2219_v34, %v2167_v29  ;;  %v2263_v26 = vadd.f32 %v2232_v54, %v2180_v21  ;;  %v7001_v29 = vld [vmem:[#allocation26_spill] sm:$0xff] }
 0x3f7   :  { %v7002_v54 = vld [vmem:[#allocation42_spill] sm:$0xff] }
 0x3f8   :  { %v4285_v52 = vmul.f32 -1.442695, %v2262_v36  ;;  %v4286_v39 = vmul.f32 -1.442695, %v2263_v26  ;;  %v2206_v26 = vadd.f32 %v2205_v28, %v7002_v54 }
 0x3fa   :  { %4632 = vpow2.f32 %v4285_v52  ;;  %v7003_v52 = vld [vmem:[#allocation28_spill] sm:$0xff] }
 0x3fb   :  { %4634 = vpow2.f32 %v4286_v39 }
 0x3fc   :  { %v2245_v13 = vpop.f32.mrf.mxu2  ;;  %v2258_v47 = vpop.f32.mrf.mxu3 }
 0x3fd   :  { %v2221_v1 = vpop.f32.mrf.mxu0  ;;  %v2234_v3 = vpop.f32.mrf.mxu1 }
 0x3fe   :  { %v2265_v3 = vadd.f32 %v2258_v47, %v2206_v26 }
 0x400   :  { %v4633_v31 = vpop.eup %4632 }
 0x401   :  { %v4635_v14 = vpop.eup %4634  ;;  %v5843_v63 = vadd.f32 1.0, %v4633_v31 }
 0x402   :  { %v5848_v34 = vadd.f32 1.0, %v4635_v14 }
 0x403   :  { %4636 = vrcp.f32 %v5843_v63  ;;  %vm2275_vm6 = vweird.f32 %v5843_v63 }
 0x404   :  { %v2247_v56 = vpop.f32.mrf.mxu2  ;;  %v2260_v44 = vpop.f32.mrf.mxu3  ;;  %vm2294_vm1 = vweird.f32 %v5848_v34 }
 0x406   :  { %v2342_v0 = vpop.f32.mrf.mxu0  ;;  %v2355_v45 = vpop.f32.mrf.mxu1 }
 0x407   :  { %v2385_v53 = vadd.f32 %v2342_v0, %v7000_v25  ;;  %v2386_v21 = vadd.f32 %v2355_v45, %v7001_v29  ;;  %v4287_v45 = vmul.f32 -1.442695, %v2265_v3 }
 0x409   :  { %v4288_v36 = vmul.f32 -1.442695, %v2385_v53  ;;  %v4289_v1 = vmul.f32 -1.442695, %v2386_v21  ;;  %v5853_v0 = vpop.eup %4636 }
 0x40a   :  { %v2271_v26 = vmul.f32 %v5853_v0, %v5843_v63  ;;  %vm2276_vm7 = vweird.f32 %v5853_v0 }
 0x40b   :  { %4638 = vpow2.f32 %v4288_v36  ;;  %vm5888_vm2 = vmor %vm2275_vm6, %vm2276_vm7 }
 0x40c   :  { %4640 = vpow2.f32 %v4289_v1 }
 0x40d   :  { %4642 = vrcp.f32 %v5848_v34 }
 0x40e   :  { %v2368_v44 = vpop.f32.mrf.mxu2  ;;  %v2381_v39 = vpop.f32.mrf.mxu3 }
 0x40f   :  { %v2388_v31 = vadd.f32 %v2381_v39, %v7003_v52  ;;  %v2344_v25 = vpop.f32.mrf.mxu0  ;;  %v2357_v56 = vpop.f32.mrf.mxu1 }
 0x411   :  { %v4290_v28 = vmul.f32 -1.442695, %v2388_v31  ;;  %v4639_v14 = vpop.eup %4638  ;;  %v2272_v31 = vsub.f32 1.0, %v2271_v26  ;;  %v2279_v26 = vand.u32 2147483647, %v5843_v63 }
 0x412   :  { %v4641_v53 = vpop.eup %4640  ;;  %v2392_v29 = vadd.f32 1.0, %v4639_v14 }
 0x413   :  { %4644 = vpow2.f32 %v4290_v28  ;;  %v5855_v21 = vpop.eup %4642  ;;  %v2411_v47 = vadd.f32 1.0, %v4641_v53  ;;  %v7004_v28 = vld [vmem:[#allocation43_spill] sm:$0xff]  ;;  %v7005_v53 = vld [vmem:[#allocation29_spill] sm:$0xff]  ;;  %v2273_v27 = vmul.f32 %v5853_v0, %v2272_v31  ;;  %vm2280_vm4 = vcmp.eq.f32.partialorder %v2279_v26, 8.507059e+37 }
 0x414   :  { %4646 = vpow2.f32 %v4287_v45  ;;  %v2290_v3 = vmul.f32 %v5855_v21, %v5848_v34  ;;  %v2193_v45 = vadd.f32 %v5839_v40, %v7004_v28  ;;  %v2387_v54 = vadd.f32 %v2368_v44, %v7005_v53 }
 0x415   :  { %4648 = vrcp.f32 %v2392_v29  ;;  %v2423_v53 = vand.u32 2147483648, %v2411_v47  ;;  %v2421_v31 = vand.u32 2147483647, %v2411_v47  ;;  %vm2295_vm10 = vweird.f32 %v5855_v21 }
 0x416   :  { %4650 = vrcp.f32 %v2411_v47  ;;  %v2370_v36 = vpop.f32.mrf.mxu2  ;;  %v2383_v1 = vpop.f32.mrf.mxu3  ;;  %v2291_v14 = vsub.f32 1.0, %v2290_v3  ;;  %v2274_v41 = vadd.f32 %v5853_v0, %v2273_v27  ;;  %vm2398_vm11 = vweird.f32 %v2392_v29  ;;  %vm5896_vm3 = vmor %vm2294_vm1, %vm2295_vm10 }
 0x417   :  { %v2264_v36 = vadd.f32 %v2245_v13, %v2193_v45  ;;  %v2402_v13 = vand.u32 2147483647, %v2392_v29  ;;  %vm2417_vm12 = vweird.f32 %v2411_v47  ;;  %v2424_v38 = vor.u32 1.1754944e-38, %v2423_v53 }
 0x418   :  { %v2292_v3 = vmul.f32 %v5855_v21, %v2291_v14  ;;  %vm2422_vm0 = vcmp.eq.f32.partialorder %v2421_v31, 8.507059e+37  ;;  %v2300_v27 = vand.u32 2147483648, %v5848_v34 }
 0x419   :  { %v4645_v39 = vpop.eup %4644  ;;  %vm2403_vm15 = vcmp.eq.f32.partialorder %v2402_v13, 8.507059e+37 }
 0x41a   :  { %v4647_v52 = vpop.eup %4646  ;;  %v5861_v25 = vadd.f32 1.0, %v4645_v39  ;;  %v2404_v39 = vand.u32 2147483648, %v2392_v29 }
 0x41b   :  { %v4649_v56 = vpop.eup %4648  ;;  %v5867_v1 = vadd.f32 1.0, %v4647_v52 }
 0x41c   :  { %v4651_v30 = vpop.eup %4650  ;;  %v2394_v10 = vmul.f32 %v4649_v56, %v2392_v29  ;;  %4652 = vrcp.f32 %v5861_v25  ;;  %vm2399_vm8 = vweird.f32 %v4649_v56  ;;  %v2281_v29 = vand.u32 2147483648, %v5843_v63 }
 0x41d   :  { %v2413_v16 = vmul.f32 %v4651_v30, %v2411_v47  ;;  %4654 = vtanh.f32 %v2387_v54  ;;  %vm2418_vm9 = vweird.f32 %v4651_v30  ;;  %vm2400_vm13 = vmor %vm2398_vm11, %vm2399_vm8  ;;  %vm2437_vm7 = vweird.f32 %v5861_v25 }
 0x41e   :  { %v2395_v40 = vsub.f32 1.0, %v2394_v10  ;;  %4656 = vrcp.f32 %v5867_v1  ;;  %vm2419_vm14 = vmor %vm2417_vm12, %vm2418_vm9  ;;  %vm2314_vm11 = vweird.f32 %v5867_v1 }
 0x41f   :  { %v2414_v44 = vsub.f32 1.0, %v2413_v16  ;;  %v2405_v16 = vor.u32 1.1754944e-38, %v2404_v39  ;;  %4658 = vtanh.f32 %v2264_v36  ;;  %v2443_v36 = vand.u32 2147483648, %v5861_v25 }
 0x420   :  { %v2396_v28 = vmul.f32 %v4649_v56, %v2395_v40  ;;  %v2293_v40 = vadd.f32 %v5855_v21, %v2292_v3 }
 0x421   :  { %v2415_v52 = vmul.f32 %v4651_v30, %v2414_v44 }
 0x422   :  { %v4653_v45 = vpop.eup %4652  ;;  %v2397_v10 = vadd.f32 %v4649_v56, %v2396_v28 }
 0x423   :  { %v2416_v54 = vadd.f32 %v4651_v30, %v2415_v52  ;;  %v2433_v14 = vmul.f32 %v4653_v45, %v5861_v25  ;;  %v4655_v43 = vpop.eup %4654  ;;  %vm2438_vm5 = vweird.f32 %v4653_v45 }
 0x424   :  { %v2401_v44 = vsel %vm2400_vm13, %v4649_v56, %v2397_v10  ;;  %v5881_v39 = vpop.eup %4656  ;;  %vm2439_vm8 = vmor %vm2437_vm7, %vm2438_vm5  ;;  %v2444_v10 = vor.u32 1.1754944e-38, %v2443_v36  ;;  %v7019_v36 = vld [vmem:[#allocation56_spill] sm:$0xff] }
 0x425   :  { %v2406_v33 = vsel %vm2403_vm15, %v2405_v16, %v2401_v44  ;;  %v2420_v5 = vsel %vm2419_vm14, %v4651_v30, %v2416_v54  ;;  %v2434_v19 = vsub.f32 1.0, %v2433_v14  ;;  %v2298_v30 = vand.u32 2147483647, %v5848_v34  ;;  %v4659_v26 = vpop.eup %4658 }
 0x426   :  { %v2425_v47 = vsel %vm2422_vm0, %v2424_v38, %v2420_v5  ;;  %v2448_v28 = vmul.f32 %v4655_v43, %v2406_v33  ;;  %v2278_v33 = vsel %vm5888_vm2, %v5853_v0, %v2274_v41  ;;  %v2297_v43 = vsel %vm5896_vm3, %v5855_v21, %v2293_v40  ;;  %v7012_v5 = vld [vmem:[#allocation133_spill] sm:$0xff] }
 0x427   :  { %v2447_v3 = vmul.f32 %v2425_v47, %v5724_v2  ;;  %v2435_v53 = vmul.f32 %v4653_v45, %v2434_v19  ;;  %v2301_v2 = vor.u32 1.1754944e-38, %v2300_v27  ;;  %v2282_v19 = vor.u32 1.1754944e-38, %v2281_v29 }
 0x428   :  { %vm2299_vm6 = vcmp.eq.f32.partialorder %v2298_v30, 8.507059e+37  ;;  %v2310_v34 = vmul.f32 %v5881_v39, %v5867_v1  ;;  %v2441_v21 = vand.u32 2147483647, %v5861_v25  ;;  %vm2315_vm10 = vweird.f32 %v5881_v39 }
 0x429   :  { %v5906_v38 = vadd.f32 %v2448_v28, %v2447_v3  ;;  %v2436_v63 = vadd.f32 %v4653_v45, %v2435_v53  ;;  %v2283_v41 = vsel %vm2280_vm4, %v2282_v19, %v2278_v33  ;;  %v2302_v0 = vsel %vm2299_vm6, %v2301_v2, %v2297_v43  ;;  %vm2316_vm12 = vmor %vm2314_vm11, %vm2315_vm10  ;;  %v7010_v3 = vld [vmem:[#allocation132_spill] sm:$0xff]  ;;  %v7011_v53 = vld [vmem:[#allocation134_spill] sm:$0xff] }
 0x42a   :  { %v2324_v52 = vmul.f32 %v2302_v0, %v5733_v59  ;;  %v2325_v31 = vmul.f32 %v4659_v26, %v2283_v41  ;;  %v2311_v16 = vsub.f32 1.0, %v2310_v34  ;;  %vm2442_vm9 = vcmp.eq.f32.partialorder %v2441_v21, 8.507059e+37  ;;  %v7013_v33 = vld [vmem:[#allocation46_spill] sm:$0xff]  ;;  %v7014_v43 = vld [vmem:[#allocation47_spill] sm:$0xff]  ;;  %v7015_v2 = vld [vmem:[#allocation52_spill] sm:$0xff] }
 0x42b   :  { %4660 = vtanh.f32 %v5906_v38  ;;  %v2440_v13 = vsel %vm2439_vm8, %v4653_v45, %v2436_v63  ;;  %v2320_v25 = vand.u32 2147483648, %v5867_v1  ;;  %v2318_v45 = vand.u32 2147483647, %v5867_v1  ;;  %v7016_v19 = vld [vmem:[#allocation48_spill] sm:$0xff]  ;;  %v7017_v63 = vld [vmem:[#allocation49_spill] sm:$0xff]  ;;  %v7018_v34 = vld [vmem:[#allocation50_spill] sm:$0xff] }
 0x42c   :  { %v2445_v14 = vsel %vm2442_vm9, %v2444_v10, %v2440_v13  ;;  %v5915_v44 = vadd.f32 %v2325_v31, %v2324_v52  ;;  %v2312_v29 = vmul.f32 %v5881_v39, %v2311_v16  ;;  %v7020_v41 = vld [vmem:[#allocation51_spill] sm:$0xff]  ;;  %v7021_v0 = vld [vmem:[#allocation53_spill] sm:$0xff]  ;;  %v7022_v21 = vld [vmem:[#allocation54_spill] sm:$0xff] }
 0x42d   :  { %v2321_v56 = vor.u32 1.1754944e-38, %v2320_v25  ;;  %vm2319_vm13 = vcmp.eq.f32.partialorder %v2318_v45, 8.507059e+37  ;;  %v7023_v26 = vld [vmem:[#allocation58_spill] sm:$0xff]  ;;  %v7024_v13 = vld [vmem:[#allocation55_spill] sm:$0xff]  ;;  %v7025_v52 = vld [vmem:[#allocation57_spill] sm:$0xff] }
 0x42e   :  { %4662 = vtanh.f32 %v5915_v44  ;;  %v2313_v59 = vadd.f32 %v5881_v39, %v2312_v29  ;;  %v7026_v31 = vld [vmem:[#allocation59_spill] sm:$0xff]  ;;  %v7027_v10 = vld [vmem:[#allocation62_spill] sm:$0xff]  ;;  %v7028_v16 = vld [vmem:[#allocation60_spill] sm:$0xff] }
 0x42f   :  { %v7033_v29 = vld [vmem:[#allocation65_spill] sm:$0xff]  ;;  %v7035_v25 = vld [vmem:[#allocation70_spill] sm:$0xff]  ;;  %v7036_v45 = vld [vmem:[#allocation68_spill] sm:$0xff] }
 0x430   :  { %v2317_v47 = vsel %vm2316_vm12, %v5881_v39, %v2313_v59  ;;  %v7034_v59 = vld [vmem:[#allocation67_spill] sm:$0xff] }
 0x431   :  { %v4661_v54 = vpop.eup %4660  ;;  %v2322_v30 = vsel %vm2319_vm13, %v2321_v56, %v2317_v47  ;;  %v7037_v47 = vld [vmem:[#allocation69_spill] sm:$0xff]  ;;  %v7039_v56 = vld [vmem:[#allocation74_spill] sm:$0xff] }
 0x432   :  { %v2451_v40 = vmul.f32 %v4661_v54, %v2445_v14  ;;  %v7029_v54 = vld [vmem:[#allocation61_spill] sm:$0xff]  ;;  %v7030_v14 = vld [vmem:[#allocation63_spill] sm:$0xff] }
 0x434   :  { %v2452_v27 = vpack.c.bf16 %v2451_v40, %v2451_v40  ;;  %v4663_v28 = vpop.eup %4662  ;;  %v7031_v40 = vld [vmem:[#allocation66_spill] sm:$0xff] }
 0x435   :  { %v2328_v1 = vmul.f32 %v4663_v28, %v2322_v30  ;;  %v7038_v28 = vld [vmem:[#allocation71_spill] sm:$0xff]  ;;  %v7040_v30 = vld [vmem:[#allocation72_spill] sm:$0xff] }
 0x436   :  { %2461 = vmatmul.bf16.vlgmr.msra.gmra.mxu0 %v2452_v27  ;;  %2474 = vmatmul.bf16.vlgmr.msrb.gmra.mxu1 %v2452_v27 }
 0x437   :  { %2487 = vmatmul.bf16.vlgmr.msra.gmra.mxu2 %v2452_v27  ;;  %2500 = vmatmul.bf16.vlgmr.msra.gmra.mxu3 %v2452_v27  ;;  %v2505_v39 = vpack.c.bf16 %v2328_v1, %v2328_v1  ;;  %v7041_v1 = vld [vmem:[#allocation73_spill] sm:$0xff] }
 0x438   :  { %2629 = vmatpush.bf16.msra.mxu0 %v6858_v17  ;;  %2642 = vmatpush.bf16.msrb.mxu1 %v6859_v23 }
 0x439   :  { %2655 = vmatpush.bf16.msra.mxu2 %v6860_v61  ;;  %2668 = vmatpush.bf16.msra.mxu3 %v6861_v58 }
 0x43c   :  { %2630 = vmatpush.bf16.msra.mxu0 %v6862_v49  ;;  %2643 = vmatpush.bf16.msrb.mxu1 %v5385_v55 }
 0x43d   :  { %2656 = vmatpush.bf16.msra.mxu2 %v6863_v62  ;;  %2669 = vmatpush.bf16.msra.mxu3 %v6864_v6 }
 0x440   :  { %2631 = vmatpush.bf16.msra.mxu0 %v6865_v18  ;;  %2644 = vmatpush.bf16.msrb.mxu1 %v6866_v11 }
 0x441   :  { %2657 = vmatpush.bf16.msra.mxu2 %v6867_v24  ;;  %2670 = vmatpush.bf16.msra.mxu3 %v6868_v46 }
 0x444   :  { %2632 = vmatpush.bf16.msra.mxu0 %v6869_v15  ;;  %2645 = vmatpush.bf16.msrb.mxu1 %v6870_v51 }
 0x445   :  { %2658 = vmatpush.bf16.msra.mxu2 %v6871_v8  ;;  %2671 = vmatpush.bf16.msra.mxu3 %v6872_v32 }
 0x446   :  { %2514 = vmatmul.bf16.vlgmr.msrb.gmra.mxu0 %v2505_v39  ;;  %2527 = vmatmul.bf16.vlgmr.msra.gmra.mxu1 %v2505_v39 }
 0x447   :  { %2540 = vmatmul.bf16.vlgmr.msrb.gmra.mxu2 %v2505_v39  ;;  %2553 = vmatmul.bf16.vlgmr.msrb.gmra.mxu3 %v2505_v39  ;;  %v7042_v39 = vld [vmem:[#allocation75_spill] sm:$0xff] }
 0x448   :  { %2633 = vmatpush.bf16.msra.mxu0 %v6873_v20  ;;  %2646 = vmatpush.bf16.msrb.mxu1 %v6874_v35 }
 0x449   :  { %2659 = vmatpush.bf16.msra.mxu2 %v6875_v37  ;;  %2672 = vmatpush.bf16.msra.mxu3 %v6876_v57 }
 0x44c   :  { %2634 = vmatpush.bf16.msra.mxu0 %v6877_v48  ;;  %2647 = vmatpush.bf16.msrb.mxu1 %v5434_v12 }
 0x44d   :  { %2660 = vmatpush.bf16.msra.mxu2 %v5442_v60  ;;  %2673 = vmatpush.bf16.msra.mxu3 %v5436_v50 }
 0x450   :  { %2635 = vmatpush.bf16.msra.mxu0 %v5440_v42  ;;  %2648 = vmatpush.bf16.msrb.mxu1 %v5446_v4 }
 0x451   :  { %2661 = vmatpush.bf16.msra.mxu2 %v5454_v9  ;;  %2674 = vmatpush.bf16.msra.mxu3 %v5448_v22 }
 0x454   :  { %2636 = vmatpush.bf16.msra.mxu0 %v5452_v7  ;;  %2649 = vmatpush.bf16.msrb.mxu1 %v7010_v3 }
 0x455   :  { %2662 = vmatpush.bf16.msra.mxu2 %v7011_v53  ;;  %2675 = vmatpush.bf16.msra.mxu3 %v7012_v5 }
 0x457   :  { %2637 = vmatmul.bf16.vlgmr.msra.gmra.mxu0 %v2452_v27  ;;  %2650 = vmatmul.bf16.vlgmr.msrb.gmra.mxu1 %v2452_v27 }
 0x458   :  { %2749 = vmatpush.bf16.msrb.mxu0 %v7013_v33  ;;  %2762 = vmatpush.bf16.msra.mxu1 %v7014_v43 }
 0x459   :  { %2663 = vmatmul.bf16.vlgmr.msra.gmra.mxu2 %v2452_v27  ;;  %2676 = vmatmul.bf16.vlgmr.msra.gmra.mxu3 %v2452_v27  ;;  %v7032_v27 = vld [vmem:[#allocation64_spill] sm:$0xff] }
 0x45a   :  { %2775 = vmatpush.bf16.msrb.mxu2 %v7015_v2  ;;  %2788 = vmatpush.bf16.msrb.mxu3 %v7016_v19 }
 0x45c   :  { %2750 = vmatpush.bf16.msrb.mxu0 %v7017_v63  ;;  %2763 = vmatpush.bf16.msra.mxu1 %v7018_v34 }
 0x45e   :  { %2776 = vmatpush.bf16.msrb.mxu2 %v7019_v36  ;;  %2789 = vmatpush.bf16.msrb.mxu3 %v7020_v41  ;;  %v7079_v36 = vld [vmem:[#allocation42_spill] sm:$0xff] }
 0x460   :  { %2751 = vmatpush.bf16.msrb.mxu0 %v7021_v0  ;;  %2764 = vmatpush.bf16.msra.mxu1 %v7022_v21 }
 0x462   :  { %2777 = vmatpush.bf16.msrb.mxu2 %v7023_v26  ;;  %2790 = vmatpush.bf16.msrb.mxu3 %v7024_v13 }
 0x464   :  { %2752 = vmatpush.bf16.msrb.mxu0 %v7025_v52  ;;  %2765 = vmatpush.bf16.msra.mxu1 %v7026_v31 }
 0x466   :  { %2778 = vmatpush.bf16.msrb.mxu2 %v7027_v10  ;;  %2791 = vmatpush.bf16.msrb.mxu3 %v7028_v16 }
 0x468   :  { %2753 = vmatpush.bf16.msrb.mxu0 %v7029_v54  ;;  %2766 = vmatpush.bf16.msra.mxu1 %v7030_v14 }
 0x46a   :  { %2779 = vmatpush.bf16.msrb.mxu2 %v7031_v40  ;;  %2792 = vmatpush.bf16.msrb.mxu3 %v7032_v27  ;;  %v7043_v27 = vld [vmem:[#allocation77_spill] sm:$0xff] }
 0x46c   :  { %2754 = vmatpush.bf16.msrb.mxu0 %v7033_v29  ;;  %2767 = vmatpush.bf16.msra.mxu1 %v7034_v59  ;;  %v7044_v29 = vld [vmem:[#allocation78_spill] sm:$0xff]  ;;  %v7045_v59 = vld [vmem:[#allocation80_spill] sm:$0xff] }
 0x46e   :  { %2780 = vmatpush.bf16.msrb.mxu2 %v7035_v25  ;;  %2793 = vmatpush.bf16.msrb.mxu3 %v7036_v45  ;;  %v7046_v25 = vld [vmem:[#allocation76_spill] sm:$0xff]  ;;  %v7047_v45 = vld [vmem:[#allocation81_spill] sm:$0xff] }
 0x470   :  { %2755 = vmatpush.bf16.msrb.mxu0 %v7037_v47  ;;  %2768 = vmatpush.bf16.msra.mxu1 %v7038_v28  ;;  %v7048_v47 = vld [vmem:[#allocation79_spill] sm:$0xff]  ;;  %v7049_v28 = vld [vmem:[#allocation82_spill] sm:$0xff] }
 0x472   :  { %2781 = vmatpush.bf16.msrb.mxu2 %v7039_v56  ;;  %2794 = vmatpush.bf16.msrb.mxu3 %v7040_v30  ;;  %v7050_v56 = vld [vmem:[#allocation83_spill] sm:$0xff]  ;;  %v7051_v30 = vld [vmem:[#allocation85_spill] sm:$0xff] }
 0x474   :  { %2756 = vmatpush.bf16.msrb.mxu0 %v7041_v1  ;;  %2769 = vmatpush.bf16.msra.mxu1 %v7042_v39  ;;  %v7052_v1 = vld [vmem:[#allocation84_spill] sm:$0xff]  ;;  %v7053_v39 = vld [vmem:[#allocation86_spill] sm:$0xff] }
 0x476   :  { %2782 = vmatpush.bf16.msrb.mxu2 %v7045_v59  ;;  %2795 = vmatpush.bf16.msrb.mxu3 %v7046_v25  ;;  %v7056_v59 = vld [vmem:[#allocation88_spill] sm:$0xff]  ;;  %v7057_v25 = vld [vmem:[#allocation90_spill] sm:$0xff] }
 0x478   :  { %2802 = vmatpush.bf16.msra.mxu0 %v7043_v27  ;;  %2815 = vmatpush.bf16.msrb.mxu1 %v7044_v29  ;;  %v7054_v27 = vld [vmem:[#allocation87_spill] sm:$0xff]  ;;  %v7055_v29 = vld [vmem:[#allocation89_spill] sm:$0xff] }
 0x47a   :  { %2828 = vmatpush.bf16.msra.mxu2 %v7047_v45  ;;  %2841 = vmatpush.bf16.msra.mxu3 %v7048_v47  ;;  %v7058_v45 = vld [vmem:[#allocation91_spill] sm:$0xff]  ;;  %v7059_v47 = vld [vmem:[#allocation93_spill] sm:$0xff] }
 0x47c   :  { %2803 = vmatpush.bf16.msra.mxu0 %v7049_v28  ;;  %2816 = vmatpush.bf16.msrb.mxu1 %v7050_v56  ;;  %v7060_v28 = vld [vmem:[#allocation92_spill] sm:$0xff]  ;;  %v7061_v56 = vld [vmem:[#allocation94_spill] sm:$0xff] }
 0x47e   :  { %2829 = vmatpush.bf16.msra.mxu2 %v7051_v30  ;;  %2842 = vmatpush.bf16.msra.mxu3 %v7052_v1  ;;  %v7062_v30 = vld [vmem:[#allocation95_spill] sm:$0xff]  ;;  %v7063_v1 = vld [vmem:[#allocation97_spill] sm:$0xff] }
 0x480   :  { %2804 = vmatpush.bf16.msra.mxu0 %v7053_v39  ;;  %2817 = vmatpush.bf16.msrb.mxu1 %v7054_v27  ;;  %v7064_v39 = vld [vmem:[#allocation96_spill] sm:$0xff]  ;;  %v7065_v27 = vld [vmem:[#allocation98_spill] sm:$0xff] }
 0x482   :  { %2830 = vmatpush.bf16.msra.mxu2 %v7055_v29  ;;  %2843 = vmatpush.bf16.msra.mxu3 %v7056_v59  ;;  %v7066_v29 = vld [vmem:[#allocation99_spill] sm:$0xff]  ;;  %v7067_v59 = vld [vmem:[#allocation101_spill] sm:$0xff] }
 0x484   :  { %2805 = vmatpush.bf16.msra.mxu0 %v7057_v25  ;;  %2818 = vmatpush.bf16.msrb.mxu1 %v7058_v45  ;;  %v7068_v25 = vld [vmem:[#allocation100_spill] sm:$0xff]  ;;  %v7069_v45 = vld [vmem:[#allocation102_spill] sm:$0xff] }
 0x486   :  { %2831 = vmatpush.bf16.msra.mxu2 %v7059_v47  ;;  %2844 = vmatpush.bf16.msra.mxu3 %v7060_v28  ;;  %v7070_v47 = vld [vmem:[#allocation103_spill] sm:$0xff]  ;;  %v7071_v28 = vld [vmem:[#allocation105_spill] sm:$0xff] }
 0x488   :  { %2806 = vmatpush.bf16.msra.mxu0 %v7061_v56  ;;  %2819 = vmatpush.bf16.msrb.mxu1 %v7062_v30  ;;  %v7072_v56 = vld [vmem:[#allocation104_spill] sm:$0xff]  ;;  %v7073_v30 = vld [vmem:[#allocation106_spill] sm:$0xff] }
 0x48a   :  { %2832 = vmatpush.bf16.msra.mxu2 %v7063_v1  ;;  %2845 = vmatpush.bf16.msra.mxu3 %v7064_v39  ;;  %v7074_v1 = vld [vmem:[#allocation107_spill] sm:$0xff]  ;;  %v7075_v39 = vld [vmem:[#allocation112_spill] sm:$0xff] }
 0x48c   :  { %2807 = vmatpush.bf16.msra.mxu0 %v7065_v27  ;;  %2820 = vmatpush.bf16.msrb.mxu1 %v7066_v29  ;;  %v7076_v27 = vld [vmem:[#allocation108_spill] sm:$0xff] }
 0x48e   :  { %2833 = vmatpush.bf16.msra.mxu2 %v7067_v59  ;;  %2846 = vmatpush.bf16.msra.mxu3 %v7068_v25 }
 0x490   :  { %2808 = vmatpush.bf16.msra.mxu0 %v7069_v45  ;;  %2821 = vmatpush.bf16.msrb.mxu1 %v7070_v47 }
 0x492   :  { %2834 = vmatpush.bf16.msra.mxu2 %v7071_v28  ;;  %2847 = vmatpush.bf16.msra.mxu3 %v7072_v56  ;;  %v7077_v56 = vld [vmem:[#allocation40_spill] sm:$0xff] }
 0x494   :  { %2809 = vmatpush.bf16.msra.mxu0 %v7073_v30  ;;  %2822 = vmatpush.bf16.msrb.mxu1 %v7074_v1  ;;  %v7078_v30 = vld [vmem:[#allocation41_spill] sm:$0xff] }
 0x496   :  { %2835 = vmatpush.bf16.msra.mxu2 %v7075_v39  ;;  %2848 = vmatpush.bf16.msra.mxu3 %v7076_v27 }
 0x4b3   :  { %v2462_v29 = vpop.f32.mrf.mxu0  ;;  %v2475_v59 = vpop.f32.mrf.mxu1 }
 0x4b4   :  { %v2463_v10 = vadd.f32 %v2462_v29, %v7077_v56  ;;  %v2476_v31 = vadd.f32 %v2475_v59, %v7078_v30  ;;  %v7080_v29 = vld [vmem:[#allocation31_spill] sm:$0xff]  ;;  %v7081_v59 = vld [vmem:[#allocation30_spill] sm:$0xff] }
 0x4ba   :  { %v6021_v40 = vpop.f32.mrf.mxu2  ;;  %v2501_v25 = vpop.f32.mrf.mxu3 }
 0x4bb   :  { %v2464_v45 = vpop.f32.mrf.mxu0  ;;  %v2477_v14 = vpop.f32.mrf.mxu1  ;;  %v2502_v34 = vadd.f32 %v2501_v25, %v7079_v36  ;;  %v7082_v25 = vld [vmem:[#allocation32_spill] sm:$0xff] }
 0x4c2   :  { %v2490_v47 = vpop.f32.mrf.mxu2  ;;  %v2503_v54 = vpop.f32.mrf.mxu3 }
 0x4c3   :  { %v2515_v28 = vpop.f32.mrf.mxu0  ;;  %v2528_v16 = vpop.f32.mrf.mxu1 }
 0x4c4   :  { %v2558_v1 = vadd.f32 %v2515_v28, %v2463_v10  ;;  %v2559_v52 = vadd.f32 %v2528_v16, %v2476_v31 }
 0x4c6   :  { %v4291_v27 = vmul.f32 -1.442695, %v2558_v1  ;;  %v4292_v0 = vmul.f32 -1.442695, %v2559_v52 }
 0x4c8   :  { %4664 = vpow2.f32 %v4291_v27 }
 0x4c9   :  { %4666 = vpow2.f32 %v4292_v0 }
 0x4ca   :  { %v2541_v39 = vpop.f32.mrf.mxu2  ;;  %v2554_v13 = vpop.f32.mrf.mxu3 }
 0x4cb   :  { %v2517_v26 = vpop.f32.mrf.mxu0  ;;  %v2530_v21 = vpop.f32.mrf.mxu1  ;;  %v2561_v16 = vadd.f32 %v2554_v13, %v2502_v34 }
 0x4cd   :  { %v4293_v0 = vmul.f32 -1.442695, %v2561_v16 }
 0x4ce   :  { %v4665_v41 = vpop.eup %4664 }
 0x4cf   :  { %v4667_v31 = vpop.eup %4666  ;;  %v6028_v26 = vadd.f32 1.0, %v4665_v41 }
 0x4d0   :  { %v6030_v21 = vadd.f32 1.0, %v4667_v31 }
 0x4d1   :  { %v2575_v63 = vand.u32 2147483647, %v6028_v26  ;;  %vm2571_vm14 = vweird.f32 %v6028_v26 }
 0x4d2   :  { %v2543_v45 = vpop.f32.mrf.mxu2  ;;  %v2556_v14 = vpop.f32.mrf.mxu3  ;;  %v2596_v7 = vand.u32 2147483648, %v6030_v21  ;;  %vm2590_vm9 = vweird.f32 %v6030_v21 }
 0x4d3   :  { %vm2576_vm12 = vcmp.eq.f32.partialorder %v2575_v63, 8.507059e+37 }
 0x4d4   :  { %v2638_v47 = vpop.f32.mrf.mxu0  ;;  %v2651_v54 = vpop.f32.mrf.mxu1 }
 0x4d5   :  { %v2681_v56 = vadd.f32 %v2638_v47, %v7080_v29  ;;  %v2682_v10 = vadd.f32 %v2651_v54, %v7081_v59 }
 0x4d7   :  { %v4294_v28 = vmul.f32 -1.442695, %v2681_v56  ;;  %v4295_v1 = vmul.f32 -1.442695, %v2682_v10 }
 0x4d9   :  { %4668 = vpow2.f32 %v4294_v28 }
 0x4da   :  { %4670 = vpow2.f32 %v4295_v1 }
 0x4db   :  { %4672 = vrcp.f32 %v6028_v26 }
 0x4dc   :  { %v2664_v52 = vpop.f32.mrf.mxu2  ;;  %v2677_v27 = vpop.f32.mrf.mxu3  ;;  %4674 = vrcp.f32 %v6030_v21 }
 0x4dd   :  { %v2684_v45 = vadd.f32 %v2677_v27, %v7082_v25  ;;  %v2640_v14 = vpop.f32.mrf.mxu0  ;;  %v2653_v47 = vpop.f32.mrf.mxu1  ;;  %4676 = vpow2.f32 %v4293_v0 }
 0x4de   :  { %v7083_v14 = vld [vmem:[#allocation43_spill] sm:$0xff] }
 0x4df   :  { %v4296_v34 = vmul.f32 -1.442695, %v2684_v45  ;;  %v4669_v13 = vpop.eup %4668  ;;  %v2489_v47 = vadd.f32 %v6021_v40, %v7083_v14 }
 0x4e0   :  { %v4671_v41 = vpop.eup %4670  ;;  %v2688_v56 = vadd.f32 1.0, %v4669_v13  ;;  %v7084_v13 = vld [vmem:[#allocation33_spill] sm:$0xff] }
 0x4e1   :  { %4678 = vpow2.f32 %v4296_v34  ;;  %v6035_v54 = vpop.eup %4672  ;;  %v2707_v29 = vadd.f32 1.0, %v4671_v41  ;;  %v2683_v41 = vadd.f32 %v2664_v52, %v7084_v13  ;;  %v2560_v30 = vadd.f32 %v2541_v39, %v2489_v47 }
 0x4e2   :  { %4680 = vrcp.f32 %v2688_v56  ;;  %v6037_v31 = vpop.eup %4674  ;;  %v2567_v28 = vmul.f32 %v6035_v54, %v6028_v26  ;;  %vm2572_vm15 = vweird.f32 %v6035_v54  ;;  %v2698_v39 = vand.u32 2147483647, %v2688_v56 }
 0x4e3   :  { %4682 = vrcp.f32 %v2707_v29  ;;  %v4677_v16 = vpop.eup %4676  ;;  %v2586_v0 = vmul.f32 %v6037_v31, %v6030_v21  ;;  %v2719_v13 = vand.u32 2147483648, %v2707_v29  ;;  %v2717_v43 = vand.u32 2147483647, %v2707_v29  ;;  %vm6070_vm10 = vmor %vm2571_vm14, %vm2572_vm15 }
 0x4e4   :  { %v2666_v59 = vpop.f32.mrf.mxu2  ;;  %v2679_v10 = vpop.f32.mrf.mxu3  ;;  %v6045_v25 = vadd.f32 1.0, %v4677_v16  ;;  %v2568_v34 = vsub.f32 1.0, %v2567_v28  ;;  %v2577_v16 = vand.u32 2147483648, %v6028_v26  ;;  %vm2591_vm2 = vweird.f32 %v6037_v31 }
 0x4e5   :  { %v2587_v36 = vsub.f32 1.0, %v2586_v0  ;;  %vm2694_vm3 = vweird.f32 %v2688_v56  ;;  %vm2713_vm4 = vweird.f32 %v2707_v29  ;;  %v2720_v5 = vor.u32 1.1754944e-38, %v2719_v13  ;;  %vm6078_vm11 = vmor %vm2590_vm9, %vm2591_vm2 }
 0x4e6   :  { %v2569_v52 = vmul.f32 %v6035_v54, %v2568_v34  ;;  %vm2699_vm7 = vcmp.eq.f32.partialorder %v2698_v39, 8.507059e+37  ;;  %vm2718_vm8 = vcmp.eq.f32.partialorder %v2717_v43, 8.507059e+37 }
 0x4e7   :  { %v4679_v1 = vpop.eup %4678  ;;  %v2588_v14 = vmul.f32 %v6037_v31, %v2587_v36 }
 0x4e8   :  { %v6043_v27 = vadd.f32 1.0, %v4679_v1  ;;  %v4681_v45 = vpop.eup %4680  ;;  %v2700_v1 = vand.u32 2147483648, %v2688_v56 }
 0x4e9   :  { %v4683_v59 = vpop.eup %4682  ;;  %v2690_v10 = vmul.f32 %v4681_v45, %v2688_v56  ;;  %vm2695_vm0 = vweird.f32 %v4681_v45  ;;  %v2589_v3 = vadd.f32 %v6037_v31, %v2588_v14 }
 0x4ea   :  { %4684 = vrcp.f32 %v6043_v27  ;;  %v2709_v19 = vmul.f32 %v4683_v59, %v2707_v29  ;;  %vm2714_vm1 = vweird.f32 %v4683_v59  ;;  %vm2696_vm5 = vmor %vm2694_vm3, %vm2695_vm0  ;;  %v2701_v34 = vor.u32 1.1754944e-38, %v2700_v1 }
 0x4eb   :  { %4686 = vrcp.f32 %v6045_v25  ;;  %v2691_v40 = vsub.f32 1.0, %v2690_v10  ;;  %vm2715_vm6 = vmor %vm2713_vm4, %vm2714_vm1  ;;  %v2593_v43 = vsel %vm6078_vm11, %v6037_v31, %v2589_v3  ;;  %vm2733_vm15 = vweird.f32 %v6043_v27 }
 0x4ec   :  { %v2710_v28 = vsub.f32 1.0, %v2709_v19  ;;  %4688 = vtanh.f32 %v2683_v41  ;;  %v2570_v19 = vadd.f32 %v6035_v54, %v2569_v52  ;;  %v2737_v3 = vand.u32 2147483647, %v6043_v27 }
 0x4ed   :  { %v2692_v0 = vmul.f32 %v4681_v45, %v2691_v40  ;;  %4690 = vtanh.f32 %v2560_v30  ;;  %v2739_v30 = vand.u32 2147483648, %v6043_v27  ;;  %vm2610_vm3 = vweird.f32 %v6045_v25 }
 0x4ee   :  { %v2711_v2 = vmul.f32 %v4683_v59, %v2710_v28  ;;  %vm2738_vm1 = vcmp.eq.f32.partialorder %v2737_v3, 8.507059e+37  ;;  %v7103_v3 = vld [vmem:[#allocation54_spill] sm:$0xff] }
 0x4ef   :  { %v2693_v33 = vadd.f32 %v4681_v45, %v2692_v0  ;;  %v2740_v1 = vor.u32 1.1754944e-38, %v2739_v30  ;;  %v7100_v30 = vld [vmem:[#allocation56_spill] sm:$0xff] }
 0x4f0   :  { %v4685_v47 = vpop.eup %4684  ;;  %v2712_v41 = vadd.f32 %v4683_v59, %v2711_v2  ;;  %v2594_v2 = vand.u32 2147483647, %v6030_v21  ;;  %v2597_v21 = vor.u32 1.1754944e-38, %v2596_v7 }
 0x4f1   :  { %v2729_v10 = vmul.f32 %v4685_v47, %v6043_v27  ;;  %v6061_v40 = vpop.eup %4686  ;;  %v2697_v36 = vsel %vm2696_vm5, %v4681_v45, %v2693_v33  ;;  %vm2734_vm13 = vweird.f32 %v4685_v47  ;;  %v2616_v27 = vand.u32 2147483648, %v6045_v25  ;;  %v7090_v33 = vld [vmem:[#allocation131_spill] sm:$0xff] }
 0x4f2   :  { %v4689_v53 = vpop.eup %4688  ;;  %v2702_v0 = vsel %vm2699_vm7, %v2701_v34, %v2697_v36  ;;  %v2716_v56 = vsel %vm2715_vm6, %v4683_v59, %v2712_v41  ;;  %vm2595_vm14 = vcmp.eq.f32.partialorder %v2594_v2, 8.507059e+37  ;;  %v2606_v59 = vmul.f32 %v6061_v40, %v6045_v25  ;;  %vm2735_vm0 = vmor %vm2733_vm15, %vm2734_vm13  ;;  %v7091_v2 = vld [vmem:[#allocation132_spill] sm:$0xff] }
 0x4f3   :  { %v2730_v28 = vsub.f32 1.0, %v2729_v10  ;;  %v2721_v52 = vsel %vm2718_vm8, %v2720_v5, %v2716_v56  ;;  %v2744_v29 = vmul.f32 %v4689_v53, %v2702_v0  ;;  %v2574_v53 = vsel %vm6070_vm10, %v6035_v54, %v2570_v19  ;;  %v4691_v31 = vpop.eup %4690  ;;  %v7093_v5 = vld [vmem:[#allocation133_spill] sm:$0xff] }
 0x4f4   :  { %v2743_v45 = vmul.f32 %v2721_v52, %v5906_v38  ;;  %v2578_v38 = vor.u32 1.1754944e-38, %v2577_v16  ;;  %v2598_v63 = vsel %vm2595_vm14, %v2597_v21, %v2593_v43  ;;  %v2607_v13 = vsub.f32 1.0, %v2606_v59  ;;  %v7095_v43 = vld [vmem:[#allocation47_spill] sm:$0xff]  ;;  %v7096_v21 = vld [vmem:[#allocation52_spill] sm:$0xff]  ;;  %v7099_v59 = vld [vmem:[#allocation50_spill] sm:$0xff] }
 0x4f5   :  { %v2731_v22 = vmul.f32 %v4685_v47, %v2730_v28  ;;  %vm2611_vm2 = vweird.f32 %v6061_v40  ;;  %v2617_v56 = vor.u32 1.1754944e-38, %v2616_v27  ;;  %v7116_v27 = vld [vmem:[#allocation70_spill] sm:$0xff] }
 0x4f6   :  { %v6088_v26 = vadd.f32 %v2744_v29, %v2743_v45  ;;  %v2579_v54 = vsel %vm2576_vm12, %v2578_v38, %v2574_v53  ;;  %v2608_v41 = vmul.f32 %v6061_v40, %v2607_v13  ;;  %vm2612_vm4 = vmor %vm2610_vm3, %vm2611_vm2  ;;  %v7089_v29 = vld [vmem:[#allocation130_spill] sm:$0xff]  ;;  %v7097_v38 = vld [vmem:[#allocation48_spill] sm:$0xff] }
 0x4f7   :  { %v2732_v14 = vadd.f32 %v4685_v47, %v2731_v22  ;;  %v2620_v22 = vmul.f32 %v2598_v63, %v5915_v44  ;;  %v2621_v16 = vmul.f32 %v4691_v31, %v2579_v54  ;;  %v7092_v45 = vld [vmem:[#allocation134_spill] sm:$0xff]  ;;  %v7101_v54 = vld [vmem:[#allocation51_spill] sm:$0xff]  ;;  %v7102_v63 = vld [vmem:[#allocation53_spill] sm:$0xff] }
 0x4f8   :  { %4692 = vtanh.f32 %v6088_v26  ;;  %v2609_v44 = vadd.f32 %v6061_v40, %v2608_v41  ;;  %v7094_v53 = vld [vmem:[#allocation46_spill] sm:$0xff]  ;;  %v7109_v13 = vld [vmem:[#allocation60_spill] sm:$0xff] }
 0x4f9   :  { %v2736_v7 = vsel %vm2735_vm0, %v4685_v47, %v2732_v14  ;;  %v6097_v34 = vadd.f32 %v2621_v16, %v2620_v22  ;;  %v2614_v47 = vand.u32 2147483647, %v6045_v25  ;;  %v7098_v14 = vld [vmem:[#allocation49_spill] sm:$0xff]  ;;  %v7104_v31 = vld [vmem:[#allocation58_spill] sm:$0xff]  ;;  %v7107_v16 = vld [vmem:[#allocation59_spill] sm:$0xff] }
 0x4fa   :  { %v2741_v10 = vsel %vm2738_vm1, %v2740_v1, %v2736_v7  ;;  %v2613_v28 = vsel %vm2612_vm4, %v6061_v40, %v2609_v44  ;;  %v7105_v7 = vld [vmem:[#allocation55_spill] sm:$0xff]  ;;  %v7106_v22 = vld [vmem:[#allocation57_spill] sm:$0xff]  ;;  %v7108_v1 = vld [vmem:[#allocation62_spill] sm:$0xff] }
 0x4fb   :  { %4694 = vtanh.f32 %v6097_v34  ;;  %vm2615_vm5 = vcmp.eq.f32.partialorder %v2614_v47, 8.507059e+37  ;;  %v7113_v41 = vld [vmem:[#allocation64_spill] sm:$0xff]  ;;  %v7115_v44 = vld [vmem:[#allocation67_spill] sm:$0xff] }
 0x4fc   :  { %v2618_v52 = vsel %vm2615_vm5, %v2617_v56, %v2613_v28  ;;  %v7117_v47 = vld [vmem:[#allocation68_spill] sm:$0xff]  ;;  %v7118_v28 = vld [vmem:[#allocation69_spill] sm:$0xff]  ;;  %v7120_v56 = vld [vmem:[#allocation74_spill] sm:$0xff] }
 0x4fe   :  { %v4693_v39 = vpop.eup %4692 }
 0x4ff   :  { %v2747_v19 = vmul.f32 %v4693_v39, %v2741_v10  ;;  %v7110_v39 = vld [vmem:[#allocation61_spill] sm:$0xff]  ;;  %v7111_v10 = vld [vmem:[#allocation63_spill] sm:$0xff] }
 0x501   :  { %v2748_v36 = vpack.c.bf16 %v2747_v19, %v2747_v19  ;;  %v4695_v0 = vpop.eup %4694  ;;  %v7112_v19 = vld [vmem:[#allocation66_spill] sm:$0xff] }
 0x502   :  { %v2624_v25 = vmul.f32 %v4695_v0, %v2618_v52  ;;  %v7119_v0 = vld [vmem:[#allocation71_spill] sm:$0xff]  ;;  %v7121_v52 = vld [vmem:[#allocation72_spill] sm:$0xff] }
 0x503   :  { %2757 = vmatmul.bf16.vlgmr.msrb.gmra.mxu0 %v2748_v36  ;;  %2770 = vmatmul.bf16.vlgmr.msra.gmra.mxu1 %v2748_v36 }
 0x504   :  { %2783 = vmatmul.bf16.vlgmr.msrb.gmra.mxu2 %v2748_v36  ;;  %2796 = vmatmul.bf16.vlgmr.msrb.gmra.mxu3 %v2748_v36  ;;  %v2801_v40 = vpack.c.bf16 %v2624_v25, %v2624_v25  ;;  %v7122_v25 = vld [vmem:[#allocation73_spill] sm:$0xff] }
 0x505   :  { %2925 = vmatpush.bf16.msrb.mxu0 %v6858_v17  ;;  %2938 = vmatpush.bf16.msra.mxu1 %v6859_v23 }
 0x506   :  { %2951 = vmatpush.bf16.msrb.mxu2 %v6860_v61  ;;  %2964 = vmatpush.bf16.msrb.mxu3 %v6861_v58 }
 0x509   :  { %2926 = vmatpush.bf16.msrb.mxu0 %v6862_v49  ;;  %2939 = vmatpush.bf16.msra.mxu1 %v5385_v55 }
 0x50a   :  { %2952 = vmatpush.bf16.msrb.mxu2 %v6863_v62  ;;  %2965 = vmatpush.bf16.msrb.mxu3 %v6864_v6 }
 0x50d   :  { %2927 = vmatpush.bf16.msrb.mxu0 %v6865_v18  ;;  %2940 = vmatpush.bf16.msra.mxu1 %v6866_v11 }
 0x50e   :  { %2953 = vmatpush.bf16.msrb.mxu2 %v6867_v24  ;;  %2966 = vmatpush.bf16.msrb.mxu3 %v6868_v46 }
 0x511   :  { %2928 = vmatpush.bf16.msrb.mxu0 %v6869_v15  ;;  %2941 = vmatpush.bf16.msra.mxu1 %v6870_v51 }
 0x512   :  { %2954 = vmatpush.bf16.msrb.mxu2 %v6871_v8  ;;  %2967 = vmatpush.bf16.msrb.mxu3 %v6872_v32 }
 0x513   :  { %2810 = vmatmul.bf16.vlgmr.msra.gmra.mxu0 %v2801_v40  ;;  %2823 = vmatmul.bf16.vlgmr.msrb.gmra.mxu1 %v2801_v40 }
 0x514   :  { %2836 = vmatmul.bf16.vlgmr.msra.gmra.mxu2 %v2801_v40  ;;  %2849 = vmatmul.bf16.vlgmr.msra.gmra.mxu3 %v2801_v40  ;;  %v7123_v40 = vld [vmem:[#allocation75_spill] sm:$0xff] }
 0x515   :  { %2929 = vmatpush.bf16.msrb.mxu0 %v6873_v20  ;;  %2942 = vmatpush.bf16.msra.mxu1 %v6874_v35 }
 0x516   :  { %2955 = vmatpush.bf16.msrb.mxu2 %v6875_v37  ;;  %2968 = vmatpush.bf16.msrb.mxu3 %v6876_v57 }
 0x519   :  { %2930 = vmatpush.bf16.msrb.mxu0 %v6877_v48  ;;  %2943 = vmatpush.bf16.msra.mxu1 %v5434_v12 }
 0x51a   :  { %2956 = vmatpush.bf16.msrb.mxu2 %v5442_v60  ;;  %2969 = vmatpush.bf16.msrb.mxu3 %v5436_v50 }
 0x51d   :  { %2931 = vmatpush.bf16.msrb.mxu0 %v5440_v42  ;;  %2944 = vmatpush.bf16.msra.mxu1 %v5446_v4 }
 0x51e   :  { %2957 = vmatpush.bf16.msrb.mxu2 %v5454_v9  ;;  %2970 = vmatpush.bf16.msrb.mxu3 %v7089_v29 }
 0x521   :  { %2932 = vmatpush.bf16.msrb.mxu0 %v7090_v33  ;;  %2945 = vmatpush.bf16.msra.mxu1 %v7091_v2 }
 0x522   :  { %2958 = vmatpush.bf16.msrb.mxu2 %v7092_v45  ;;  %2971 = vmatpush.bf16.msrb.mxu3 %v7093_v5 }
 0x524   :  { %2933 = vmatmul.bf16.vlgmr.msrb.gmra.mxu0 %v2748_v36  ;;  %2946 = vmatmul.bf16.vlgmr.msra.gmra.mxu1 %v2748_v36 }
 0x525   :  { %3045 = vmatpush.bf16.msra.mxu0 %v7094_v53  ;;  %3058 = vmatpush.bf16.msrb.mxu1 %v7095_v43 }
 0x526   :  { %2959 = vmatmul.bf16.vlgmr.msrb.gmra.mxu2 %v2748_v36  ;;  %2972 = vmatmul.bf16.vlgmr.msrb.gmra.mxu3 %v2748_v36  ;;  %v7114_v36 = vld [vmem:[#allocation65_spill] sm:$0xff] }
 0x527   :  { %3071 = vmatpush.bf16.msra.mxu2 %v7096_v21  ;;  %3084 = vmatpush.bf16.msra.mxu3 %v7097_v38 }
 0x529   :  { %3046 = vmatpush.bf16.msra.mxu0 %v7098_v14  ;;  %3059 = vmatpush.bf16.msrb.mxu1 %v7099_v59 }
 0x52b   :  { %3072 = vmatpush.bf16.msra.mxu2 %v7100_v30  ;;  %3085 = vmatpush.bf16.msra.mxu3 %v7101_v54  ;;  %v7160_v30 = vld [vmem:[#allocation42_spill] sm:$0xff] }
 0x52d   :  { %3047 = vmatpush.bf16.msra.mxu0 %v7102_v63  ;;  %3060 = vmatpush.bf16.msrb.mxu1 %v7103_v3 }
 0x52f   :  { %3073 = vmatpush.bf16.msra.mxu2 %v7104_v31  ;;  %3086 = vmatpush.bf16.msra.mxu3 %v7105_v7 }
 0x531   :  { %3048 = vmatpush.bf16.msra.mxu0 %v7106_v22  ;;  %3061 = vmatpush.bf16.msrb.mxu1 %v7107_v16 }
 0x533   :  { %3074 = vmatpush.bf16.msra.mxu2 %v7108_v1  ;;  %3087 = vmatpush.bf16.msra.mxu3 %v7109_v13 }
 0x535   :  { %3049 = vmatpush.bf16.msra.mxu0 %v7110_v39  ;;  %3062 = vmatpush.bf16.msrb.mxu1 %v7111_v10 }
 0x537   :  { %3075 = vmatpush.bf16.msra.mxu2 %v7112_v19  ;;  %3088 = vmatpush.bf16.msra.mxu3 %v7113_v41  ;;  %v7124_v41 = vld [vmem:[#allocation77_spill] sm:$0xff] }
 0x539   :  { %3050 = vmatpush.bf16.msra.mxu0 %v7114_v36  ;;  %3063 = vmatpush.bf16.msrb.mxu1 %v7115_v44  ;;  %v7125_v36 = vld [vmem:[#allocation78_spill] sm:$0xff]  ;;  %v7126_v44 = vld [vmem:[#allocation80_spill] sm:$0xff] }
 0x53b   :  { %3076 = vmatpush.bf16.msra.mxu2 %v7116_v27  ;;  %3089 = vmatpush.bf16.msra.mxu3 %v7117_v47  ;;  %v7127_v27 = vld [vmem:[#allocation76_spill] sm:$0xff]  ;;  %v7128_v47 = vld [vmem:[#allocation81_spill] sm:$0xff] }
 0x53d   :  { %3051 = vmatpush.bf16.msra.mxu0 %v7118_v28  ;;  %3064 = vmatpush.bf16.msrb.mxu1 %v7119_v0  ;;  %v7129_v28 = vld [vmem:[#allocation79_spill] sm:$0xff]  ;;  %v7130_v0 = vld [vmem:[#allocation82_spill] sm:$0xff] }
 0x53f   :  { %3077 = vmatpush.bf16.msra.mxu2 %v7120_v56  ;;  %3090 = vmatpush.bf16.msra.mxu3 %v7121_v52  ;;  %v7131_v56 = vld [vmem:[#allocation83_spill] sm:$0xff]  ;;  %v7132_v52 = vld [vmem:[#allocation85_spill] sm:$0xff] }
 0x541   :  { %3052 = vmatpush.bf16.msra.mxu0 %v7122_v25  ;;  %3065 = vmatpush.bf16.msrb.mxu1 %v7123_v40  ;;  %v7133_v25 = vld [vmem:[#allocation84_spill] sm:$0xff]  ;;  %v7134_v40 = vld [vmem:[#allocation86_spill] sm:$0xff] }
 0x543   :  { %3078 = vmatpush.bf16.msra.mxu2 %v7126_v44  ;;  %3091 = vmatpush.bf16.msra.mxu3 %v7127_v27  ;;  %v7137_v44 = vld [vmem:[#allocation88_spill] sm:$0xff]  ;;  %v7138_v27 = vld [vmem:[#allocation90_spill] sm:$0xff] }
 0x545   :  { %3098 = vmatpush.bf16.msrb.mxu0 %v7124_v41  ;;  %3111 = vmatpush.bf16.msra.mxu1 %v7125_v36  ;;  %v7135_v41 = vld [vmem:[#allocation87_spill] sm:$0xff]  ;;  %v7136_v36 = vld [vmem:[#allocation89_spill] sm:$0xff] }
 0x547   :  { %3124 = vmatpush.bf16.msrb.mxu2 %v7128_v47  ;;  %3137 = vmatpush.bf16.msrb.mxu3 %v7129_v28  ;;  %v7139_v47 = vld [vmem:[#allocation91_spill] sm:$0xff]  ;;  %v7140_v28 = vld [vmem:[#allocation93_spill] sm:$0xff] }
 0x549   :  { %3099 = vmatpush.bf16.msrb.mxu0 %v7130_v0  ;;  %3112 = vmatpush.bf16.msra.mxu1 %v7131_v56  ;;  %v7141_v0 = vld [vmem:[#allocation92_spill] sm:$0xff]  ;;  %v7142_v56 = vld [vmem:[#allocation94_spill] sm:$0xff] }
 0x54b   :  { %3125 = vmatpush.bf16.msrb.mxu2 %v7132_v52  ;;  %3138 = vmatpush.bf16.msrb.mxu3 %v7133_v25  ;;  %v7143_v52 = vld [vmem:[#allocation95_spill] sm:$0xff]  ;;  %v7144_v25 = vld [vmem:[#allocation97_spill] sm:$0xff] }
 0x54d   :  { %3100 = vmatpush.bf16.msrb.mxu0 %v7134_v40  ;;  %3113 = vmatpush.bf16.msra.mxu1 %v7135_v41  ;;  %v7145_v40 = vld [vmem:[#allocation96_spill] sm:$0xff]  ;;  %v7146_v41 = vld [vmem:[#allocation98_spill] sm:$0xff] }
 0x54f   :  { %3126 = vmatpush.bf16.msrb.mxu2 %v7136_v36  ;;  %3139 = vmatpush.bf16.msrb.mxu3 %v7137_v44  ;;  %v7147_v36 = vld [vmem:[#allocation99_spill] sm:$0xff]  ;;  %v7148_v44 = vld [vmem:[#allocation101_spill] sm:$0xff] }
 0x551   :  { %3101 = vmatpush.bf16.msrb.mxu0 %v7138_v27  ;;  %3114 = vmatpush.bf16.msra.mxu1 %v7139_v47  ;;  %v7149_v27 = vld [vmem:[#allocation100_spill] sm:$0xff]  ;;  %v7150_v47 = vld [vmem:[#allocation102_spill] sm:$0xff] }
 0x553   :  { %3127 = vmatpush.bf16.msrb.mxu2 %v7140_v28  ;;  %3140 = vmatpush.bf16.msrb.mxu3 %v7141_v0  ;;  %v7151_v28 = vld [vmem:[#allocation103_spill] sm:$0xff]  ;;  %v7152_v0 = vld [vmem:[#allocation105_spill] sm:$0xff] }
 0x555   :  { %3102 = vmatpush.bf16.msrb.mxu0 %v7142_v56  ;;  %3115 = vmatpush.bf16.msra.mxu1 %v7143_v52  ;;  %v7153_v56 = vld [vmem:[#allocation104_spill] sm:$0xff]  ;;  %v7154_v52 = vld [vmem:[#allocation106_spill] sm:$0xff] }
 0x557   :  { %3128 = vmatpush.bf16.msrb.mxu2 %v7144_v25  ;;  %3141 = vmatpush.bf16.msrb.mxu3 %v7145_v40  ;;  %v7155_v25 = vld [vmem:[#allocation107_spill] sm:$0xff]  ;;  %v7156_v40 = vld [vmem:[#allocation112_spill] sm:$0xff] }
 0x559   :  { %3103 = vmatpush.bf16.msrb.mxu0 %v7146_v41  ;;  %3116 = vmatpush.bf16.msra.mxu1 %v7147_v36  ;;  %v7157_v41 = vld [vmem:[#allocation108_spill] sm:$0xff] }
 0x55b   :  { %3129 = vmatpush.bf16.msrb.mxu2 %v7148_v44  ;;  %3142 = vmatpush.bf16.msrb.mxu3 %v7149_v27 }
 0x55d   :  { %3104 = vmatpush.bf16.msrb.mxu0 %v7150_v47  ;;  %3117 = vmatpush.bf16.msra.mxu1 %v7151_v28 }
 0x55f   :  { %3130 = vmatpush.bf16.msrb.mxu2 %v7152_v0  ;;  %3143 = vmatpush.bf16.msrb.mxu3 %v7153_v56  ;;  %v7158_v56 = vld [vmem:[#allocation40_spill] sm:$0xff] }
 0x561   :  { %3105 = vmatpush.bf16.msrb.mxu0 %v7154_v52  ;;  %3118 = vmatpush.bf16.msra.mxu1 %v7155_v25  ;;  %v7159_v52 = vld [vmem:[#allocation41_spill] sm:$0xff] }
 0x563   :  { %3131 = vmatpush.bf16.msrb.mxu2 %v7156_v40  ;;  %3144 = vmatpush.bf16.msrb.mxu3 %v7157_v41 }
 0x580   :  { %v2758_v36 = vpop.f32.mrf.mxu0  ;;  %v2771_v44 = vpop.f32.mrf.mxu1 }
 0x581   :  { %v2759_v1 = vadd.f32 %v2758_v36, %v7158_v56  ;;  %v2772_v16 = vadd.f32 %v2771_v44, %v7159_v52  ;;  %v7161_v36 = vld [vmem:[#allocation16_spill] sm:$0xff]  ;;  %v7162_v44 = vld [vmem:[#allocation34_spill] sm:$0xff] }
 0x587   :  { %v6203_v19 = vpop.f32.mrf.mxu2  ;;  %v2797_v27 = vpop.f32.mrf.mxu3 }
 0x588   :  { %v2760_v47 = vpop.f32.mrf.mxu0  ;;  %v2773_v10 = vpop.f32.mrf.mxu1  ;;  %v2798_v59 = vadd.f32 %v2797_v27, %v7160_v30  ;;  %v7163_v27 = vld [vmem:[#allocation37_spill] sm:$0xff] }
 0x58f   :  { %v2786_v28 = vpop.f32.mrf.mxu2  ;;  %v2799_v39 = vpop.f32.mrf.mxu3 }
 0x590   :  { %v2811_v0 = vpop.f32.mrf.mxu0  ;;  %v2824_v13 = vpop.f32.mrf.mxu1 }
 0x591   :  { %v2854_v25 = vadd.f32 %v2811_v0, %v2759_v1  ;;  %v2855_v22 = vadd.f32 %v2824_v13, %v2772_v16 }
 0x593   :  { %v4297_v41 = vmul.f32 -1.442695, %v2854_v25  ;;  %v4298_v63 = vmul.f32 -1.442695, %v2855_v22 }
 0x595   :  { %4696 = vpow2.f32 %v4297_v41 }
 0x596   :  { %4698 = vpow2.f32 %v4298_v63 }
 0x597   :  { %v2837_v40 = vpop.f32.mrf.mxu2  ;;  %v2850_v7 = vpop.f32.mrf.mxu3 }
 0x598   :  { %v2813_v31 = vpop.f32.mrf.mxu0  ;;  %v2826_v3 = vpop.f32.mrf.mxu1  ;;  %v2857_v13 = vadd.f32 %v2850_v7, %v2798_v59 }
 0x59a   :  { %v4299_v63 = vmul.f32 -1.442695, %v2857_v13 }
 0x59b   :  { %v4697_v54 = vpop.eup %4696 }
 0x59c   :  { %v4699_v16 = vpop.eup %4698  ;;  %v6210_v31 = vadd.f32 1.0, %v4697_v54 }
 0x59d   :  { %v6212_v3 = vadd.f32 1.0, %v4699_v16 }
 0x59e   :  { %v2871_v14 = vand.u32 2147483647, %v6210_v31  ;;  %vm2867_vm6 = vweird.f32 %v6210_v31 }
 0x59f   :  { %v2839_v47 = vpop.f32.mrf.mxu2  ;;  %v2852_v10 = vpop.f32.mrf.mxu3  ;;  %v2892_v33 = vand.u32 2147483648, %v6212_v3  ;;  %vm2886_vm1 = vweird.f32 %v6212_v3 }
 0x5a0   :  { %vm2872_vm4 = vcmp.eq.f32.partialorder %v2871_v14, 8.507059e+37 }
 0x5a1   :  { %v2934_v28 = vpop.f32.mrf.mxu0  ;;  %v2947_v39 = vpop.f32.mrf.mxu1 }
 0x5a2   :  { %v2977_v56 = vadd.f32 %v2934_v28, %v7161_v36  ;;  %v2978_v1 = vadd.f32 %v2947_v39, %v7162_v44 }
 0x5a4   :  { %v4300_v0 = vmul.f32 -1.442695, %v2977_v56  ;;  %v4301_v25 = vmul.f32 -1.442695, %v2978_v1 }
 0x5a6   :  { %4700 = vpow2.f32 %v4300_v0 }
 0x5a7   :  { %4702 = vpow2.f32 %v4301_v25 }
 0x5a8   :  { %4704 = vrcp.f32 %v6210_v31 }
 0x5a9   :  { %v2960_v22 = vpop.f32.mrf.mxu2  ;;  %v2973_v41 = vpop.f32.mrf.mxu3  ;;  %4706 = vrcp.f32 %v6212_v3 }
 0x5aa   :  { %v2980_v47 = vadd.f32 %v2973_v41, %v7163_v27  ;;  %v2936_v10 = vpop.f32.mrf.mxu0  ;;  %v2949_v28 = vpop.f32.mrf.mxu1  ;;  %4708 = vpow2.f32 %v4299_v63 }
 0x5ab   :  { %v7164_v10 = vld [vmem:[#allocation43_spill] sm:$0xff] }
 0x5ac   :  { %v4302_v59 = vmul.f32 -1.442695, %v2980_v47  ;;  %v4701_v7 = vpop.eup %4700  ;;  %v2785_v28 = vadd.f32 %v6203_v19, %v7164_v10 }
 0x5ad   :  { %v4703_v54 = vpop.eup %4702  ;;  %v2984_v56 = vadd.f32 1.0, %v4701_v7  ;;  %v7165_v7 = vld [vmem:[#allocation35_spill] sm:$0xff] }
 0x5ae   :  { %4710 = vpow2.f32 %v4302_v59  ;;  %v6217_v39 = vpop.eup %4704  ;;  %v3003_v36 = vadd.f32 1.0, %v4703_v54  ;;  %v2979_v54 = vadd.f32 %v2960_v22, %v7165_v7  ;;  %v2856_v52 = vadd.f32 %v2837_v40, %v2785_v28 }
 0x5af   :  { %4712 = vrcp.f32 %v2984_v56  ;;  %v6219_v16 = vpop.eup %4706  ;;  %v2863_v0 = vmul.f32 %v6217_v39, %v6210_v31  ;;  %vm2868_vm7 = vweird.f32 %v6217_v39  ;;  %v2994_v40 = vand.u32 2147483647, %v2984_v56 }
 0x5b0   :  { %4714 = vrcp.f32 %v3003_v36  ;;  %v4709_v13 = vpop.eup %4708  ;;  %v2882_v63 = vmul.f32 %v6219_v16, %v6212_v3  ;;  %v3015_v7 = vand.u32 2147483648, %v3003_v36  ;;  %v3013_v43 = vand.u32 2147483647, %v3003_v36  ;;  %vm6252_vm2 = vmor %vm2867_vm6, %vm2868_vm7 }
 0x5b1   :  { %v2962_v44 = vpop.f32.mrf.mxu2  ;;  %v2975_v1 = vpop.f32.mrf.mxu3  ;;  %v6227_v27 = vadd.f32 1.0, %v4709_v13  ;;  %v2864_v59 = vsub.f32 1.0, %v2863_v0  ;;  %v2873_v13 = vand.u32 2147483648, %v6210_v31  ;;  %vm2887_vm10 = vweird.f32 %v6219_v16 }
 0x5b2   :  { %v2883_v30 = vsub.f32 1.0, %v2882_v63  ;;  %vm2990_vm11 = vweird.f32 %v2984_v56  ;;  %vm3009_vm12 = vweird.f32 %v3003_v36  ;;  %v3016_v5 = vor.u32 1.1754944e-38, %v3015_v7  ;;  %vm6260_vm3 = vmor %vm2886_vm1, %vm2887_vm10 }
 0x5b3   :  { %v2865_v22 = vmul.f32 %v6217_v39, %v2864_v59  ;;  %vm2995_vm15 = vcmp.eq.f32.partialorder %v2994_v40, 8.507059e+37  ;;  %vm3014_vm0 = vcmp.eq.f32.partialorder %v3013_v43, 8.507059e+37 }
 0x5b4   :  { %v4711_v25 = vpop.eup %4710  ;;  %v2884_v10 = vmul.f32 %v6219_v16, %v2883_v30 }
 0x5b5   :  { %v6225_v41 = vadd.f32 1.0, %v4711_v25  ;;  %v4713_v47 = vpop.eup %4712  ;;  %v2996_v25 = vand.u32 2147483648, %v2984_v56 }
 0x5b6   :  { %v4715_v44 = vpop.eup %4714  ;;  %v2986_v1 = vmul.f32 %v4713_v47, %v2984_v56  ;;  %vm2991_vm8 = vweird.f32 %v4713_v47  ;;  %v2885_v2 = vadd.f32 %v6219_v16, %v2884_v10 }
 0x5b7   :  { %4716 = vrcp.f32 %v6225_v41  ;;  %v3005_v38 = vmul.f32 %v4715_v44, %v3003_v36  ;;  %vm3010_vm9 = vweird.f32 %v4715_v44  ;;  %vm2992_vm13 = vmor %vm2990_vm11, %vm2991_vm8  ;;  %v2997_v59 = vor.u32 1.1754944e-38, %v2996_v25 }
 0x5b8   :  { %4718 = vrcp.f32 %v6227_v27  ;;  %v2987_v19 = vsub.f32 1.0, %v2986_v1  ;;  %vm3011_vm14 = vmor %vm3009_vm12, %vm3010_vm9  ;;  %v2889_v43 = vsel %vm6260_vm3, %v6219_v16, %v2885_v2  ;;  %vm3029_vm7 = vweird.f32 %v6225_v41 }
 0x5b9   :  { %v3006_v0 = vsub.f32 1.0, %v3005_v38  ;;  %4720 = vtanh.f32 %v2979_v54  ;;  %v2866_v38 = vadd.f32 %v6217_v39, %v2865_v22  ;;  %v3033_v2 = vand.u32 2147483647, %v6225_v41 }
 0x5ba   :  { %v2988_v63 = vmul.f32 %v4713_v47, %v2987_v19  ;;  %4722 = vtanh.f32 %v2856_v52  ;;  %v3035_v52 = vand.u32 2147483648, %v6225_v41  ;;  %vm2906_vm11 = vweird.f32 %v6227_v27 }
 0x5bb   :  { %v3007_v21 = vmul.f32 %v4715_v44, %v3006_v0  ;;  %vm3034_vm9 = vcmp.eq.f32.partialorder %v3033_v2, 8.507059e+37  ;;  %v7211_v2 = vld [vmem:[#allocation82_spill] sm:$0xff] }
 0x5bc   :  { %v2989_v53 = vadd.f32 %v4713_v47, %v2988_v63  ;;  %v3036_v25 = vor.u32 1.1754944e-38, %v3035_v52  ;;  %v7208_v52 = vld [vmem:[#allocation76_spill] sm:$0xff] }
 0x5bd   :  { %v4717_v28 = vpop.eup %4716  ;;  %v3008_v54 = vadd.f32 %v4715_v44, %v3007_v21  ;;  %v2890_v21 = vand.u32 2147483647, %v6212_v3  ;;  %v2893_v3 = vor.u32 1.1754944e-38, %v2892_v33 }
 0x5be   :  { %v3025_v1 = vmul.f32 %v4717_v28, %v6225_v41  ;;  %v6243_v19 = vpop.eup %4718  ;;  %v2993_v30 = vsel %vm2992_vm13, %v4713_v47, %v2989_v53  ;;  %vm3030_vm5 = vweird.f32 %v4717_v28  ;;  %v2912_v41 = vand.u32 2147483648, %v6227_v27  ;;  %v7198_v53 = vld [vmem:[#allocation68_spill] sm:$0xff] }
 0x5bf   :  { %v4721_v45 = vpop.eup %4720  ;;  %v2998_v63 = vsel %vm2995_vm15, %v2997_v59, %v2993_v30  ;;  %v3012_v56 = vsel %vm3011_vm14, %v4715_v44, %v3008_v54  ;;  %vm2891_vm6 = vcmp.eq.f32.partialorder %v2890_v21, 8.507059e+37  ;;  %v2902_v44 = vmul.f32 %v6243_v19, %v6227_v27  ;;  %vm3031_vm8 = vmor %vm3029_vm7, %vm3030_vm5  ;;  %v7199_v21 = vld [vmem:[#allocation69_spill] sm:$0xff] }
 0x5c0   :  { %v3026_v0 = vsub.f32 1.0, %v3025_v1  ;;  %v3017_v22 = vsel %vm3014_vm0, %v3016_v5, %v3012_v56  ;;  %v3040_v36 = vmul.f32 %v4721_v45, %v2998_v63  ;;  %v2870_v45 = vsel %vm6252_vm2, %v6217_v39, %v2866_v38  ;;  %v4723_v16 = vpop.eup %4722  ;;  %v7194_v63 = vld [vmem:[#allocation64_spill] sm:$0xff]  ;;  %v7195_v56 = vld [vmem:[#allocation65_spill] sm:$0xff]  ;;  %v7201_v5 = vld [vmem:[#allocation74_spill] sm:$0xff] }
 0x5c1   :  { %v3039_v47 = vmul.f32 %v3017_v22, %v6088_v26  ;;  %v2874_v26 = vor.u32 1.1754944e-38, %v2873_v13  ;;  %v2894_v14 = vsel %vm2891_vm6, %v2893_v3, %v2889_v43  ;;  %v2903_v7 = vsub.f32 1.0, %v2902_v44  ;;  %v7196_v22 = vld [vmem:[#allocation67_spill] sm:$0xff]  ;;  %v7203_v43 = vld [vmem:[#allocation73_spill] sm:$0xff]  ;;  %v7207_v44 = vld [vmem:[#allocation80_spill] sm:$0xff] }
 0x5c2   :  { %v3027_v29 = vmul.f32 %v4717_v28, %v3026_v0  ;;  %vm2907_vm10 = vweird.f32 %v6243_v19  ;;  %v2913_v0 = vor.u32 1.1754944e-38, %v2912_v41  ;;  %v7204_v3 = vld [vmem:[#allocation75_spill] sm:$0xff] }
 0x5c3   :  { %v6270_v31 = vadd.f32 %v3040_v36, %v3039_v47  ;;  %v2875_v39 = vsel %vm2872_vm4, %v2874_v26, %v2870_v45  ;;  %v2904_v54 = vmul.f32 %v6243_v19, %v2903_v7  ;;  %vm2908_vm12 = vmor %vm2906_vm11, %vm2907_vm10  ;;  %v7197_v36 = vld [vmem:[#allocation70_spill] sm:$0xff]  ;;  %v7200_v47 = vld [vmem:[#allocation71_spill] sm:$0xff] }
 0x5c4   :  { %v3028_v10 = vadd.f32 %v4717_v28, %v3027_v29  ;;  %v2916_v29 = vmul.f32 %v2894_v14, %v6097_v34  ;;  %v2917_v13 = vmul.f32 %v4723_v16, %v2875_v39  ;;  %v7202_v45 = vld [vmem:[#allocation72_spill] sm:$0xff]  ;;  %v7205_v26 = vld [vmem:[#allocation77_spill] sm:$0xff]  ;;  %v7210_v14 = vld [vmem:[#allocation79_spill] sm:$0xff] }
 0x5c5   :  { %4724 = vtanh.f32 %v6270_v31  ;;  %v2905_v34 = vadd.f32 %v6243_v19, %v2904_v54  ;;  %v7209_v39 = vld [vmem:[#allocation81_spill] sm:$0xff]  ;;  %v7212_v16 = vld [vmem:[#allocation83_spill] sm:$0xff] }
 0x5c6   :  { %v3032_v33 = vsel %vm3031_vm8, %v4717_v28, %v3028_v10  ;;  %v6279_v59 = vadd.f32 %v2917_v13, %v2916_v29  ;;  %v2910_v28 = vand.u32 2147483647, %v6227_v27  ;;  %v7192_v27 = vld [vmem:[#allocation63_spill] sm:$0xff]  ;;  %v7206_v10 = vld [vmem:[#allocation78_spill] sm:$0xff]  ;;  %v7214_v29 = vld [vmem:[#allocation84_spill] sm:$0xff] }
 0x5c7   :  { %v3037_v1 = vsel %vm3034_vm9, %v3036_v25, %v3032_v33  ;;  %v7213_v33 = vld [vmem:[#allocation85_spill] sm:$0xff]  ;;  %v7215_v13 = vld [vmem:[#allocation86_spill] sm:$0xff]  ;;  %v7216_v25 = vld [vmem:[#allocation87_spill] sm:$0xff] }
 0x5c8   :  { %4726 = vtanh.f32 %v6279_v59  ;;  %vm2911_vm13 = vcmp.eq.f32.partialorder %v2910_v28, 8.507059e+37  ;;  %v7217_v7 = vld [vmem:[#allocation89_spill] sm:$0xff]  ;;  %v7224_v41 = vld [vmem:[#allocation95_spill] sm:$0xff] }
 0x5c9   :  { %v7221_v54 = vld [vmem:[#allocation93_spill] sm:$0xff] }
 0x5ca   :  { %v7225_v28 = vld [vmem:[#allocation97_spill] sm:$0xff] }
 0x5cb   :  { %v4725_v40 = vpop.eup %4724 }
 0x5cc   :  { %v3043_v38 = vmul.f32 %v4725_v40, %v3037_v1  ;;  %v7218_v40 = vld [vmem:[#allocation88_spill] sm:$0xff]  ;;  %v7219_v1 = vld [vmem:[#allocation90_spill] sm:$0xff] }
 0x5ce   :  { %v3044_v30 = vpack.c.bf16 %v3043_v38, %v3043_v38  ;;  %v7220_v38 = vld [vmem:[#allocation91_spill] sm:$0xff] }
 0x5d0   :  { %3053 = vmatmul.bf16.vlgmr.msra.gmra.mxu0 %v3044_v30  ;;  %3066 = vmatmul.bf16.vlgmr.msrb.gmra.mxu1 %v3044_v30 }
 0x5d1   :  { %3079 = vmatmul.bf16.vlgmr.msra.gmra.mxu2 %v3044_v30  ;;  %3092 = vmatmul.bf16.vlgmr.msra.gmra.mxu3 %v3044_v30 }
 0x5d2   :  { %3221 = vmatpush.bf16.msra.mxu0 %v6858_v17  ;;  %3234 = vmatpush.bf16.msrb.mxu1 %v6859_v23  ;;  %v2909_v17 = vsel %vm2908_vm12, %v6243_v19, %v2905_v34  ;;  %v4727_v23 = vpop.eup %4726  ;;  %v7193_v19 = vld [vmem:[#allocation66_spill] sm:$0xff] }
 0x5d3   :  { %3247 = vmatpush.bf16.msra.mxu2 %v6860_v61  ;;  %3260 = vmatpush.bf16.msra.mxu3 %v6861_v58  ;;  %v2914_v61 = vsel %vm2911_vm13, %v2913_v0, %v2909_v17  ;;  %v7223_v34 = vld [vmem:[#allocation94_spill] sm:$0xff]  ;;  %v7226_v17 = vld [vmem:[#allocation96_spill] sm:$0xff]  ;;  %v7228_v0 = vld [vmem:[#allocation99_spill] sm:$0xff] }
 0x5d4   :  { %v2920_v58 = vmul.f32 %v4727_v23, %v2914_v61  ;;  %v7227_v23 = vld [vmem:[#allocation98_spill] sm:$0xff]  ;;  %v7229_v61 = vld [vmem:[#allocation101_spill] sm:$0xff] }
 0x5d6   :  { %3222 = vmatpush.bf16.msra.mxu0 %v6862_v49  ;;  %3235 = vmatpush.bf16.msrb.mxu1 %v5385_v55  ;;  %v3097_v55 = vpack.c.bf16 %v2920_v58, %v2920_v58  ;;  %v7170_v49 = vld [vmem:[#allocation130_spill] sm:$0xff]  ;;  %v7230_v58 = vld [vmem:[#allocation100_spill] sm:$0xff] }
 0x5d7   :  { %3248 = vmatpush.bf16.msra.mxu2 %v6863_v62  ;;  %3261 = vmatpush.bf16.msra.mxu3 %v6864_v6  ;;  %v7171_v62 = vld [vmem:[#allocation131_spill] sm:$0xff]  ;;  %v7172_v6 = vld [vmem:[#allocation132_spill] sm:$0xff] }
 0x5da   :  { %3223 = vmatpush.bf16.msra.mxu0 %v6865_v18  ;;  %3236 = vmatpush.bf16.msrb.mxu1 %v6866_v11  ;;  %v7173_v18 = vld [vmem:[#allocation134_spill] sm:$0xff]  ;;  %v7174_v11 = vld [vmem:[#allocation133_spill] sm:$0xff] }
 0x5db   :  { %3249 = vmatpush.bf16.msra.mxu2 %v6867_v24  ;;  %3262 = vmatpush.bf16.msra.mxu3 %v6868_v46  ;;  %v7181_v24 = vld [vmem:[#allocation56_spill] sm:$0xff]  ;;  %v7182_v46 = vld [vmem:[#allocation51_spill] sm:$0xff] }
 0x5de   :  { %3224 = vmatpush.bf16.msra.mxu0 %v6869_v15  ;;  %3237 = vmatpush.bf16.msrb.mxu1 %v6870_v51  ;;  %v7183_v15 = vld [vmem:[#allocation53_spill] sm:$0xff]  ;;  %v7184_v51 = vld [vmem:[#allocation54_spill] sm:$0xff] }
 0x5df   :  { %3250 = vmatpush.bf16.msra.mxu2 %v6871_v8  ;;  %3263 = vmatpush.bf16.msra.mxu3 %v6872_v32  ;;  %v7185_v8 = vld [vmem:[#allocation58_spill] sm:$0xff]  ;;  %v7186_v32 = vld [vmem:[#allocation55_spill] sm:$0xff] }
 0x5e0   :  { %3106 = vmatmul.bf16.vlgmr.msrb.gmra.mxu0 %v3097_v55  ;;  %3119 = vmatmul.bf16.vlgmr.msra.gmra.mxu1 %v3097_v55 }
 0x5e1   :  { %3132 = vmatmul.bf16.vlgmr.msrb.gmra.mxu2 %v3097_v55  ;;  %3145 = vmatmul.bf16.vlgmr.msrb.gmra.mxu3 %v3097_v55  ;;  %v7231_v55 = vld [vmem:[#allocation102_spill] sm:$0xff] }
 0x5e2   :  { %3225 = vmatpush.bf16.msra.mxu0 %v6873_v20  ;;  %3238 = vmatpush.bf16.msrb.mxu1 %v6874_v35  ;;  %v7187_v20 = vld [vmem:[#allocation57_spill] sm:$0xff]  ;;  %v7188_v35 = vld [vmem:[#allocation59_spill] sm:$0xff] }
 0x5e3   :  { %3251 = vmatpush.bf16.msra.mxu2 %v6875_v37  ;;  %3264 = vmatpush.bf16.msra.mxu3 %v6876_v57  ;;  %v7189_v37 = vld [vmem:[#allocation62_spill] sm:$0xff]  ;;  %v7190_v57 = vld [vmem:[#allocation60_spill] sm:$0xff] }
 0x5e6   :  { %3226 = vmatpush.bf16.msra.mxu0 %v6877_v48  ;;  %3239 = vmatpush.bf16.msrb.mxu1 %v5434_v12  ;;  %v7175_v12 = vld [vmem:[#allocation46_spill] sm:$0xff]  ;;  %v7191_v48 = vld [vmem:[#allocation61_spill] sm:$0xff] }
 0x5e7   :  { %3252 = vmatpush.bf16.msra.mxu2 %v5442_v60  ;;  %3265 = vmatpush.bf16.msra.mxu3 %v5436_v50  ;;  %v7176_v60 = vld [vmem:[#allocation47_spill] sm:$0xff]  ;;  %v7177_v50 = vld [vmem:[#allocation52_spill] sm:$0xff] }
 0x5ea   :  { %3227 = vmatpush.bf16.msra.mxu0 %v5440_v42  ;;  %3240 = vmatpush.bf16.msrb.mxu1 %v5446_v4  ;;  %v7178_v42 = vld [vmem:[#allocation48_spill] sm:$0xff]  ;;  %v7179_v4 = vld [vmem:[#allocation49_spill] sm:$0xff] }
 0x5eb   :  { %3253 = vmatpush.bf16.msra.mxu2 %v5454_v9  ;;  %3266 = vmatpush.bf16.msra.mxu3 %v7170_v49  ;;  %v7180_v9 = vld [vmem:[#allocation50_spill] sm:$0xff]  ;;  %v7232_v49 = vld [vmem:[#allocation103_spill] sm:$0xff] }
 0x5ee   :  { %3228 = vmatpush.bf16.msra.mxu0 %v7171_v62  ;;  %3241 = vmatpush.bf16.msrb.mxu1 %v7172_v6  ;;  %v7233_v62 = vld [vmem:[#allocation105_spill] sm:$0xff]  ;;  %v7234_v6 = vld [vmem:[#allocation104_spill] sm:$0xff] }
 0x5ef   :  { %3254 = vmatpush.bf16.msra.mxu2 %v7173_v18  ;;  %3267 = vmatpush.bf16.msra.mxu3 %v7174_v11  ;;  %v7235_v18 = vld [vmem:[#allocation106_spill] sm:$0xff]  ;;  %v7236_v11 = vld [vmem:[#allocation107_spill] sm:$0xff] }
 0x5f1   :  { %3229 = vmatmul.bf16.vlgmr.msra.gmra.mxu0 %v3044_v30  ;;  %3242 = vmatmul.bf16.vlgmr.msrb.gmra.mxu1 %v3044_v30 }
 0x5f2   :  { %3341 = vmatpush.bf16.msrb.mxu0 %v7175_v12  ;;  %3354 = vmatpush.bf16.msra.mxu1 %v7176_v60  ;;  %v7237_v12 = vld [vmem:[#allocation112_spill] sm:$0xff] }
 0x5f3   :  { %3255 = vmatmul.bf16.vlgmr.msra.gmra.mxu2 %v3044_v30  ;;  %3268 = vmatmul.bf16.vlgmr.msra.gmra.mxu3 %v3044_v30  ;;  %v7222_v30 = vld [vmem:[#allocation92_spill] sm:$0xff] }
 0x5f4   :  { %3367 = vmatpush.bf16.msrb.mxu2 %v7177_v50  ;;  %3380 = vmatpush.bf16.msrb.mxu3 %v7178_v42  ;;  %v7238_v60 = vld [vmem:[#allocation108_spill] sm:$0xff] }
 0x5f6   :  { %3342 = vmatpush.bf16.msrb.mxu0 %v7179_v4  ;;  %3355 = vmatpush.bf16.msra.mxu1 %v7180_v9 }
 0x5f8   :  { %3368 = vmatpush.bf16.msrb.mxu2 %v7181_v24  ;;  %3381 = vmatpush.bf16.msrb.mxu3 %v7182_v46 }
 0x5fa   :  { %3343 = vmatpush.bf16.msrb.mxu0 %v7183_v15  ;;  %3356 = vmatpush.bf16.msra.mxu1 %v7184_v51 }
 0x5fc   :  { %3369 = vmatpush.bf16.msrb.mxu2 %v7185_v8  ;;  %3382 = vmatpush.bf16.msrb.mxu3 %v7186_v32 }
 0x5fe   :  { %3344 = vmatpush.bf16.msrb.mxu0 %v7187_v20  ;;  %3357 = vmatpush.bf16.msra.mxu1 %v7188_v35  ;;  %v7239_v20 = vld [vmem:[#allocation40_spill] sm:$0xff] }
 0x600   :  { %3370 = vmatpush.bf16.msrb.mxu2 %v7189_v37  ;;  %3383 = vmatpush.bf16.msrb.mxu3 %v7190_v57  ;;  %v7240_v37 = vld [vmem:[#allocation41_spill] sm:$0xff] }
 0x602   :  { %3345 = vmatpush.bf16.msrb.mxu0 %v7191_v48  ;;  %3358 = vmatpush.bf16.msra.mxu1 %v7192_v27 }
 0x604   :  { %3371 = vmatpush.bf16.msrb.mxu2 %v7193_v19  ;;  %3384 = vmatpush.bf16.msrb.mxu3 %v7194_v63 }
 0x606   :  { %3346 = vmatpush.bf16.msrb.mxu0 %v7195_v56  ;;  %3359 = vmatpush.bf16.msra.mxu1 %v7196_v22 }
 0x608   :  { %3372 = vmatpush.bf16.msrb.mxu2 %v7197_v36  ;;  %3385 = vmatpush.bf16.msrb.mxu3 %v7198_v53 }
 0x60a   :  { %3347 = vmatpush.bf16.msrb.mxu0 %v7199_v21  ;;  %3360 = vmatpush.bf16.msra.mxu1 %v7200_v47 }
 0x60c   :  { %3373 = vmatpush.bf16.msrb.mxu2 %v7201_v5  ;;  %3386 = vmatpush.bf16.msrb.mxu3 %v7202_v45 }
 0x60e   :  { %3348 = vmatpush.bf16.msrb.mxu0 %v7203_v43  ;;  %3361 = vmatpush.bf16.msra.mxu1 %v7204_v3  ;;  %v7241_v3 = vld [vmem:[#allocation42_spill] sm:$0xff] }
 0x610   :  { %3374 = vmatpush.bf16.msrb.mxu2 %v7207_v44  ;;  %3387 = vmatpush.bf16.msrb.mxu3 %v7208_v52  ;;  %v7243_v52 = vld [vmem:[#allocation36_spill] sm:$0xff] }
 0x612   :  { %3394 = vmatpush.bf16.msra.mxu0 %v7205_v26  ;;  %3407 = vmatpush.bf16.msrb.mxu1 %v7206_v10  ;;  %v7242_v10 = vld [vmem:[#allocation17_spill] sm:$0xff] }
 0x614   :  { %3420 = vmatpush.bf16.msra.mxu2 %v7209_v39  ;;  %3433 = vmatpush.bf16.msra.mxu3 %v7210_v14 }
 0x616   :  { %3395 = vmatpush.bf16.msra.mxu0 %v7211_v2  ;;  %3408 = vmatpush.bf16.msrb.mxu1 %v7212_v16 }
 0x618   :  { %3421 = vmatpush.bf16.msra.mxu2 %v7213_v33  ;;  %3434 = vmatpush.bf16.msra.mxu3 %v7214_v29 }
 0x61a   :  { %3396 = vmatpush.bf16.msra.mxu0 %v7215_v13  ;;  %3409 = vmatpush.bf16.msrb.mxu1 %v7216_v25 }
 0x61c   :  { %3422 = vmatpush.bf16.msra.mxu2 %v7217_v7  ;;  %3435 = vmatpush.bf16.msra.mxu3 %v7218_v40 }
 0x61e   :  { %3397 = vmatpush.bf16.msra.mxu0 %v7219_v1  ;;  %3410 = vmatpush.bf16.msrb.mxu1 %v7220_v38  ;;  %v7244_v1 = vld [vmem:[#allocation39_spill] sm:$0xff] }
 0x620   :  { %3423 = vmatpush.bf16.msra.mxu2 %v7221_v54  ;;  %3436 = vmatpush.bf16.msra.mxu3 %v7222_v30 }
 0x622   :  { %3398 = vmatpush.bf16.msra.mxu0 %v7223_v34  ;;  %3411 = vmatpush.bf16.msrb.mxu1 %v7224_v41 }
 0x624   :  { %3424 = vmatpush.bf16.msra.mxu2 %v7225_v28  ;;  %3437 = vmatpush.bf16.msra.mxu3 %v7226_v17 }
 0x626   :  { %3399 = vmatpush.bf16.msra.mxu0 %v7227_v23  ;;  %3412 = vmatpush.bf16.msrb.mxu1 %v7228_v0 }
 0x628   :  { %3425 = vmatpush.bf16.msra.mxu2 %v7229_v61  ;;  %3438 = vmatpush.bf16.msra.mxu3 %v7230_v58 }
 0x62a   :  { %3400 = vmatpush.bf16.msra.mxu0 %v7231_v55  ;;  %3413 = vmatpush.bf16.msrb.mxu1 %v7232_v49 }
 0x62c   :  { %3426 = vmatpush.bf16.msra.mxu2 %v7233_v62  ;;  %3439 = vmatpush.bf16.msra.mxu3 %v7234_v6 }
 0x62e   :  { %3401 = vmatpush.bf16.msra.mxu0 %v7235_v18  ;;  %3414 = vmatpush.bf16.msrb.mxu1 %v7236_v11 }
 0x630   :  { %3427 = vmatpush.bf16.msra.mxu2 %v7237_v12  ;;  %3440 = vmatpush.bf16.msra.mxu3 %v7238_v60 }
 0x64d   :  { %v3054_v50 = vpop.f32.mrf.mxu0  ;;  %v3067_v42 = vpop.f32.mrf.mxu1 }
 0x64e   :  { %v3055_v35 = vadd.f32 %v3054_v50, %v7239_v20  ;;  %v3068_v57 = vadd.f32 %v3067_v42, %v7240_v37  ;;  %v7245_v50 = vld [vmem:[#allocation43_spill] sm:$0xff] }
 0x654   :  { %v6385_v4 = vpop.f32.mrf.mxu2  ;;  %v3093_v9 = vpop.f32.mrf.mxu3 }
 0x655   :  { %v3056_v24 = vpop.f32.mrf.mxu0  ;;  %v3069_v46 = vpop.f32.mrf.mxu1  ;;  %v3094_v26 = vadd.f32 %v3093_v9, %v7241_v3  ;;  %v3081_v42 = vadd.f32 %v6385_v4, %v7245_v50 }
 0x656   :  { %v7246_v24 = vld [vmem:[#allocation38_spill] sm:$0xff] }
 0x65c   :  { %v3082_v15 = vpop.f32.mrf.mxu2  ;;  %v3095_v51 = vpop.f32.mrf.mxu3 }
 0x65d   :  { %v3107_v8 = vpop.f32.mrf.mxu0  ;;  %v3120_v32 = vpop.f32.mrf.mxu1 }
 0x65e   :  { %v3150_v48 = vadd.f32 %v3107_v8, %v3055_v35  ;;  %v3151_v27 = vadd.f32 %v3120_v32, %v3068_v57 }
 0x660   :  { %v4303_v56 = vmul.f32 -1.442695, %v3150_v48  ;;  %v4304_v53 = vmul.f32 -1.442695, %v3151_v27 }
 0x662   :  { %4728 = vpow2.f32 %v4303_v56 }
 0x663   :  { %4730 = vpow2.f32 %v4304_v53 }
 0x664   :  { %v3133_v19 = vpop.f32.mrf.mxu2  ;;  %v3146_v63 = vpop.f32.mrf.mxu3 }
 0x665   :  { %v3109_v22 = vpop.f32.mrf.mxu0  ;;  %v3122_v36 = vpop.f32.mrf.mxu1  ;;  %v3153_v2 = vadd.f32 %v3146_v63, %v3094_v26  ;;  %v3152_v32 = vadd.f32 %v3133_v19, %v3081_v42 }
 0x667   :  { %v4305_v25 = vmul.f32 -1.442695, %v3153_v2 }
 0x668   :  { %v4729_v43 = vpop.eup %4728 }
 0x669   :  { %v4731_v14 = vpop.eup %4730  ;;  %v6392_v29 = vadd.f32 1.0, %v4729_v43 }
 0x66a   :  { %v6394_v13 = vadd.f32 1.0, %v4731_v14 }
 0x66b   :  { %v3167_v35 = vand.u32 2147483647, %v6392_v29  ;;  %vm3163_vm14 = vweird.f32 %v6392_v29  ;;  %v3169_v48 = vand.u32 2147483648, %v6392_v29 }
 0x66c   :  { %v3135_v21 = vpop.f32.mrf.mxu2  ;;  %v3148_v47 = vpop.f32.mrf.mxu3  ;;  %vm3182_vm9 = vweird.f32 %v6394_v13 }
 0x66d   :  { %vm3168_vm12 = vcmp.eq.f32.partialorder %v3167_v35, 8.507059e+37 }
 0x66e   :  { %v3230_v5 = vpop.f32.mrf.mxu0  ;;  %v3243_v45 = vpop.f32.mrf.mxu1 }
 0x66f   :  { %v3273_v44 = vadd.f32 %v3230_v5, %v7242_v10  ;;  %v3274_v39 = vadd.f32 %v3243_v45, %v7243_v52 }
 0x671   :  { %v4306_v16 = vmul.f32 -1.442695, %v3273_v44  ;;  %v4307_v33 = vmul.f32 -1.442695, %v3274_v39 }
 0x673   :  { %4732 = vpow2.f32 %v4306_v16 }
 0x674   :  { %4734 = vpow2.f32 %v4307_v33 }
 0x675   :  { %4736 = vrcp.f32 %v6392_v29 }
 0x676   :  { %v3256_v7 = vpop.f32.mrf.mxu2  ;;  %v3269_v40 = vpop.f32.mrf.mxu3  ;;  %4738 = vrcp.f32 %v6394_v13 }
 0x677   :  { %v3276_v38 = vadd.f32 %v3269_v40, %v7244_v1  ;;  %v3232_v54 = vpop.f32.mrf.mxu0  ;;  %v3245_v30 = vpop.f32.mrf.mxu1  ;;  %4740 = vpow2.f32 %v4305_v25  ;;  %v3275_v46 = vadd.f32 %v3256_v7, %v7246_v24  ;;  %v3188_v40 = vand.u32 2147483648, %v6394_v13 }
 0x679   :  { %v4308_v34 = vmul.f32 -1.442695, %v3276_v38  ;;  %v4733_v41 = vpop.eup %4732 }
 0x67a   :  { %v4735_v28 = vpop.eup %4734  ;;  %v3280_v17 = vadd.f32 1.0, %v4733_v41 }
 0x67b   :  { %4742 = vpow2.f32 %v4308_v34  ;;  %v6399_v23 = vpop.eup %4736  ;;  %v3299_v0 = vadd.f32 1.0, %v4735_v28  ;;  %v3186_v34 = vand.u32 2147483647, %v6394_v13  ;;  %v4505_v28 = vld [vmem:[%s6510_s7] sm:$0xff] }
 0x67c   :  { %4744 = vrcp.f32 %v3280_v17  ;;  %v6401_v55 = vpop.eup %4738  ;;  %v3159_v62 = vmul.f32 %v6399_v23, %v6392_v29  ;;  %vm3164_vm15 = vweird.f32 %v6399_v23  ;;  %v3292_v56 = vand.u32 2147483648, %v3280_v17 }
 0x67d   :  { %4746 = vrcp.f32 %v3299_v0  ;;  %v4741_v49 = vpop.eup %4740  ;;  %v3178_v18 = vmul.f32 %v6401_v55, %v6394_v13  ;;  %v3311_v22 = vand.u32 2147483648, %v3299_v0  ;;  %v3290_v19 = vand.u32 2147483647, %v3280_v17  ;;  %vm6434_vm10 = vmor %vm3163_vm14, %vm3164_vm15 }
 0x67e   :  { %v3258_v61 = vpop.f32.mrf.mxu2  ;;  %v3271_v58 = vpop.f32.mrf.mxu3  ;;  %v6409_v12 = vadd.f32 1.0, %v4741_v49  ;;  %v3160_v9 = vsub.f32 1.0, %v3159_v62  ;;  %v3309_v5 = vand.u32 2147483647, %v3299_v0  ;;  %vm3183_vm2 = vweird.f32 %v6401_v55 }
 0x67f   :  { %v3179_v8 = vsub.f32 1.0, %v3178_v18  ;;  %vm3286_vm3 = vweird.f32 %v3280_v17  ;;  %vm3305_vm4 = vweird.f32 %v3299_v0  ;;  %v3293_v10 = vor.u32 1.1754944e-38, %v3292_v56  ;;  %vm6442_vm11 = vmor %vm3182_vm9, %vm3183_vm2 }
 0x680   :  { %v3161_v27 = vmul.f32 %v6399_v23, %v3160_v9  ;;  %v3312_v39 = vor.u32 1.1754944e-38, %v3311_v22  ;;  %vm3291_vm7 = vcmp.eq.f32.partialorder %v3290_v19, 8.507059e+37  ;;  %vm3310_vm8 = vcmp.eq.f32.partialorder %v3309_v5, 8.507059e+37  ;;  %v4510_v5 = vld [vmem:[%s6510_s7 + $0x28] sm:$0xff] }
 0x681   :  { %v4743_v6 = vpop.eup %4742  ;;  %v3180_v21 = vmul.f32 %v6401_v55, %v3179_v8  ;;  %v3189_v13 = vor.u32 1.1754944e-38, %v3188_v40  ;;  %v3170_v61 = vor.u32 1.1754944e-38, %v3169_v48  ;;  %vm3187_vm14 = vcmp.eq.f32.partialorder %v3186_v34, 8.507059e+37 }
 0x682   :  { %v6407_v11 = vadd.f32 1.0, %v4743_v6  ;;  %v4745_v60 = vpop.eup %4744  ;;  %v3162_v26 = vadd.f32 %v6399_v23, %v3161_v27 }
 0x683   :  { %v4747_v15 = vpop.eup %4746  ;;  %v3282_v51 = vmul.f32 %v4745_v60, %v3280_v17  ;;  %vm3287_vm0 = vweird.f32 %v4745_v60  ;;  %v3181_v33 = vadd.f32 %v6401_v55, %v3180_v21 }
 0x684   :  { %4748 = vrcp.f32 %v6407_v11  ;;  %v3301_v57 = vmul.f32 %v4747_v15, %v3299_v0  ;;  %vm3306_vm1 = vweird.f32 %v4747_v15  ;;  %vm3288_vm5 = vmor %vm3286_vm3, %vm3287_vm0  ;;  %v3166_v17 = vsel %vm6434_vm10, %v6399_v23, %v3162_v26  ;;  %v4509_v26 = vld [vmem:[%s6510_s7 + $0x20] sm:$0xff] }
 0x685   :  { %4750 = vrcp.f32 %v6409_v12  ;;  %v3283_v4 = vsub.f32 1.0, %v3282_v51  ;;  %vm3307_vm6 = vmor %vm3305_vm4, %vm3306_vm1  ;;  %v3185_v29 = vsel %vm6442_vm11, %v6401_v55, %v3181_v33  ;;  %v3331_v49 = vand.u32 2147483648, %v6407_v11 }
 0x686   :  { %v3302_v63 = vsub.f32 1.0, %v3301_v57  ;;  %4752 = vtanh.f32 %v3275_v46  ;;  %v3171_v62 = vsel %vm3168_vm12, %v3170_v61, %v3166_v17  ;;  %v3190_v6 = vsel %vm3187_vm14, %v3189_v13, %v3185_v29 }
 0x687   :  { %v3284_v36 = vmul.f32 %v4745_v60, %v3283_v4  ;;  %4754 = vtanh.f32 %v3152_v32  ;;  %vm3325_vm15 = vweird.f32 %v6407_v11  ;;  %v3329_v23 = vand.u32 2147483647, %v6407_v11 }
 0x688   :  { %v3303_v47 = vmul.f32 %v4747_v15, %v3302_v63  ;;  %v3332_v9 = vor.u32 1.1754944e-38, %v3331_v49  ;;  %vm3202_vm3 = vweird.f32 %v6409_v12  ;;  %v3206_v57 = vand.u32 2147483647, %v6409_v12 }
 0x689   :  { %v3285_v45 = vadd.f32 %v4745_v60, %v3284_v36  ;;  %vm3330_vm1 = vcmp.eq.f32.partialorder %v3329_v23, 8.507059e+37  ;;  %v4512_v36 = vld [vmem:[%s6510_s7 + $0x38] sm:$0xff] }
 0x68a   :  { %v4749_v53 = vpop.eup %4748  ;;  %v3304_v44 = vadd.f32 %v4747_v15, %v3303_v47 }
 0x68b   :  { %v3321_v43 = vmul.f32 %v4749_v53, %v6407_v11  ;;  %v6425_v52 = vpop.eup %4750  ;;  %v3289_v14 = vsel %vm3288_vm5, %v4745_v60, %v3285_v45  ;;  %vm3326_vm13 = vweird.f32 %v4749_v53  ;;  %v3212_v60 = vmul.f32 %v3190_v6, %v6279_v59 }
 0x68c   :  { %v4753_v16 = vpop.eup %4752  ;;  %v3294_v25 = vsel %vm3291_vm7, %v3293_v10, %v3289_v14  ;;  %v3308_v7 = vsel %vm3307_vm6, %v4747_v15, %v3304_v44  ;;  %v3198_v58 = vmul.f32 %v6425_v52, %v6409_v12  ;;  %vm3327_vm0 = vmor %vm3325_vm15, %vm3326_vm13  ;;  %vm3203_vm2 = vweird.f32 %v6425_v52  ;;  %v4508_v14 = vld [vmem:[%s6510_s7 + $0x18] sm:$0xff] }
 0x68d   :  { %v3322_v2 = vsub.f32 1.0, %v3321_v43  ;;  %v3313_v1 = vsel %vm3310_vm8, %v3312_v39, %v3308_v7  ;;  %v3336_v38 = vmul.f32 %v4753_v16, %v3294_v25  ;;  %v4755_v55 = vpop.eup %4754  ;;  %v3208_v11 = vand.u32 2147483648, %v6409_v12  ;;  %vm3204_vm4 = vmor %vm3202_vm3, %vm3203_vm2  ;;  %v4511_v12 = vld [vmem:[%s6510_s7 + $0x30] sm:$0xff] }
 0x68e   :  { %v3335_v41 = vmul.f32 %v3313_v1, %v6270_v31  ;;  %v3213_v42 = vmul.f32 %v4755_v55, %v3171_v62  ;;  %v3199_v24 = vsub.f32 1.0, %v3198_v58  ;;  %vm3207_vm5 = vcmp.eq.f32.partialorder %v3206_v57, 8.507059e+37  ;;  %v4507_v1 = vld [vmem:[%s6510_s7 + $0x10] sm:$0xff] }
 0x68f   :  { %v3323_v54 = vmul.f32 %v4749_v53, %v3322_v2  ;;  %v3209_v27 = vor.u32 1.1754944e-38, %v3208_v11 }
 0x690   :  { %v3337_v0 = vadd.f32 %v3336_v38, %v3335_v41  ;;  %v6458_v8 = vadd.f32 %v3213_v42, %v3212_v60  ;;  %v3200_v32 = vmul.f32 %v6425_v52, %v3199_v24 }
 0x691   :  { %v3324_v31 = vadd.f32 %v4749_v53, %v3323_v54 }
 0x692   :  { %4756 = vtanh.f32 %v3337_v0  ;;  %v3201_v59 = vadd.f32 %v6425_v52, %v3200_v32 }
 0x693   :  { %v3328_v18 = vsel %vm3327_vm0, %v4749_v53, %v3324_v31  ;;  %4758 = vtanh.f32 %v6458_v8 }
 0x694   :  { %v3333_v15 = vsel %vm3330_vm1, %v3332_v9, %v3328_v18  ;;  %v3205_v48 = vsel %vm3204_vm4, %v6425_v52, %v3201_v59 }
 0x695   :  { %v3210_v63 = vsel %vm3207_vm5, %v3209_v27, %v3205_v48 }
 0x698   :  { %v4757_v46 = vpop.eup %4756 }
 0x699   :  { %v3339_v51 = vmul.f32 %v4757_v46, %v3333_v15  ;;  %v4759_v4 = vpop.eup %4758 }
 0x69a   :  { %v3216_v56 = vmul.f32 %v4759_v4, %v3210_v63 }
 0x69b   :  { %v3340_v35 = vpack.c.bf16 %v3339_v51, %v3339_v51 }
 0x69c   :  { %v3393_v22 = vpack.c.bf16 %v3216_v56, %v3216_v56 }
 0x69d   :  { %3349 = vmatmul.bf16.vlgmr.msrb.gmra.mxu0 %v3340_v35  ;;  %3362 = vmatmul.bf16.vlgmr.msra.gmra.mxu1 %v3340_v35 }
 0x69e   :  { %3375 = vmatmul.bf16.vlgmr.msrb.gmra.mxu2 %v3340_v35  ;;  %3388 = vmatmul.bf16.vlgmr.msrb.gmra.mxu3 %v3340_v35 }
 0x69f   :  { %3582 = vmatpush.bf16.msrb.mxu0 %v4512_v36 }
 0x6a3   :  { %3583 = vmatpush.bf16.msrb.mxu0 %v4511_v12 }
 0x6a7   :  { %3584 = vmatpush.bf16.msrb.mxu0 %v4510_v5 }
 0x6ab   :  { %3585 = vmatpush.bf16.msrb.mxu0 %v4509_v26 }
 0x6ad   :  { %3402 = vmatmul.bf16.vlgmr.msra.gmra.mxu0 %v3393_v22  ;;  %3415 = vmatmul.bf16.vlgmr.msrb.gmra.mxu1 %v3393_v22 }
 0x6ae   :  { %3428 = vmatmul.bf16.vlgmr.msra.gmra.mxu2 %v3393_v22  ;;  %3441 = vmatmul.bf16.vlgmr.msra.gmra.mxu3 %v3393_v22 }
 0x6af   :  { %3586 = vmatpush.bf16.msrb.mxu0 %v4508_v14 }
 0x6b3   :  { %3587 = vmatpush.bf16.msrb.mxu0 %v4507_v1 }
 0x71a   :  { %v3350_v19 = vpop.f32.mrf.mxu0  ;;  %v3363_v53 = vpop.f32.mrf.mxu1 }
 0x71b   :  { %v3351_v10 = vadd.f32 %v3350_v19, %v7239_v20  ;;  %v3364_v44 = vadd.f32 %v3363_v53, %v7240_v37  ;;  %v4506_v20 = vld [vmem:[%s6510_s7 + $0x8] sm:$0xff] }
 0x71c   :  { %3588 = vmatpush.bf16.msrb.mxu0 %v4506_v20 }
 0x720   :  { %3589 = vmatpush.bf16.msrb.mxu0 %v4505_v28 }
 0x721   :  { %v3376_v21 = vpop.f32.mrf.mxu2  ;;  %v3389_v47 = vpop.f32.mrf.mxu3 }
 0x722   :  { %v3352_v45 = vpop.f32.mrf.mxu0  ;;  %v3365_v43 = vpop.f32.mrf.mxu1  ;;  %v3390_v37 = vadd.f32 %v3389_v47, %v7241_v3  ;;  %v3377_v49 = vadd.f32 %v3376_v21, %v7245_v50 }
 0x729   :  { %v3378_v52 = vpop.f32.mrf.mxu2  ;;  %v3391_v39 = vpop.f32.mrf.mxu3 }
 0x72a   :  { %v3403_v2 = vpop.f32.mrf.mxu0  ;;  %v3416_v16 = vpop.f32.mrf.mxu1 }
 0x72b   :  { %v3446_v33 = vadd.f32 %v3403_v2, %v3351_v10  ;;  %v3447_v25 = vadd.f32 %v3416_v16, %v3364_v44 }
 0x72d   :  { %v4309_v7 = vmul.f32 -1.442695, %v3446_v33  ;;  %v4310_v40 = vmul.f32 -1.442695, %v3447_v25 }
 0x72f   :  { %4760 = vpow2.f32 %v4309_v7 }
 0x730   :  { %4762 = vpow2.f32 %v4310_v40 }
 0x731   :  { %v3429_v38 = vpop.f32.mrf.mxu2  ;;  %v3442_v54 = vpop.f32.mrf.mxu3 }
 0x732   :  { %v3449_v30 = vadd.f32 %v3442_v54, %v3390_v37  ;;  %v3405_v34 = vpop.f32.mrf.mxu0  ;;  %v3418_v41 = vpop.f32.mrf.mxu1  ;;  %v3448_v23 = vadd.f32 %v3429_v38, %v3377_v49 }
 0x734   :  { %v4311_v17 = vmul.f32 -1.442695, %v3449_v30 }
 0x735   :  { %v4761_v29 = vpop.eup %4760 }
 0x736   :  { %v4763_v0 = vpop.eup %4762  ;;  %v3453_v13 = vadd.f32 1.0, %v4761_v29  ;;  %4764 = vpow2.f32 %v4311_v17 }
 0x737   :  { %v3472_v61 = vadd.f32 1.0, %v4763_v0 }
 0x738   :  { %4766 = vrcp.f32 %v3453_v13  ;;  %v3465_v24 = vand.u32 2147483648, %v3453_v13  ;;  %v3463_v51 = vand.u32 2147483647, %v3453_v13  ;;  %vm3459_vm8 = vweird.f32 %v3453_v13 }
 0x739   :  { %4768 = vrcp.f32 %v3472_v61  ;;  %v3431_v3 = vpop.f32.mrf.mxu2  ;;  %v3444_v31 = vpop.f32.mrf.mxu3  ;;  %v3484_v46 = vand.u32 2147483648, %v3472_v61  ;;  %v3482_v35 = vand.u32 2147483647, %v3472_v61  ;;  %vm3478_vm9 = vweird.f32 %v3472_v61 }
 0x73a   :  { %v3466_v11 = vor.u32 1.1754944e-38, %v3465_v24  ;;  %vm3464_vm12 = vcmp.eq.f32.partialorder %v3463_v51, 8.507059e+37 }
 0x73b   :  { %v3485_v4 = vor.u32 1.1754944e-38, %v3484_v46  ;;  %vm3483_vm13 = vcmp.eq.f32.partialorder %v3482_v35, 8.507059e+37 }
 0x73c   :  { %v4765_v58 = vpop.eup %4764 }
 0x73d   :  { %v3492_v62 = vadd.f32 1.0, %v4765_v58 }
 0x73e   :  { %v4767_v6 = vpop.eup %4766 }
 0x73f   :  { %v4769_v55 = vpop.eup %4768  ;;  %v3455_v18 = vmul.f32 %v4767_v6, %v3453_v13  ;;  %4770 = vrcp.f32 %v3492_v62  ;;  %vm3460_vm6 = vweird.f32 %v4767_v6  ;;  %v3504_v45 = vand.u32 2147483648, %v3492_v62 }
 0x740   :  { %v3474_v60 = vmul.f32 %v4769_v55, %v3472_v61  ;;  %4772 = vtanh.f32 %v3448_v23  ;;  %vm3479_vm7 = vweird.f32 %v4769_v55  ;;  %vm3461_vm10 = vmor %vm3459_vm8, %vm3460_vm6  ;;  %vm3498_vm15 = vweird.f32 %v3492_v62 }
 0x741   :  { %v3456_v42 = vsub.f32 1.0, %v3455_v18  ;;  %vm3480_vm11 = vmor %vm3478_vm9, %vm3479_vm7  ;;  %v3502_v43 = vand.u32 2147483647, %v3492_v62  ;;  %v3505_v10 = vor.u32 1.1754944e-38, %v3504_v45 }
 0x742   :  { %v3475_v9 = vsub.f32 1.0, %v3474_v60 }
 0x743   :  { %v3457_v15 = vmul.f32 %v4767_v6, %v3456_v42  ;;  %vm3503_vm1 = vcmp.eq.f32.partialorder %v3502_v43, 8.507059e+37 }
 0x744   :  { %v3476_v32 = vmul.f32 %v4769_v55, %v3475_v9 }
 0x745   :  { %v4771_v59 = vpop.eup %4770  ;;  %v3458_v50 = vadd.f32 %v4767_v6, %v3457_v15 }
 0x746   :  { %v3477_v57 = vadd.f32 %v4769_v55, %v3476_v32  ;;  %v3494_v48 = vmul.f32 %v4771_v59, %v3492_v62  ;;  %v4773_v63 = vpop.eup %4772  ;;  %vm3499_vm14 = vweird.f32 %v4771_v59 }
 0x747   :  { %v3462_v27 = vsel %vm3461_vm10, %v4767_v6, %v3458_v50  ;;  %vm3500_vm0 = vmor %vm3498_vm15, %vm3499_vm14 }
 0x748   :  { %v3467_v56 = vsel %vm3464_vm12, %v3466_v11, %v3462_v27  ;;  %v3481_v22 = vsel %vm3480_vm11, %v4769_v55, %v3477_v57  ;;  %v3495_v36 = vsub.f32 1.0, %v3494_v48 }
 0x749   :  { %v3486_v19 = vsel %vm3483_vm13, %v3485_v4, %v3481_v22  ;;  %v3509_v53 = vmul.f32 %v4773_v63, %v3467_v56 }
 0x74a   :  { %v3508_v12 = vmul.f32 %v3486_v19, %v6458_v8  ;;  %v3496_v21 = vmul.f32 %v4771_v59, %v3495_v36  ;;  %v4567_v8 = vld [vmem:[%s6511_s8] ss:$0 sm:$0xff] }
 0x74c   :  { %v3510_v47 = vadd.f32 %v3509_v53, %v3508_v12  ;;  %v3497_v5 = vadd.f32 %v4771_v59, %v3496_v21 }
 0x74e   :  { %4774 = vtanh.f32 %v3510_v47  ;;  %v3501_v26 = vsel %vm3500_vm0, %v4771_v59, %v3497_v5 }
 0x74f   :  { %v3506_v52 = vsel %vm3503_vm1, %v3505_v10, %v3501_v26 }
 0x754   :  { %v4775_v44 = vpop.eup %4774 }
 0x755   :  { %v3512_v39 = vmul.f32 %v4775_v44, %v3506_v52 }
 0x757   :  { %v3513_v14 = vpack.c.bf16 %v3512_v39, %v3512_v39 }
 0x759   :  { %3590 = vmatmul.bf16.vlgmr.msrb.gmra.mxu0 %v3513_v14 }
 0x7d6   :  { %v3591_v2 = vpop.f32.mrf.mxu0 }
 0x7d7   :  { %v3592_v16 = vadd.f32 %v4567_v8, %v3591_v2 }
 0x7d9   :  { %3595 = vst [vmem:[%s6512_s9] sm:$0xff] %v3592_v16 }
 0x7de   :  { %v3593_v33 = vpop.f32.mrf.mxu0 }
 0x7df   :  { %3600 = vsyncpa [#allocation6], 1 }
 0x7e0   :  { %3601 = vsyncpa [#allocation8], 1 }
 0x7e1   :  { %3602 = vsyncmov [#allocation4] }
 0x7e4   :  { %s3603_s17 = vpop.sfrf %3602 }
 0x7e5   :  { %p4344_p0 = scmp.ne.s32.totalorder %s3603_s17, 0 }
 0x7e7   :  { %3607 = shalt.err (%p4344_p0)  }

</bundles_post_ra>
